<compile_context>
chip_gen: v7x
topology: tpu7x:2x2x1
jax: 0.10.0
libtpu: 0.0.40
codegen_flags: <defaults>
</compile_context>

<pallas_src>
import jax
import jax.numpy as jnp
from jax import lax
from jax.experimental import pallas as pl
from jax.experimental.pallas import tpu as pltpu

INPUT_SIZE = 10
HIDDEN_SIZE = 50
NUM_LAYERS = 2       # hard-wired to 2 (matches the module)
OUTPUT_SIZE = 1

HP = 128             # hidden dim padded to one full lane tile
G3 = 3 * HP          # fused gate width (r | z | n), each gate lane-aligned


# ----------------------------- Pallas kernel ------------------------------- #
def gru_kernel(x_ref,
               wih0_ref, whh0_ref, bx0_ref, bhn0_ref,
               wih1_ref, whh1_ref, bx1_ref, bhn1_ref,
               h1_out_ref):
    Bp, T, _ = x_ref.shape
    Hp = h1_out_ref.shape[-1]

    # Hoist weight / bias loads out of the time loop.
    wih0 = wih0_ref[...]; whh0 = whh0_ref[...]
    bx0 = bx0_ref[...];   bhn0 = bhn0_ref[...]
    wih1 = wih1_ref[...]; whh1 = whh1_ref[...]
    bx1 = bx1_ref[...];   bhn1 = bhn1_ref[...]

    def cell(xt, h, wih, whh, bx, bhn):
        # Fused gates: 2 MXU matmuls per cell instead of 6 tiny ones.
        gx = jnp.dot(xt, wih, preferred_element_type=jnp.float32) + bx   # (Bp, 3HP)
        gh = jnp.dot(h, whh, preferred_element_type=jnp.float32)         # (Bp, 3HP)
        rz = jax.nn.sigmoid(gx[:, :2 * Hp] + gh[:, :2 * Hp])  # one sigmoid on r|z slab
        r = rz[:, :Hp]
        z = rz[:, Hp:]
        n = jnp.tanh(gx[:, 2 * Hp:] + r * (gh[:, 2 * Hp:] + bhn))
        return (1.0 - z) * n + z * h

    def step(t, carry):
        h0, h1 = carry
        xt = x_ref[:, t, :]                                   # (Bp, I)
        h0n = cell(xt, h0, wih0, whh0, bx0, bhn0)
        h1n = cell(h0n, h1, wih1, whh1, bx1, bhn1)
        return (h0n, h1n)

    z0 = jnp.zeros((Bp, Hp), jnp.float32)
    # Unrolling exposes layer1(t) || layer0(t+1) parallelism to the scheduler.
    unroll = True if T <= 32 else 8
    _, h1_final = lax.fori_loop(0, T, step, (z0, z0), unroll=unroll)
    h1_out_ref[...] = h1_final


# ------------------------------- wrapper ----------------------------------- #
def gru_forward(x, kp):
    """x: (B, T, INPUT_SIZE) float32 -> (B, OUTPUT_SIZE) float32."""
    B, T, I = x.shape
    Bp = ((B + 7) // 8) * 8
    if Bp != B:                       # tiny pad; keeps sublane dim unmasked in-kernel
        x = jnp.pad(x, ((0, Bp - B), (0, 0), (0, 0)))

    def full(shape):
        nd = len(shape)
        return pl.BlockSpec(shape, lambda c, _nd=nd: (0,) * _nd)

    grid_spec = pltpu.PrefetchScalarGridSpec(
        num_scalar_prefetch=0,
        grid=(1,),                     # time recurrence handled inside the kernel
        in_specs=[
            pl.BlockSpec((Bp, T, I), lambda c: (0, 0, 0)),   # whole sequence, one block
            full((I, G3)),  full((HP, G3)), full((1, G3)), full((1, HP)),   # layer 0
            full((HP, G3)), full((HP, G3)), full((1, G3)), full((1, HP)),   # layer 1
        ],
        out_specs=pl.BlockSpec((Bp, HP), lambda c: (0, 0)),
    )

    h1 = pl.pallas_call(
        gru_kernel,
        out_shape=jax.ShapeDtypeStruct((Bp, HP), jnp.float32),
        grid_spec=grid_spec,
        compiler_params=pltpu.CompilerParams(
            dimension_semantics=("arbitrary",),
            vmem_limit_bytes=32 * 1024 * 1024),
    )(x,
      kp["wih0"], kp["whh0"], kp["bx0"], kp["bhn0"],
      kp["wih1"], kp["whh1"], kp["bx1"], kp["bhn1"])

    # Final Linear on the last hidden state: (B,50)@(50,1) — plain XLA op keeps the
    # kernel's only output lane-dense.
    return h1[:B, :HIDDEN_SIZE] @ kp["w_fc"].T + kp["b_fc"]


# --------------------------- parameter init -------------------------------- #
def init_params(key):
    """PyTorch-layout params, uniform(-1/sqrt(H), 1/sqrt(H)); deterministic."""
    H, I, O = HIDDEN_SIZE, INPUT_SIZE, OUTPUT_SIZE
    bound = 1.0 / (H ** 0.5)
    keys = iter(jax.random.split(key, 10))

    def u(shape):
        return jax.random.uniform(next(keys), shape, jnp.float32, -bound, bound)

    raw = {}
    for layer, in_dim in [(0, I), (1, H)]:
        raw[f"w_ih{layer}"] = u((3 * H, in_dim))   # gates r|z|n stacked (PyTorch layout)
        raw[f"w_hh{layer}"] = u((3 * H, H))
        raw[f"b_ih{layer}"] = u((3 * H,))
        raw[f"b_hh{layer}"] = u((3 * H,))
    raw["w_fc"] = u((O, H))
    raw["b_fc"] = u((O,))
    return raw


def prep_params(raw):
    """Fuse + pad to kernel-ready layout. Padded rows/cols/lanes are zero."""
    H = HIDDEN_SIZE
    kp = {}
    for layer, in_dim in [(0, INPUT_SIZE), (1, H)]:
        w_ih = raw[f"w_ih{layer}"].reshape(3, H, in_dim).transpose(0, 2, 1)  # (3, in, H)
        w_hh = raw[f"w_hh{layer}"].reshape(3, H, H).transpose(0, 2, 1)       # (3, H, H)
        b_ih = raw[f"b_ih{layer}"].reshape(3, H)
        b_hh = raw[f"b_hh{layer}"].reshape(3, H)

        def fuse(w):  # (3, rows, H) -> (rows, 3*HP), each gate padded to HP lanes
            w = jnp.pad(w, ((0, 0), (0, 0), (0, HP - H)))
            return jnp.concatenate([w[0], w[1], w[2]], axis=1)

        wih_f = fuse(w_ih)                                    # (in_dim, 3HP)
        whh_f = jnp.pad(fuse(w_hh), ((0, HP - H), (0, 0)))    # (HP, 3HP)
        if layer == 1:
            # layer-1 input is the padded (Bp, HP) layer-0 hidden state
            wih_f = jnp.pad(wih_f, ((0, HP - H), (0, 0)))     # (HP, 3HP)

        # b_ih + b_hh pre-added for r and z; n keeps b_hn separate (multiplied by r).
        bx = jnp.stack([b_ih[0] + b_hh[0], b_ih[1] + b_hh[1], b_ih[2]])   # (3, H)
        bx = jnp.pad(bx, ((0, 0), (0, HP - H))).reshape(1, 3 * HP)
        bhn = jnp.pad(b_hh[2], (0, HP - H)).reshape(1, HP)

        kp[f"wih{layer}"] = wih_f
        kp[f"whh{layer}"] = whh_f
        kp[f"bx{layer}"] = bx
        kp[f"bhn{layer}"] = bhn
    kp["w_fc"] = raw["w_fc"]
    kp["b_fc"] = raw["b_fc"]
    return kp


# ---------------------------- pure-JAX reference ---------------------------- #
def gru_ref(x, raw):
    B, T, _ = x.shape
    H = HIDDEN_SIZE
    h = [jnp.zeros((B, H), jnp.float32) for _ in range(NUM_LAYERS)]
    for t in range(T):
        inp = x[:, t, :]
        for l in range(NUM_LAYERS):
            gi = inp @ raw[f"w_ih{l}"].T + raw[f"b_ih{l}"]
            gh = h[l] @ raw[f"w_hh{l}"].T + raw[f"b_hh{l}"]
            r = jax.nn.sigmoid(gi[:, :H] + gh[:, :H])
            z = jax.nn.sigmoid(gi[:, H:2 * H] + gh[:, H:2 * H])
            n = jnp.tanh(gi[:, 2 * H:] + r * gh[:, 2 * H:])
            h[l] = (1.0 - z) * n + z * h[l]
            inp = h[l]
    return h[-1] @ raw["w_fc"].T + raw["b_fc"]


if __name__ == "__main__":
    key = jax.random.PRNGKey(0)
    k_x, k_p = jax.random.split(key)
    B, T = 2, 8
    x = jax.random.normal(k_x, (B, T, INPUT_SIZE), jnp.float32)
    raw = init_params(k_p)
    kp = prep_params(raw)

    out = jax.block_until_ready(gru_forward(x, kp))
    ref = gru_ref(x, raw)

    assert out.shape == (B, OUTPUT_SIZE)
    assert jnp.allclose(out, ref, atol=1e-5, rtol=1e-5), (out, ref)
    print("KERNEL_OK")
</pallas_src>

<mosaic_0001>
module attributes {stable_mosaic.version = 11 : i64} {
  func.func @gru_kernel(%arg0: i32, %arg1: memref<8x8x10xf32, #tpu.memory_space<vmem>>, %arg2: memref<10x384xf32, #tpu.memory_space<vmem>>, %arg3: memref<128x384xf32, #tpu.memory_space<vmem>>, %arg4: memref<1x384xf32, #tpu.memory_space<vmem>>, %arg5: memref<1x128xf32, #tpu.memory_space<vmem>>, %arg6: memref<128x384xf32, #tpu.memory_space<vmem>>, %arg7: memref<128x384xf32, #tpu.memory_space<vmem>>, %arg8: memref<1x384xf32, #tpu.memory_space<vmem>>, %arg9: memref<1x128xf32, #tpu.memory_space<vmem>>, %arg10: memref<8x128xf32, #tpu.memory_space<vmem>>) attributes {dimension_semantics = [#tpu.dimension_semantics<arbitrary>], iteration_bounds = array<i64: 1>, scalar_prefetch = 0 : i64, scratch_operands = 0 : i64, tpu.core_type = #tpu.core_type<tc>, window_params = [{pipeline_mode = #tpu.pipeline_mode<synchronous>, transform_indices = @transform_0, window_bounds = array<i64: 8, 8, 10>}, {pipeline_mode = #tpu.pipeline_mode<synchronous>, transform_indices = @transform_1, window_bounds = array<i64: 10, 384>}, {pipeline_mode = #tpu.pipeline_mode<synchronous>, transform_indices = @transform_2, window_bounds = array<i64: 128, 384>}, {pipeline_mode = #tpu.pipeline_mode<synchronous>, transform_indices = @transform_3, window_bounds = array<i64: 1, 384>}, {pipeline_mode = #tpu.pipeline_mode<synchronous>, transform_indices = @transform_4, window_bounds = array<i64: 1, 128>}, {pipeline_mode = #tpu.pipeline_mode<synchronous>, transform_indices = @transform_5, window_bounds = array<i64: 128, 384>}, {pipeline_mode = #tpu.pipeline_mode<synchronous>, transform_indices = @transform_6, window_bounds = array<i64: 128, 384>}, {pipeline_mode = #tpu.pipeline_mode<synchronous>, transform_indices = @transform_7, window_bounds = array<i64: 1, 384>}, {pipeline_mode = #tpu.pipeline_mode<synchronous>, transform_indices = @transform_8, window_bounds = array<i64: 1, 128>}, {pipeline_mode = #tpu.pipeline_mode<synchronous>, transform_indices = @transform_9, window_bounds = array<i64: 8, 128>}]} {
    %c0 = arith.constant 0 : index
    %c0_0 = arith.constant 0 : index
    %0 = vector.load %arg2[%c0, %c0_0] : memref<10x384xf32, #tpu.memory_space<vmem>>, vector<10x384xf32>
    %c0_1 = arith.constant 0 : index
    %c0_2 = arith.constant 0 : index
    %1 = vector.load %arg3[%c0_1, %c0_2] : memref<128x384xf32, #tpu.memory_space<vmem>>, vector<128x384xf32>
    %c0_3 = arith.constant 0 : index
    %c0_4 = arith.constant 0 : index
    %2 = vector.load %arg4[%c0_3, %c0_4] : memref<1x384xf32, #tpu.memory_space<vmem>>, vector<1x384xf32>
    %c0_5 = arith.constant 0 : index
    %c0_6 = arith.constant 0 : index
    %3 = vector.load %arg5[%c0_5, %c0_6] : memref<1x128xf32, #tpu.memory_space<vmem>>, vector<1x128xf32>
    %c0_7 = arith.constant 0 : index
    %c0_8 = arith.constant 0 : index
    %4 = vector.load %arg6[%c0_7, %c0_8] : memref<128x384xf32, #tpu.memory_space<vmem>>, vector<128x384xf32>
    %c0_9 = arith.constant 0 : index
    %c0_10 = arith.constant 0 : index
    %5 = vector.load %arg7[%c0_9, %c0_10] : memref<128x384xf32, #tpu.memory_space<vmem>>, vector<128x384xf32>
    %c0_11 = arith.constant 0 : index
    %c0_12 = arith.constant 0 : index
    %6 = vector.load %arg8[%c0_11, %c0_12] : memref<1x384xf32, #tpu.memory_space<vmem>>, vector<1x384xf32>
    %c0_13 = arith.constant 0 : index
    %c0_14 = arith.constant 0 : index
    %7 = vector.load %arg9[%c0_13, %c0_14] : memref<1x128xf32, #tpu.memory_space<vmem>>, vector<1x128xf32>
    %cst = arith.constant 0.000000e+00 : f32
    %8 = vector.broadcast %cst : f32 to vector<8x128xf32>
    %c0_i32 = arith.constant 0 : i32
    %c0_15 = arith.constant 0 : index
    %9 = arith.index_cast %c0_i32 : i32 to index
    %c0_16 = arith.constant 0 : index
    %10 = vector.load %arg1[%c0_15, %9, %c0_16] : memref<8x8x10xf32, #tpu.memory_space<vmem>>, vector<8x1x10xf32>
    %11 = vector.shape_cast %10 : vector<8x1x10xf32> to vector<8x10xf32>
    %cst_17 = arith.constant dense<0.000000e+00> : vector<8x384xf32>
    %12 = tpu.matmul %11, %0, %cst_17 {dimension_numbers = #tpu.dot_dimension_numbers<[1], [0], [0], [1], [0, 0, 1, 1], [], []>} : vector<8x10xf32>, vector<10x384xf32>, vector<8x384xf32> -> vector<8x384xf32>
    %13 = vector.broadcast %2 : vector<1x384xf32> to vector<8x384xf32>
    %14 = arith.addf %12, %13 : vector<8x384xf32>
    %cst_18 = arith.constant dense<0.000000e+00> : vector<8x384xf32>
    %15 = tpu.matmul %8, %1, %cst_18 {dimension_numbers = #tpu.dot_dimension_numbers<[1], [0], [0], [1], [0, 0, 1, 1], [], []>} : vector<8x128xf32>, vector<128x384xf32>, vector<8x384xf32> -> vector<8x384xf32>
    %16 = vector.extract_strided_slice %14 {offsets = [0, 0], sizes = [8, 256], strides = [1, 1]} : vector<8x384xf32> to vector<8x256xf32>
    %17 = vector.extract_strided_slice %15 {offsets = [0, 0], sizes = [8, 256], strides = [1, 1]} : vector<8x384xf32> to vector<8x256xf32>
    %18 = arith.addf %16, %17 : vector<8x256xf32>
    %19 = arith.negf %18 : vector<8x256xf32>
    %20 = math.exp %19 : vector<8x256xf32>
    %cst_19 = arith.constant 1.000000e+00 : f32
    %21 = vector.broadcast %cst_19 : f32 to vector<8x256xf32>
    %22 = arith.addf %21, %20 : vector<8x256xf32>
    %23 = arith.divf %21, %22 : vector<8x256xf32>
    %24 = vector.extract_strided_slice %23 {offsets = [0, 0], sizes = [8, 128], strides = [1, 1]} : vector<8x256xf32> to vector<8x128xf32>
    %25 = vector.extract_strided_slice %23 {offsets = [0, 128], sizes = [8, 128], strides = [1, 1]} : vector<8x256xf32> to vector<8x128xf32>
    %26 = vector.extract_strided_slice %14 {offsets = [0, 256], sizes = [8, 128], strides = [1, 1]} : vector<8x384xf32> to vector<8x128xf32>
    %27 = vector.extract_strided_slice %15 {offsets = [0, 256], sizes = [8, 128], strides = [1, 1]} : vector<8x384xf32> to vector<8x128xf32>
    %28 = vector.broadcast %3 : vector<1x128xf32> to vector<8x128xf32>
    %29 = arith.addf %27, %28 : vector<8x128xf32>
    %30 = arith.mulf %24, %29 : vector<8x128xf32>
    %31 = arith.addf %26, %30 : vector<8x128xf32>
    %32 = math.tanh %31 : vector<8x128xf32>
    %cst_20 = arith.constant 1.000000e+00 : f32
    %33 = vector.broadcast %cst_20 : f32 to vector<8x128xf32>
    %34 = arith.subf %33, %25 : vector<8x128xf32>
    %35 = arith.mulf %34, %32 : vector<8x128xf32>
    %36 = arith.mulf %25, %8 : vector<8x128xf32>
    %37 = arith.addf %35, %36 : vector<8x128xf32>
    %cst_21 = arith.constant dense<0.000000e+00> : vector<8x384xf32>
    %38 = tpu.matmul %37, %4, %cst_21 {dimension_numbers = #tpu.dot_dimension_numbers<[1], [0], [0], [1], [0, 0, 1, 1], [], []>} : vector<8x128xf32>, vector<128x384xf32>, vector<8x384xf32> -> vector<8x384xf32>
    %39 = vector.broadcast %6 : vector<1x384xf32> to vector<8x384xf32>
    %40 = arith.addf %38, %39 : vector<8x384xf32>
    %cst_22 = arith.constant dense<0.000000e+00> : vector<8x384xf32>
    %41 = tpu.matmul %8, %5, %cst_22 {dimension_numbers = #tpu.dot_dimension_numbers<[1], [0], [0], [1], [0, 0, 1, 1], [], []>} : vector<8x128xf32>, vector<128x384xf32>, vector<8x384xf32> -> vector<8x384xf32>
    %42 = vector.extract_strided_slice %40 {offsets = [0, 0], sizes = [8, 256], strides = [1, 1]} : vector<8x384xf32> to vector<8x256xf32>
    %43 = vector.extract_strided_slice %41 {offsets = [0, 0], sizes = [8, 256], strides = [1, 1]} : vector<8x384xf32> to vector<8x256xf32>
    %44 = arith.addf %42, %43 : vector<8x256xf32>
    %45 = arith.negf %44 : vector<8x256xf32>
    %46 = math.exp %45 : vector<8x256xf32>
    %cst_23 = arith.constant 1.000000e+00 : f32
    %47 = vector.broadcast %cst_23 : f32 to vector<8x256xf32>
    %48 = arith.addf %47, %46 : vector<8x256xf32>
    %49 = arith.divf %47, %48 : vector<8x256xf32>
    %50 = vector.extract_strided_slice %49 {offsets = [0, 0], sizes = [8, 128], strides = [1, 1]} : vector<8x256xf32> to vector<8x128xf32>
    %51 = vector.extract_strided_slice %49 {offsets = [0, 128], sizes = [8, 128], strides = [1, 1]} : vector<8x256xf32> to vector<8x128xf32>
    %52 = vector.extract_strided_slice %40 {offsets = [0, 256], sizes = [8, 128], strides = [1, 1]} : vector<8x384xf32> to vector<8x128xf32>
    %53 = vector.extract_strided_slice %41 {offsets = [0, 256], sizes = [8, 128], strides = [1, 1]} : vector<8x384xf32> to vector<8x128xf32>
    %54 = vector.broadcast %7 : vector<1x128xf32> to vector<8x128xf32>
    %55 = arith.addf %53, %54 : vector<8x128xf32>
    %56 = arith.mulf %50, %55 : vector<8x128xf32>
    %57 = arith.addf %52, %56 : vector<8x128xf32>
    %58 = math.tanh %57 : vector<8x128xf32>
    %cst_24 = arith.constant 1.000000e+00 : f32
    %59 = vector.broadcast %cst_24 : f32 to vector<8x128xf32>
    %60 = arith.subf %59, %51 : vector<8x128xf32>
    %61 = arith.mulf %60, %58 : vector<8x128xf32>
    %62 = arith.mulf %51, %8 : vector<8x128xf32>
    %63 = arith.addf %61, %62 : vector<8x128xf32>
    %c1_i32 = arith.constant 1 : i32
    %c0_25 = arith.constant 0 : index
    %64 = arith.index_cast %c1_i32 : i32 to index
    %c0_26 = arith.constant 0 : index
    %65 = vector.load %arg1[%c0_25, %64, %c0_26] : memref<8x8x10xf32, #tpu.memory_space<vmem>>, vector<8x1x10xf32>
    %66 = vector.shape_cast %65 : vector<8x1x10xf32> to vector<8x10xf32>
    %cst_27 = arith.constant dense<0.000000e+00> : vector<8x384xf32>
    %67 = tpu.matmul %66, %0, %cst_27 {dimension_numbers = #tpu.dot_dimension_numbers<[1], [0], [0], [1], [0, 0, 1, 1], [], []>} : vector<8x10xf32>, vector<10x384xf32>, vector<8x384xf32> -> vector<8x384xf32>
    %68 = vector.broadcast %2 : vector<1x384xf32> to vector<8x384xf32>
    %69 = arith.addf %67, %68 : vector<8x384xf32>
    %cst_28 = arith.constant dense<0.000000e+00> : vector<8x384xf32>
    %70 = tpu.matmul %37, %1, %cst_28 {dimension_numbers = #tpu.dot_dimension_numbers<[1], [0], [0], [1], [0, 0, 1, 1], [], []>} : vector<8x128xf32>, vector<128x384xf32>, vector<8x384xf32> -> vector<8x384xf32>
    %71 = vector.extract_strided_slice %69 {offsets = [0, 0], sizes = [8, 256], strides = [1, 1]} : vector<8x384xf32> to vector<8x256xf32>
    %72 = vector.extract_strided_slice %70 {offsets = [0, 0], sizes = [8, 256], strides = [1, 1]} : vector<8x384xf32> to vector<8x256xf32>
    %73 = arith.addf %71, %72 : vector<8x256xf32>
    %74 = arith.negf %73 : vector<8x256xf32>
    %75 = math.exp %74 : vector<8x256xf32>
    %cst_29 = arith.constant 1.000000e+00 : f32
    %76 = vector.broadcast %cst_29 : f32 to vector<8x256xf32>
    %77 = arith.addf %76, %75 : vector<8x256xf32>
    %78 = arith.divf %76, %77 : vector<8x256xf32>
    %79 = vector.extract_strided_slice %78 {offsets = [0, 0], sizes = [8, 128], strides = [1, 1]} : vector<8x256xf32> to vector<8x128xf32>
    %80 = vector.extract_strided_slice %78 {offsets = [0, 128], sizes = [8, 128], strides = [1, 1]} : vector<8x256xf32> to vector<8x128xf32>
    %81 = vector.extract_strided_slice %69 {offsets = [0, 256], sizes = [8, 128], strides = [1, 1]} : vector<8x384xf32> to vector<8x128xf32>
    %82 = vector.extract_strided_slice %70 {offsets = [0, 256], sizes = [8, 128], strides = [1, 1]} : vector<8x384xf32> to vector<8x128xf32>
    %83 = vector.broadcast %3 : vector<1x128xf32> to vector<8x128xf32>
    %84 = arith.addf %82, %83 : vector<8x128xf32>
    %85 = arith.mulf %79, %84 : vector<8x128xf32>
    %86 = arith.addf %81, %85 : vector<8x128xf32>
    %87 = math.tanh %86 : vector<8x128xf32>
    %cst_30 = arith.constant 1.000000e+00 : f32
    %88 = vector.broadcast %cst_30 : f32 to vector<8x128xf32>
    %89 = arith.subf %88, %80 : vector<8x128xf32>
    %90 = arith.mulf %89, %87 : vector<8x128xf32>
    %91 = arith.mulf %80, %37 : vector<8x128xf32>
    %92 = arith.addf %90, %91 : vector<8x128xf32>
    %cst_31 = arith.constant dense<0.000000e+00> : vector<8x384xf32>
    %93 = tpu.matmul %92, %4, %cst_31 {dimension_numbers = #tpu.dot_dimension_numbers<[1], [0], [0], [1], [0, 0, 1, 1], [], []>} : vector<8x128xf32>, vector<128x384xf32>, vector<8x384xf32> -> vector<8x384xf32>
    %94 = vector.broadcast %6 : vector<1x384xf32> to vector<8x384xf32>
    %95 = arith.addf %93, %94 : vector<8x384xf32>
    %cst_32 = arith.constant dense<0.000000e+00> : vector<8x384xf32>
    %96 = tpu.matmul %63, %5, %cst_32 {dimension_numbers = #tpu.dot_dimension_numbers<[1], [0], [0], [1], [0, 0, 1, 1], [], []>} : vector<8x128xf32>, vector<128x384xf32>, vector<8x384xf32> -> vector<8x384xf32>
    %97 = vector.extract_strided_slice %95 {offsets = [0, 0], sizes = [8, 256], strides = [1, 1]} : vector<8x384xf32> to vector<8x256xf32>
    %98 = vector.extract_strided_slice %96 {offsets = [0, 0], sizes = [8, 256], strides = [1, 1]} : vector<8x384xf32> to vector<8x256xf32>
    %99 = arith.addf %97, %98 : vector<8x256xf32>
    %100 = arith.negf %99 : vector<8x256xf32>
    %101 = math.exp %100 : vector<8x256xf32>
    %cst_33 = arith.constant 1.000000e+00 : f32
    %102 = vector.broadcast %cst_33 : f32 to vector<8x256xf32>
    %103 = arith.addf %102, %101 : vector<8x256xf32>
    %104 = arith.divf %102, %103 : vector<8x256xf32>
    %105 = vector.extract_strided_slice %104 {offsets = [0, 0], sizes = [8, 128], strides = [1, 1]} : vector<8x256xf32> to vector<8x128xf32>
    %106 = vector.extract_strided_slice %104 {offsets = [0, 128], sizes = [8, 128], strides = [1, 1]} : vector<8x256xf32> to vector<8x128xf32>
    %107 = vector.extract_strided_slice %95 {offsets = [0, 256], sizes = [8, 128], strides = [1, 1]} : vector<8x384xf32> to vector<8x128xf32>
    %108 = vector.extract_strided_slice %96 {offsets = [0, 256], sizes = [8, 128], strides = [1, 1]} : vector<8x384xf32> to vector<8x128xf32>
    %109 = vector.broadcast %7 : vector<1x128xf32> to vector<8x128xf32>
    %110 = arith.addf %108, %109 : vector<8x128xf32>
    %111 = arith.mulf %105, %110 : vector<8x128xf32>
    %112 = arith.addf %107, %111 : vector<8x128xf32>
    %113 = math.tanh %112 : vector<8x128xf32>
    %cst_34 = arith.constant 1.000000e+00 : f32
    %114 = vector.broadcast %cst_34 : f32 to vector<8x128xf32>
    %115 = arith.subf %114, %106 : vector<8x128xf32>
    %116 = arith.mulf %115, %113 : vector<8x128xf32>
    %117 = arith.mulf %106, %63 : vector<8x128xf32>
    %118 = arith.addf %116, %117 : vector<8x128xf32>
    %c2_i32 = arith.constant 2 : i32
    %c0_35 = arith.constant 0 : index
    %119 = arith.index_cast %c2_i32 : i32 to index
    %c0_36 = arith.constant 0 : index
    %120 = vector.load %arg1[%c0_35, %119, %c0_36] : memref<8x8x10xf32, #tpu.memory_space<vmem>>, vector<8x1x10xf32>
    %121 = vector.shape_cast %120 : vector<8x1x10xf32> to vector<8x10xf32>
    %cst_37 = arith.constant dense<0.000000e+00> : vector<8x384xf32>
    %122 = tpu.matmul %121, %0, %cst_37 {dimension_numbers = #tpu.dot_dimension_numbers<[1], [0], [0], [1], [0, 0, 1, 1], [], []>} : vector<8x10xf32>, vector<10x384xf32>, vector<8x384xf32> -> vector<8x384xf32>
    %123 = vector.broadcast %2 : vector<1x384xf32> to vector<8x384xf32>
    %124 = arith.addf %122, %123 : vector<8x384xf32>
    %cst_38 = arith.constant dense<0.000000e+00> : vector<8x384xf32>
    %125 = tpu.matmul %92, %1, %cst_38 {dimension_numbers = #tpu.dot_dimension_numbers<[1], [0], [0], [1], [0, 0, 1, 1], [], []>} : vector<8x128xf32>, vector<128x384xf32>, vector<8x384xf32> -> vector<8x384xf32>
    %126 = vector.extract_strided_slice %124 {offsets = [0, 0], sizes = [8, 256], strides = [1, 1]} : vector<8x384xf32> to vector<8x256xf32>
    %127 = vector.extract_strided_slice %125 {offsets = [0, 0], sizes = [8, 256], strides = [1, 1]} : vector<8x384xf32> to vector<8x256xf32>
    %128 = arith.addf %126, %127 : vector<8x256xf32>
    %129 = arith.negf %128 : vector<8x256xf32>
    %130 = math.exp %129 : vector<8x256xf32>
    %cst_39 = arith.constant 1.000000e+00 : f32
    %131 = vector.broadcast %cst_39 : f32 to vector<8x256xf32>
    %132 = arith.addf %131, %130 : vector<8x256xf32>
    %133 = arith.divf %131, %132 : vector<8x256xf32>
    %134 = vector.extract_strided_slice %133 {offsets = [0, 0], sizes = [8, 128], strides = [1, 1]} : vector<8x256xf32> to vector<8x128xf32>
    %135 = vector.extract_strided_slice %133 {offsets = [0, 128], sizes = [8, 128], strides = [1, 1]} : vector<8x256xf32> to vector<8x128xf32>
    %136 = vector.extract_strided_slice %124 {offsets = [0, 256], sizes = [8, 128], strides = [1, 1]} : vector<8x384xf32> to vector<8x128xf32>
    %137 = vector.extract_strided_slice %125 {offsets = [0, 256], sizes = [8, 128], strides = [1, 1]} : vector<8x384xf32> to vector<8x128xf32>
    %138 = vector.broadcast %3 : vector<1x128xf32> to vector<8x128xf32>
    %139 = arith.addf %137, %138 : vector<8x128xf32>
    %140 = arith.mulf %134, %139 : vector<8x128xf32>
    %141 = arith.addf %136, %140 : vector<8x128xf32>
    %142 = math.tanh %141 : vector<8x128xf32>
    %cst_40 = arith.constant 1.000000e+00 : f32
    %143 = vector.broadcast %cst_40 : f32 to vector<8x128xf32>
    %144 = arith.subf %143, %135 : vector<8x128xf32>
    %145 = arith.mulf %144, %142 : vector<8x128xf32>
    %146 = arith.mulf %135, %92 : vector<8x128xf32>
    %147 = arith.addf %145, %146 : vector<8x128xf32>
    %cst_41 = arith.constant dense<0.000000e+00> : vector<8x384xf32>
    %148 = tpu.matmul %147, %4, %cst_41 {dimension_numbers = #tpu.dot_dimension_numbers<[1], [0], [0], [1], [0, 0, 1, 1], [], []>} : vector<8x128xf32>, vector<128x384xf32>, vector<8x384xf32> -> vector<8x384xf32>
    %149 = vector.broadcast %6 : vector<1x384xf32> to vector<8x384xf32>
    %150 = arith.addf %148, %149 : vector<8x384xf32>
    %cst_42 = arith.constant dense<0.000000e+00> : vector<8x384xf32>
    %151 = tpu.matmul %118, %5, %cst_42 {dimension_numbers = #tpu.dot_dimension_numbers<[1], [0], [0], [1], [0, 0, 1, 1], [], []>} : vector<8x128xf32>, vector<128x384xf32>, vector<8x384xf32> -> vector<8x384xf32>
    %152 = vector.extract_strided_slice %150 {offsets = [0, 0], sizes = [8, 256], strides = [1, 1]} : vector<8x384xf32> to vector<8x256xf32>
    %153 = vector.extract_strided_slice %151 {offsets = [0, 0], sizes = [8, 256], strides = [1, 1]} : vector<8x384xf32> to vector<8x256xf32>
    %154 = arith.addf %152, %153 : vector<8x256xf32>
    %155 = arith.negf %154 : vector<8x256xf32>
    %156 = math.exp %155 : vector<8x256xf32>
    %cst_43 = arith.constant 1.000000e+00 : f32
    %157 = vector.broadcast %cst_43 : f32 to vector<8x256xf32>
    %158 = arith.addf %157, %156 : vector<8x256xf32>
    %159 = arith.divf %157, %158 : vector<8x256xf32>
    %160 = vector.extract_strided_slice %159 {offsets = [0, 0], sizes = [8, 128], strides = [1, 1]} : vector<8x256xf32> to vector<8x128xf32>
    %161 = vector.extract_strided_slice %159 {offsets = [0, 128], sizes = [8, 128], strides = [1, 1]} : vector<8x256xf32> to vector<8x128xf32>
    %162 = vector.extract_strided_slice %150 {offsets = [0, 256], sizes = [8, 128], strides = [1, 1]} : vector<8x384xf32> to vector<8x128xf32>
    %163 = vector.extract_strided_slice %151 {offsets = [0, 256], sizes = [8, 128], strides = [1, 1]} : vector<8x384xf32> to vector<8x128xf32>
    %164 = vector.broadcast %7 : vector<1x128xf32> to vector<8x128xf32>
    %165 = arith.addf %163, %164 : vector<8x128xf32>
    %166 = arith.mulf %160, %165 : vector<8x128xf32>
    %167 = arith.addf %162, %166 : vector<8x128xf32>
    %168 = math.tanh %167 : vector<8x128xf32>
    %cst_44 = arith.constant 1.000000e+00 : f32
    %169 = vector.broadcast %cst_44 : f32 to vector<8x128xf32>
    %170 = arith.subf %169, %161 : vector<8x128xf32>
    %171 = arith.mulf %170, %168 : vector<8x128xf32>
    %172 = arith.mulf %161, %118 : vector<8x128xf32>
    %173 = arith.addf %171, %172 : vector<8x128xf32>
    %c3_i32 = arith.constant 3 : i32
    %c0_45 = arith.constant 0 : index
    %174 = arith.index_cast %c3_i32 : i32 to index
    %c0_46 = arith.constant 0 : index
    %175 = vector.load %arg1[%c0_45, %174, %c0_46] : memref<8x8x10xf32, #tpu.memory_space<vmem>>, vector<8x1x10xf32>
    %176 = vector.shape_cast %175 : vector<8x1x10xf32> to vector<8x10xf32>
    %cst_47 = arith.constant dense<0.000000e+00> : vector<8x384xf32>
    %177 = tpu.matmul %176, %0, %cst_47 {dimension_numbers = #tpu.dot_dimension_numbers<[1], [0], [0], [1], [0, 0, 1, 1], [], []>} : vector<8x10xf32>, vector<10x384xf32>, vector<8x384xf32> -> vector<8x384xf32>
    %178 = vector.broadcast %2 : vector<1x384xf32> to vector<8x384xf32>
    %179 = arith.addf %177, %178 : vector<8x384xf32>
    %cst_48 = arith.constant dense<0.000000e+00> : vector<8x384xf32>
    %180 = tpu.matmul %147, %1, %cst_48 {dimension_numbers = #tpu.dot_dimension_numbers<[1], [0], [0], [1], [0, 0, 1, 1], [], []>} : vector<8x128xf32>, vector<128x384xf32>, vector<8x384xf32> -> vector<8x384xf32>
    %181 = vector.extract_strided_slice %179 {offsets = [0, 0], sizes = [8, 256], strides = [1, 1]} : vector<8x384xf32> to vector<8x256xf32>
    %182 = vector.extract_strided_slice %180 {offsets = [0, 0], sizes = [8, 256], strides = [1, 1]} : vector<8x384xf32> to vector<8x256xf32>
    %183 = arith.addf %181, %182 : vector<8x256xf32>
    %184 = arith.negf %183 : vector<8x256xf32>
    %185 = math.exp %184 : vector<8x256xf32>
    %cst_49 = arith.constant 1.000000e+00 : f32
    %186 = vector.broadcast %cst_49 : f32 to vector<8x256xf32>
    %187 = arith.addf %186, %185 : vector<8x256xf32>
    %188 = arith.divf %186, %187 : vector<8x256xf32>
    %189 = vector.extract_strided_slice %188 {offsets = [0, 0], sizes = [8, 128], strides = [1, 1]} : vector<8x256xf32> to vector<8x128xf32>
    %190 = vector.extract_strided_slice %188 {offsets = [0, 128], sizes = [8, 128], strides = [1, 1]} : vector<8x256xf32> to vector<8x128xf32>
    %191 = vector.extract_strided_slice %179 {offsets = [0, 256], sizes = [8, 128], strides = [1, 1]} : vector<8x384xf32> to vector<8x128xf32>
    %192 = vector.extract_strided_slice %180 {offsets = [0, 256], sizes = [8, 128], strides = [1, 1]} : vector<8x384xf32> to vector<8x128xf32>
    %193 = vector.broadcast %3 : vector<1x128xf32> to vector<8x128xf32>
    %194 = arith.addf %192, %193 : vector<8x128xf32>
    %195 = arith.mulf %189, %194 : vector<8x128xf32>
    %196 = arith.addf %191, %195 : vector<8x128xf32>
    %197 = math.tanh %196 : vector<8x128xf32>
    %cst_50 = arith.constant 1.000000e+00 : f32
    %198 = vector.broadcast %cst_50 : f32 to vector<8x128xf32>
    %199 = arith.subf %198, %190 : vector<8x128xf32>
    %200 = arith.mulf %199, %197 : vector<8x128xf32>
    %201 = arith.mulf %190, %147 : vector<8x128xf32>
    %202 = arith.addf %200, %201 : vector<8x128xf32>
    %cst_51 = arith.constant dense<0.000000e+00> : vector<8x384xf32>
    %203 = tpu.matmul %202, %4, %cst_51 {dimension_numbers = #tpu.dot_dimension_numbers<[1], [0], [0], [1], [0, 0, 1, 1], [], []>} : vector<8x128xf32>, vector<128x384xf32>, vector<8x384xf32> -> vector<8x384xf32>
    %204 = vector.broadcast %6 : vector<1x384xf32> to vector<8x384xf32>
    %205 = arith.addf %203, %204 : vector<8x384xf32>
    %cst_52 = arith.constant dense<0.000000e+00> : vector<8x384xf32>
    %206 = tpu.matmul %173, %5, %cst_52 {dimension_numbers = #tpu.dot_dimension_numbers<[1], [0], [0], [1], [0, 0, 1, 1], [], []>} : vector<8x128xf32>, vector<128x384xf32>, vector<8x384xf32> -> vector<8x384xf32>
    %207 = vector.extract_strided_slice %205 {offsets = [0, 0], sizes = [8, 256], strides = [1, 1]} : vector<8x384xf32> to vector<8x256xf32>
    %208 = vector.extract_strided_slice %206 {offsets = [0, 0], sizes = [8, 256], strides = [1, 1]} : vector<8x384xf32> to vector<8x256xf32>
    %209 = arith.addf %207, %208 : vector<8x256xf32>
    %210 = arith.negf %209 : vector<8x256xf32>
    %211 = math.exp %210 : vector<8x256xf32>
    %cst_53 = arith.constant 1.000000e+00 : f32
    %212 = vector.broadcast %cst_53 : f32 to vector<8x256xf32>
    %213 = arith.addf %212, %211 : vector<8x256xf32>
    %214 = arith.divf %212, %213 : vector<8x256xf32>
    %215 = vector.extract_strided_slice %214 {offsets = [0, 0], sizes = [8, 128], strides = [1, 1]} : vector<8x256xf32> to vector<8x128xf32>
    %216 = vector.extract_strided_slice %214 {offsets = [0, 128], sizes = [8, 128], strides = [1, 1]} : vector<8x256xf32> to vector<8x128xf32>
    %217 = vector.extract_strided_slice %205 {offsets = [0, 256], sizes = [8, 128], strides = [1, 1]} : vector<8x384xf32> to vector<8x128xf32>
    %218 = vector.extract_strided_slice %206 {offsets = [0, 256], sizes = [8, 128], strides = [1, 1]} : vector<8x384xf32> to vector<8x128xf32>
    %219 = vector.broadcast %7 : vector<1x128xf32> to vector<8x128xf32>
    %220 = arith.addf %218, %219 : vector<8x128xf32>
    %221 = arith.mulf %215, %220 : vector<8x128xf32>
    %222 = arith.addf %217, %221 : vector<8x128xf32>
    %223 = math.tanh %222 : vector<8x128xf32>
    %cst_54 = arith.constant 1.000000e+00 : f32
    %224 = vector.broadcast %cst_54 : f32 to vector<8x128xf32>
    %225 = arith.subf %224, %216 : vector<8x128xf32>
    %226 = arith.mulf %225, %223 : vector<8x128xf32>
    %227 = arith.mulf %216, %173 : vector<8x128xf32>
    %228 = arith.addf %226, %227 : vector<8x128xf32>
    %c4_i32 = arith.constant 4 : i32
    %c0_55 = arith.constant 0 : index
    %229 = arith.index_cast %c4_i32 : i32 to index
    %c0_56 = arith.constant 0 : index
    %230 = vector.load %arg1[%c0_55, %229, %c0_56] : memref<8x8x10xf32, #tpu.memory_space<vmem>>, vector<8x1x10xf32>
    %231 = vector.shape_cast %230 : vector<8x1x10xf32> to vector<8x10xf32>
    %cst_57 = arith.constant dense<0.000000e+00> : vector<8x384xf32>
    %232 = tpu.matmul %231, %0, %cst_57 {dimension_numbers = #tpu.dot_dimension_numbers<[1], [0], [0], [1], [0, 0, 1, 1], [], []>} : vector<8x10xf32>, vector<10x384xf32>, vector<8x384xf32> -> vector<8x384xf32>
    %233 = vector.broadcast %2 : vector<1x384xf32> to vector<8x384xf32>
    %234 = arith.addf %232, %233 : vector<8x384xf32>
    %cst_58 = arith.constant dense<0.000000e+00> : vector<8x384xf32>
    %235 = tpu.matmul %202, %1, %cst_58 {dimension_numbers = #tpu.dot_dimension_numbers<[1], [0], [0], [1], [0, 0, 1, 1], [], []>} : vector<8x128xf32>, vector<128x384xf32>, vector<8x384xf32> -> vector<8x384xf32>
    %236 = vector.extract_strided_slice %234 {offsets = [0, 0], sizes = [8, 256], strides = [1, 1]} : vector<8x384xf32> to vector<8x256xf32>
    %237 = vector.extract_strided_slice %235 {offsets = [0, 0], sizes = [8, 256], strides = [1, 1]} : vector<8x384xf32> to vector<8x256xf32>
    %238 = arith.addf %236, %237 : vector<8x256xf32>
    %239 = arith.negf %238 : vector<8x256xf32>
    %240 = math.exp %239 : vector<8x256xf32>
    %cst_59 = arith.constant 1.000000e+00 : f32
    %241 = vector.broadcast %cst_59 : f32 to vector<8x256xf32>
    %242 = arith.addf %241, %240 : vector<8x256xf32>
    %243 = arith.divf %241, %242 : vector<8x256xf32>
    %244 = vector.extract_strided_slice %243 {offsets = [0, 0], sizes = [8, 128], strides = [1, 1]} : vector<8x256xf32> to vector<8x128xf32>
    %245 = vector.extract_strided_slice %243 {offsets = [0, 128], sizes = [8, 128], strides = [1, 1]} : vector<8x256xf32> to vector<8x128xf32>
    %246 = vector.extract_strided_slice %234 {offsets = [0, 256], sizes = [8, 128], strides = [1, 1]} : vector<8x384xf32> to vector<8x128xf32>
    %247 = vector.extract_strided_slice %235 {offsets = [0, 256], sizes = [8, 128], strides = [1, 1]} : vector<8x384xf32> to vector<8x128xf32>
    %248 = vector.broadcast %3 : vector<1x128xf32> to vector<8x128xf32>
    %249 = arith.addf %247, %248 : vector<8x128xf32>
    %250 = arith.mulf %244, %249 : vector<8x128xf32>
    %251 = arith.addf %246, %250 : vector<8x128xf32>
    %252 = math.tanh %251 : vector<8x128xf32>
    %cst_60 = arith.constant 1.000000e+00 : f32
    %253 = vector.broadcast %cst_60 : f32 to vector<8x128xf32>
    %254 = arith.subf %253, %245 : vector<8x128xf32>
    %255 = arith.mulf %254, %252 : vector<8x128xf32>
    %256 = arith.mulf %245, %202 : vector<8x128xf32>
    %257 = arith.addf %255, %256 : vector<8x128xf32>
    %cst_61 = arith.constant dense<0.000000e+00> : vector<8x384xf32>
    %258 = tpu.matmul %257, %4, %cst_61 {dimension_numbers = #tpu.dot_dimension_numbers<[1], [0], [0], [1], [0, 0, 1, 1], [], []>} : vector<8x128xf32>, vector<128x384xf32>, vector<8x384xf32> -> vector<8x384xf32>
    %259 = vector.broadcast %6 : vector<1x384xf32> to vector<8x384xf32>
    %260 = arith.addf %258, %259 : vector<8x384xf32>
    %cst_62 = arith.constant dense<0.000000e+00> : vector<8x384xf32>
    %261 = tpu.matmul %228, %5, %cst_62 {dimension_numbers = #tpu.dot_dimension_numbers<[1], [0], [0], [1], [0, 0, 1, 1], [], []>} : vector<8x128xf32>, vector<128x384xf32>, vector<8x384xf32> -> vector<8x384xf32>
    %262 = vector.extract_strided_slice %260 {offsets = [0, 0], sizes = [8, 256], strides = [1, 1]} : vector<8x384xf32> to vector<8x256xf32>
    %263 = vector.extract_strided_slice %261 {offsets = [0, 0], sizes = [8, 256], strides = [1, 1]} : vector<8x384xf32> to vector<8x256xf32>
    %264 = arith.addf %262, %263 : vector<8x256xf32>
    %265 = arith.negf %264 : vector<8x256xf32>
    %266 = math.exp %265 : vector<8x256xf32>
    %cst_63 = arith.constant 1.000000e+00 : f32
    %267 = vector.broadcast %cst_63 : f32 to vector<8x256xf32>
    %268 = arith.addf %267, %266 : vector<8x256xf32>
    %269 = arith.divf %267, %268 : vector<8x256xf32>
    %270 = vector.extract_strided_slice %269 {offsets = [0, 0], sizes = [8, 128], strides = [1, 1]} : vector<8x256xf32> to vector<8x128xf32>
    %271 = vector.extract_strided_slice %269 {offsets = [0, 128], sizes = [8, 128], strides = [1, 1]} : vector<8x256xf32> to vector<8x128xf32>
    %272 = vector.extract_strided_slice %260 {offsets = [0, 256], sizes = [8, 128], strides = [1, 1]} : vector<8x384xf32> to vector<8x128xf32>
    %273 = vector.extract_strided_slice %261 {offsets = [0, 256], sizes = [8, 128], strides = [1, 1]} : vector<8x384xf32> to vector<8x128xf32>
    %274 = vector.broadcast %7 : vector<1x128xf32> to vector<8x128xf32>
    %275 = arith.addf %273, %274 : vector<8x128xf32>
    %276 = arith.mulf %270, %275 : vector<8x128xf32>
    %277 = arith.addf %272, %276 : vector<8x128xf32>
    %278 = math.tanh %277 : vector<8x128xf32>
    %cst_64 = arith.constant 1.000000e+00 : f32
    %279 = vector.broadcast %cst_64 : f32 to vector<8x128xf32>
    %280 = arith.subf %279, %271 : vector<8x128xf32>
    %281 = arith.mulf %280, %278 : vector<8x128xf32>
    %282 = arith.mulf %271, %228 : vector<8x128xf32>
    %283 = arith.addf %281, %282 : vector<8x128xf32>
    %c5_i32 = arith.constant 5 : i32
    %c0_65 = arith.constant 0 : index
    %284 = arith.index_cast %c5_i32 : i32 to index
    %c0_66 = arith.constant 0 : index
    %285 = vector.load %arg1[%c0_65, %284, %c0_66] : memref<8x8x10xf32, #tpu.memory_space<vmem>>, vector<8x1x10xf32>
    %286 = vector.shape_cast %285 : vector<8x1x10xf32> to vector<8x10xf32>
    %cst_67 = arith.constant dense<0.000000e+00> : vector<8x384xf32>
    %287 = tpu.matmul %286, %0, %cst_67 {dimension_numbers = #tpu.dot_dimension_numbers<[1], [0], [0], [1], [0, 0, 1, 1], [], []>} : vector<8x10xf32>, vector<10x384xf32>, vector<8x384xf32> -> vector<8x384xf32>
    %288 = vector.broadcast %2 : vector<1x384xf32> to vector<8x384xf32>
    %289 = arith.addf %287, %288 : vector<8x384xf32>
    %cst_68 = arith.constant dense<0.000000e+00> : vector<8x384xf32>
    %290 = tpu.matmul %257, %1, %cst_68 {dimension_numbers = #tpu.dot_dimension_numbers<[1], [0], [0], [1], [0, 0, 1, 1], [], []>} : vector<8x128xf32>, vector<128x384xf32>, vector<8x384xf32> -> vector<8x384xf32>
    %291 = vector.extract_strided_slice %289 {offsets = [0, 0], sizes = [8, 256], strides = [1, 1]} : vector<8x384xf32> to vector<8x256xf32>
    %292 = vector.extract_strided_slice %290 {offsets = [0, 0], sizes = [8, 256], strides = [1, 1]} : vector<8x384xf32> to vector<8x256xf32>
    %293 = arith.addf %291, %292 : vector<8x256xf32>
    %294 = arith.negf %293 : vector<8x256xf32>
    %295 = math.exp %294 : vector<8x256xf32>
    %cst_69 = arith.constant 1.000000e+00 : f32
    %296 = vector.broadcast %cst_69 : f32 to vector<8x256xf32>
    %297 = arith.addf %296, %295 : vector<8x256xf32>
    %298 = arith.divf %296, %297 : vector<8x256xf32>
    %299 = vector.extract_strided_slice %298 {offsets = [0, 0], sizes = [8, 128], strides = [1, 1]} : vector<8x256xf32> to vector<8x128xf32>
    %300 = vector.extract_strided_slice %298 {offsets = [0, 128], sizes = [8, 128], strides = [1, 1]} : vector<8x256xf32> to vector<8x128xf32>
    %301 = vector.extract_strided_slice %289 {offsets = [0, 256], sizes = [8, 128], strides = [1, 1]} : vector<8x384xf32> to vector<8x128xf32>
    %302 = vector.extract_strided_slice %290 {offsets = [0, 256], sizes = [8, 128], strides = [1, 1]} : vector<8x384xf32> to vector<8x128xf32>
    %303 = vector.broadcast %3 : vector<1x128xf32> to vector<8x128xf32>
    %304 = arith.addf %302, %303 : vector<8x128xf32>
    %305 = arith.mulf %299, %304 : vector<8x128xf32>
    %306 = arith.addf %301, %305 : vector<8x128xf32>
    %307 = math.tanh %306 : vector<8x128xf32>
    %cst_70 = arith.constant 1.000000e+00 : f32
    %308 = vector.broadcast %cst_70 : f32 to vector<8x128xf32>
    %309 = arith.subf %308, %300 : vector<8x128xf32>
    %310 = arith.mulf %309, %307 : vector<8x128xf32>
    %311 = arith.mulf %300, %257 : vector<8x128xf32>
    %312 = arith.addf %310, %311 : vector<8x128xf32>
    %cst_71 = arith.constant dense<0.000000e+00> : vector<8x384xf32>
    %313 = tpu.matmul %312, %4, %cst_71 {dimension_numbers = #tpu.dot_dimension_numbers<[1], [0], [0], [1], [0, 0, 1, 1], [], []>} : vector<8x128xf32>, vector<128x384xf32>, vector<8x384xf32> -> vector<8x384xf32>
    %314 = vector.broadcast %6 : vector<1x384xf32> to vector<8x384xf32>
    %315 = arith.addf %313, %314 : vector<8x384xf32>
    %cst_72 = arith.constant dense<0.000000e+00> : vector<8x384xf32>
    %316 = tpu.matmul %283, %5, %cst_72 {dimension_numbers = #tpu.dot_dimension_numbers<[1], [0], [0], [1], [0, 0, 1, 1], [], []>} : vector<8x128xf32>, vector<128x384xf32>, vector<8x384xf32> -> vector<8x384xf32>
    %317 = vector.extract_strided_slice %315 {offsets = [0, 0], sizes = [8, 256], strides = [1, 1]} : vector<8x384xf32> to vector<8x256xf32>
    %318 = vector.extract_strided_slice %316 {offsets = [0, 0], sizes = [8, 256], strides = [1, 1]} : vector<8x384xf32> to vector<8x256xf32>
    %319 = arith.addf %317, %318 : vector<8x256xf32>
    %320 = arith.negf %319 : vector<8x256xf32>
    %321 = math.exp %320 : vector<8x256xf32>
    %cst_73 = arith.constant 1.000000e+00 : f32
    %322 = vector.broadcast %cst_73 : f32 to vector<8x256xf32>
    %323 = arith.addf %322, %321 : vector<8x256xf32>
    %324 = arith.divf %322, %323 : vector<8x256xf32>
    %325 = vector.extract_strided_slice %324 {offsets = [0, 0], sizes = [8, 128], strides = [1, 1]} : vector<8x256xf32> to vector<8x128xf32>
    %326 = vector.extract_strided_slice %324 {offsets = [0, 128], sizes = [8, 128], strides = [1, 1]} : vector<8x256xf32> to vector<8x128xf32>
    %327 = vector.extract_strided_slice %315 {offsets = [0, 256], sizes = [8, 128], strides = [1, 1]} : vector<8x384xf32> to vector<8x128xf32>
    %328 = vector.extract_strided_slice %316 {offsets = [0, 256], sizes = [8, 128], strides = [1, 1]} : vector<8x384xf32> to vector<8x128xf32>
    %329 = vector.broadcast %7 : vector<1x128xf32> to vector<8x128xf32>
    %330 = arith.addf %328, %329 : vector<8x128xf32>
    %331 = arith.mulf %325, %330 : vector<8x128xf32>
    %332 = arith.addf %327, %331 : vector<8x128xf32>
    %333 = math.tanh %332 : vector<8x128xf32>
    %cst_74 = arith.constant 1.000000e+00 : f32
    %334 = vector.broadcast %cst_74 : f32 to vector<8x128xf32>
    %335 = arith.subf %334, %326 : vector<8x128xf32>
    %336 = arith.mulf %335, %333 : vector<8x128xf32>
    %337 = arith.mulf %326, %283 : vector<8x128xf32>
    %338 = arith.addf %336, %337 : vector<8x128xf32>
    %c6_i32 = arith.constant 6 : i32
    %c0_75 = arith.constant 0 : index
    %339 = arith.index_cast %c6_i32 : i32 to index
    %c0_76 = arith.constant 0 : index
    %340 = vector.load %arg1[%c0_75, %339, %c0_76] : memref<8x8x10xf32, #tpu.memory_space<vmem>>, vector<8x1x10xf32>
    %341 = vector.shape_cast %340 : vector<8x1x10xf32> to vector<8x10xf32>
    %cst_77 = arith.constant dense<0.000000e+00> : vector<8x384xf32>
    %342 = tpu.matmul %341, %0, %cst_77 {dimension_numbers = #tpu.dot_dimension_numbers<[1], [0], [0], [1], [0, 0, 1, 1], [], []>} : vector<8x10xf32>, vector<10x384xf32>, vector<8x384xf32> -> vector<8x384xf32>
    %343 = vector.broadcast %2 : vector<1x384xf32> to vector<8x384xf32>
    %344 = arith.addf %342, %343 : vector<8x384xf32>
    %cst_78 = arith.constant dense<0.000000e+00> : vector<8x384xf32>
    %345 = tpu.matmul %312, %1, %cst_78 {dimension_numbers = #tpu.dot_dimension_numbers<[1], [0], [0], [1], [0, 0, 1, 1], [], []>} : vector<8x128xf32>, vector<128x384xf32>, vector<8x384xf32> -> vector<8x384xf32>
    %346 = vector.extract_strided_slice %344 {offsets = [0, 0], sizes = [8, 256], strides = [1, 1]} : vector<8x384xf32> to vector<8x256xf32>
    %347 = vector.extract_strided_slice %345 {offsets = [0, 0], sizes = [8, 256], strides = [1, 1]} : vector<8x384xf32> to vector<8x256xf32>
    %348 = arith.addf %346, %347 : vector<8x256xf32>
    %349 = arith.negf %348 : vector<8x256xf32>
    %350 = math.exp %349 : vector<8x256xf32>
    %cst_79 = arith.constant 1.000000e+00 : f32
    %351 = vector.broadcast %cst_79 : f32 to vector<8x256xf32>
    %352 = arith.addf %351, %350 : vector<8x256xf32>
    %353 = arith.divf %351, %352 : vector<8x256xf32>
    %354 = vector.extract_strided_slice %353 {offsets = [0, 0], sizes = [8, 128], strides = [1, 1]} : vector<8x256xf32> to vector<8x128xf32>
    %355 = vector.extract_strided_slice %353 {offsets = [0, 128], sizes = [8, 128], strides = [1, 1]} : vector<8x256xf32> to vector<8x128xf32>
    %356 = vector.extract_strided_slice %344 {offsets = [0, 256], sizes = [8, 128], strides = [1, 1]} : vector<8x384xf32> to vector<8x128xf32>
    %357 = vector.extract_strided_slice %345 {offsets = [0, 256], sizes = [8, 128], strides = [1, 1]} : vector<8x384xf32> to vector<8x128xf32>
    %358 = vector.broadcast %3 : vector<1x128xf32> to vector<8x128xf32>
    %359 = arith.addf %357, %358 : vector<8x128xf32>
    %360 = arith.mulf %354, %359 : vector<8x128xf32>
    %361 = arith.addf %356, %360 : vector<8x128xf32>
    %362 = math.tanh %361 : vector<8x128xf32>
    %cst_80 = arith.constant 1.000000e+00 : f32
    %363 = vector.broadcast %cst_80 : f32 to vector<8x128xf32>
    %364 = arith.subf %363, %355 : vector<8x128xf32>
    %365 = arith.mulf %364, %362 : vector<8x128xf32>
    %366 = arith.mulf %355, %312 : vector<8x128xf32>
    %367 = arith.addf %365, %366 : vector<8x128xf32>
    %cst_81 = arith.constant dense<0.000000e+00> : vector<8x384xf32>
    %368 = tpu.matmul %367, %4, %cst_81 {dimension_numbers = #tpu.dot_dimension_numbers<[1], [0], [0], [1], [0, 0, 1, 1], [], []>} : vector<8x128xf32>, vector<128x384xf32>, vector<8x384xf32> -> vector<8x384xf32>
    %369 = vector.broadcast %6 : vector<1x384xf32> to vector<8x384xf32>
    %370 = arith.addf %368, %369 : vector<8x384xf32>
    %cst_82 = arith.constant dense<0.000000e+00> : vector<8x384xf32>
    %371 = tpu.matmul %338, %5, %cst_82 {dimension_numbers = #tpu.dot_dimension_numbers<[1], [0], [0], [1], [0, 0, 1, 1], [], []>} : vector<8x128xf32>, vector<128x384xf32>, vector<8x384xf32> -> vector<8x384xf32>
    %372 = vector.extract_strided_slice %370 {offsets = [0, 0], sizes = [8, 256], strides = [1, 1]} : vector<8x384xf32> to vector<8x256xf32>
    %373 = vector.extract_strided_slice %371 {offsets = [0, 0], sizes = [8, 256], strides = [1, 1]} : vector<8x384xf32> to vector<8x256xf32>
    %374 = arith.addf %372, %373 : vector<8x256xf32>
    %375 = arith.negf %374 : vector<8x256xf32>
    %376 = math.exp %375 : vector<8x256xf32>
    %cst_83 = arith.constant 1.000000e+00 : f32
    %377 = vector.broadcast %cst_83 : f32 to vector<8x256xf32>
    %378 = arith.addf %377, %376 : vector<8x256xf32>
    %379 = arith.divf %377, %378 : vector<8x256xf32>
    %380 = vector.extract_strided_slice %379 {offsets = [0, 0], sizes = [8, 128], strides = [1, 1]} : vector<8x256xf32> to vector<8x128xf32>
    %381 = vector.extract_strided_slice %379 {offsets = [0, 128], sizes = [8, 128], strides = [1, 1]} : vector<8x256xf32> to vector<8x128xf32>
    %382 = vector.extract_strided_slice %370 {offsets = [0, 256], sizes = [8, 128], strides = [1, 1]} : vector<8x384xf32> to vector<8x128xf32>
    %383 = vector.extract_strided_slice %371 {offsets = [0, 256], sizes = [8, 128], strides = [1, 1]} : vector<8x384xf32> to vector<8x128xf32>
    %384 = vector.broadcast %7 : vector<1x128xf32> to vector<8x128xf32>
    %385 = arith.addf %383, %384 : vector<8x128xf32>
    %386 = arith.mulf %380, %385 : vector<8x128xf32>
    %387 = arith.addf %382, %386 : vector<8x128xf32>
    %388 = math.tanh %387 : vector<8x128xf32>
    %cst_84 = arith.constant 1.000000e+00 : f32
    %389 = vector.broadcast %cst_84 : f32 to vector<8x128xf32>
    %390 = arith.subf %389, %381 : vector<8x128xf32>
    %391 = arith.mulf %390, %388 : vector<8x128xf32>
    %392 = arith.mulf %381, %338 : vector<8x128xf32>
    %393 = arith.addf %391, %392 : vector<8x128xf32>
    %c7_i32 = arith.constant 7 : i32
    %c0_85 = arith.constant 0 : index
    %394 = arith.index_cast %c7_i32 : i32 to index
    %c0_86 = arith.constant 0 : index
    %395 = vector.load %arg1[%c0_85, %394, %c0_86] : memref<8x8x10xf32, #tpu.memory_space<vmem>>, vector<8x1x10xf32>
    %396 = vector.shape_cast %395 : vector<8x1x10xf32> to vector<8x10xf32>
    %cst_87 = arith.constant dense<0.000000e+00> : vector<8x384xf32>
    %397 = tpu.matmul %396, %0, %cst_87 {dimension_numbers = #tpu.dot_dimension_numbers<[1], [0], [0], [1], [0, 0, 1, 1], [], []>} : vector<8x10xf32>, vector<10x384xf32>, vector<8x384xf32> -> vector<8x384xf32>
    %398 = vector.broadcast %2 : vector<1x384xf32> to vector<8x384xf32>
    %399 = arith.addf %397, %398 : vector<8x384xf32>
    %cst_88 = arith.constant dense<0.000000e+00> : vector<8x384xf32>
    %400 = tpu.matmul %367, %1, %cst_88 {dimension_numbers = #tpu.dot_dimension_numbers<[1], [0], [0], [1], [0, 0, 1, 1], [], []>} : vector<8x128xf32>, vector<128x384xf32>, vector<8x384xf32> -> vector<8x384xf32>
    %401 = vector.extract_strided_slice %399 {offsets = [0, 0], sizes = [8, 256], strides = [1, 1]} : vector<8x384xf32> to vector<8x256xf32>
    %402 = vector.extract_strided_slice %400 {offsets = [0, 0], sizes = [8, 256], strides = [1, 1]} : vector<8x384xf32> to vector<8x256xf32>
    %403 = arith.addf %401, %402 : vector<8x256xf32>
    %404 = arith.negf %403 : vector<8x256xf32>
    %405 = math.exp %404 : vector<8x256xf32>
    %cst_89 = arith.constant 1.000000e+00 : f32
    %406 = vector.broadcast %cst_89 : f32 to vector<8x256xf32>
    %407 = arith.addf %406, %405 : vector<8x256xf32>
    %408 = arith.divf %406, %407 : vector<8x256xf32>
    %409 = vector.extract_strided_slice %408 {offsets = [0, 0], sizes = [8, 128], strides = [1, 1]} : vector<8x256xf32> to vector<8x128xf32>
    %410 = vector.extract_strided_slice %408 {offsets = [0, 128], sizes = [8, 128], strides = [1, 1]} : vector<8x256xf32> to vector<8x128xf32>
    %411 = vector.extract_strided_slice %399 {offsets = [0, 256], sizes = [8, 128], strides = [1, 1]} : vector<8x384xf32> to vector<8x128xf32>
    %412 = vector.extract_strided_slice %400 {offsets = [0, 256], sizes = [8, 128], strides = [1, 1]} : vector<8x384xf32> to vector<8x128xf32>
    %413 = vector.broadcast %3 : vector<1x128xf32> to vector<8x128xf32>
    %414 = arith.addf %412, %413 : vector<8x128xf32>
    %415 = arith.mulf %409, %414 : vector<8x128xf32>
    %416 = arith.addf %411, %415 : vector<8x128xf32>
    %417 = math.tanh %416 : vector<8x128xf32>
    %cst_90 = arith.constant 1.000000e+00 : f32
    %418 = vector.broadcast %cst_90 : f32 to vector<8x128xf32>
    %419 = arith.subf %418, %410 : vector<8x128xf32>
    %420 = arith.mulf %419, %417 : vector<8x128xf32>
    %421 = arith.mulf %410, %367 : vector<8x128xf32>
    %422 = arith.addf %420, %421 : vector<8x128xf32>
    %cst_91 = arith.constant dense<0.000000e+00> : vector<8x384xf32>
    %423 = tpu.matmul %422, %4, %cst_91 {dimension_numbers = #tpu.dot_dimension_numbers<[1], [0], [0], [1], [0, 0, 1, 1], [], []>} : vector<8x128xf32>, vector<128x384xf32>, vector<8x384xf32> -> vector<8x384xf32>
    %424 = vector.broadcast %6 : vector<1x384xf32> to vector<8x384xf32>
    %425 = arith.addf %423, %424 : vector<8x384xf32>
    %cst_92 = arith.constant dense<0.000000e+00> : vector<8x384xf32>
    %426 = tpu.matmul %393, %5, %cst_92 {dimension_numbers = #tpu.dot_dimension_numbers<[1], [0], [0], [1], [0, 0, 1, 1], [], []>} : vector<8x128xf32>, vector<128x384xf32>, vector<8x384xf32> -> vector<8x384xf32>
    %427 = vector.extract_strided_slice %425 {offsets = [0, 0], sizes = [8, 256], strides = [1, 1]} : vector<8x384xf32> to vector<8x256xf32>
    %428 = vector.extract_strided_slice %426 {offsets = [0, 0], sizes = [8, 256], strides = [1, 1]} : vector<8x384xf32> to vector<8x256xf32>
    %429 = arith.addf %427, %428 : vector<8x256xf32>
    %430 = arith.negf %429 : vector<8x256xf32>
    %431 = math.exp %430 : vector<8x256xf32>
    %cst_93 = arith.constant 1.000000e+00 : f32
    %432 = vector.broadcast %cst_93 : f32 to vector<8x256xf32>
    %433 = arith.addf %432, %431 : vector<8x256xf32>
    %434 = arith.divf %432, %433 : vector<8x256xf32>
    %435 = vector.extract_strided_slice %434 {offsets = [0, 0], sizes = [8, 128], strides = [1, 1]} : vector<8x256xf32> to vector<8x128xf32>
    %436 = vector.extract_strided_slice %434 {offsets = [0, 128], sizes = [8, 128], strides = [1, 1]} : vector<8x256xf32> to vector<8x128xf32>
    %437 = vector.extract_strided_slice %425 {offsets = [0, 256], sizes = [8, 128], strides = [1, 1]} : vector<8x384xf32> to vector<8x128xf32>
    %438 = vector.extract_strided_slice %426 {offsets = [0, 256], sizes = [8, 128], strides = [1, 1]} : vector<8x384xf32> to vector<8x128xf32>
    %439 = vector.broadcast %7 : vector<1x128xf32> to vector<8x128xf32>
    %440 = arith.addf %438, %439 : vector<8x128xf32>
    %441 = arith.mulf %435, %440 : vector<8x128xf32>
    %442 = arith.addf %437, %441 : vector<8x128xf32>
    %443 = math.tanh %442 : vector<8x128xf32>
    %cst_94 = arith.constant 1.000000e+00 : f32
    %444 = vector.broadcast %cst_94 : f32 to vector<8x128xf32>
    %445 = arith.subf %444, %436 : vector<8x128xf32>
    %446 = arith.mulf %445, %443 : vector<8x128xf32>
    %447 = arith.mulf %436, %393 : vector<8x128xf32>
    %448 = arith.addf %446, %447 : vector<8x128xf32>
    %c8_i32 = arith.constant 8 : i32
    %c0_95 = arith.constant 0 : index
    %c0_96 = arith.constant 0 : index
    %449 = vector.load %arg10[%c0_95, %c0_96] : memref<8x128xf32, #tpu.memory_space<vmem>>, vector<8x128xf32>
    tpu.vector_store %arg10[%c0_95, %c0_96], %448 {strides = array<i32>} : memref<8x128xf32, #tpu.memory_space<vmem>>, vector<8x128xf32>,
    return
  }
  func.func @transform_0(%arg0: i32) -> (i32, i32, i32) {
    %c0_i32 = arith.constant 0 : i32
    %c0_i32_0 = arith.constant 0 : i32
    %c0_i32_1 = arith.constant 0 : i32
    %c0_i32_2 = arith.constant 0 : i32
    return %c0_i32, %c0_i32_0, %c0_i32_1 : i32, i32, i32
  }
  func.func @transform_1(%arg0: i32) -> (i32, i32) {
    %c0_i32 = arith.constant 0 : i32
    %c0_i32_0 = arith.constant 0 : i32
    %c0_i32_1 = arith.constant 0 : i32
    return %c0_i32, %c0_i32_0 : i32, i32
  }
  func.func @transform_2(%arg0: i32) -> (i32, i32) {
    %c0_i32 = arith.constant 0 : i32
    %c0_i32_0 = arith.constant 0 : i32
    %c0_i32_1 = arith.constant 0 : i32
    return %c0_i32, %c0_i32_0 : i32, i32
  }
  func.func @transform_3(%arg0: i32) -> (i32, i32) {
    %c0_i32 = arith.constant 0 : i32
    %c0_i32_0 = arith.constant 0 : i32
    %c0_i32_1 = arith.constant 0 : i32
    return %c0_i32, %c0_i32_0 : i32, i32
  }
  func.func @transform_4(%arg0: i32) -> (i32, i32) {
    %c0_i32 = arith.constant 0 : i32
    %c0_i32_0 = arith.constant 0 : i32
    %c0_i32_1 = arith.constant 0 : i32
    return %c0_i32, %c0_i32_0 : i32, i32
  }
  func.func @transform_5(%arg0: i32) -> (i32, i32) {
    %c0_i32 = arith.constant 0 : i32
    %c0_i32_0 = arith.constant 0 : i32
    %c0_i32_1 = arith.constant 0 : i32
    return %c0_i32, %c0_i32_0 : i32, i32
  }
  func.func @transform_6(%arg0: i32) -> (i32, i32) {
    %c0_i32 = arith.constant 0 : i32
    %c0_i32_0 = arith.constant 0 : i32
    %c0_i32_1 = arith.constant 0 : i32
    return %c0_i32, %c0_i32_0 : i32, i32
  }
  func.func @transform_7(%arg0: i32) -> (i32, i32) {
    %c0_i32 = arith.constant 0 : i32
    %c0_i32_0 = arith.constant 0 : i32
    %c0_i32_1 = arith.constant 0 : i32
    return %c0_i32, %c0_i32_0 : i32, i32
  }
  func.func @transform_8(%arg0: i32) -> (i32, i32) {
    %c0_i32 = arith.constant 0 : i32
    %c0_i32_0 = arith.constant 0 : i32
    %c0_i32_1 = arith.constant 0 : i32
    return %c0_i32, %c0_i32_0 : i32, i32
  }
  func.func @transform_9(%arg0: i32) -> (i32, i32) {
    %c0_i32 = arith.constant 0 : i32
    %c0_i32_0 = arith.constant 0 : i32
    %c0_i32_1 = arith.constant 0 : i32
    return %c0_i32, %c0_i32_0 : i32, i32
  }
}

</mosaic_0001>

<bundles_post_ra>
// kernel: tpu_custom_call.1
= control target key start
LH: loop header
LB: loop body
LE: loop exit
PB: predicated region body
PF: predicated region fallthrough
CT: control target
= control target key end

     0   :  { %14 = vsyncpa [#allocation3], 0  ;;  %s10198_s0 = inlined_call_operand.hbm [shape: f32[8,8,10], index: 0, kind: input, shape index: {}]   ;;  %s10199_s1 = inlined_call_operand.hbm [shape: f32[10,384], index: 1, kind: input, shape index: {}]   ;;  %s10200_s2 = inlined_call_operand.hbm [shape: f32[128,384], index: 2, kind: input, shape index: {}]   ;;  %s10201_s3 = inlined_call_operand.vmem [shape: f32[1,384], index: 3, kind: input, shape index: {}]   ;;  %s10202_s4 = inlined_call_operand.vmem [shape: f32[1,128], index: 4, kind: input, shape index: {}]   ;;  %s10203_s5 = inlined_call_operand.hbm [shape: f32[128,384], index: 5, kind: input, shape index: {}]   ;;  %s10204_s6 = inlined_call_operand.hbm [shape: f32[128,384], index: 6, kind: input, shape index: {}]   ;;  %s10205_s7 = inlined_call_operand.vmem [shape: f32[1,384], index: 7, kind: input, shape index: {}]   ;;  %s10206_s8 = inlined_call_operand.vmem [shape: f32[1,128], index: 8, kind: input, shape index: {}]   ;;  %s10207_s9 = inlined_call_operand.hbm [shape: f32[8,128], index: 9, kind: output, shape index: {}]  }
   0x1   :  { %15 = vsyncpa [#allocation6], 0 }
   0x2   :  { %16 = vsyncpa [#allocation9], 0 }
   0x3   :  { %17 = vsyncpa [#allocation4], 0  ;;  %s8663_s30 = smov [#allocation5]   ;;  %s8523_s13 = scalar_lea.hbm %s10199_s1, 768 }
   0x4   :  { %s35_s10 = sshll.u32 %s8663_s30, 4  ;;  %p8524_p0 = scmp.ne.s32.totalorder %s10199_s1, %s8523_s13  ;;  %s36_s10 = int_to_ptr.vmem [resolvable:$true] %s35_s10 }
   0x5   :  { %p8527_p1 = scmp.lt.u32.totalorder %s8523_s13, %s10199_s1 }
   0x7   :  { %p8529_p2 = pnand %p8527_p1, %p8524_p0 }
   0x9   :  { %8532 = shalt.err (!%p8529_p2)
}
   0xa   :  { %s8533_s18 = scalar_lea.vmem %s36_s10, 768  ;;  %p8538_p4 = scmp.lt.s32.totalorder %s36_s10, %s36_s10 }
   0xb   :  { %p8534_p3 = scmp.ne.s32.totalorder %s36_s10, %s8533_s18  ;;  %p8539_p5 = scmp.lt.s32.totalorder %s8533_s18, %s8533_s18 }
   0xd   :  { %p8540_p6 = por %p8539_p5, %p8538_p4 }
   0xf   :  { %p8541_p7 = pnand %p8540_p6, %p8534_p3 }
  0x11   :  { %8544 = shalt.err (!%p8541_p7)
}
  0x12   :  { %s8664_s19 = smov 384   ;;  %s8665_s20 = smov 24  }
  0x13   :  { %41 = dma.hbm_to_vmem [thread:$0]  %s10199_s1, 768, %s36_s10, [#allocation6], %s8664_s19, %s8664_s19, %s8665_s20  }
  0x14   :  { %s8666_s23 = smov [#allocation8]   ;;  %s8667_s25 = smov [#allocation2]  }
  0x15   :  { %s63_s24 = sshll.u32 %s8666_s23, 4  ;;  %s23_s26 = sshll.u32 %s8667_s25, 4  ;;  %s64_s24 = int_to_ptr.vmem [resolvable:$true] %s63_s24  ;;  %s24_s26 = int_to_ptr.vmem [resolvable:$true] %s23_s26 }
  0x16   :  { %s8545_s29 = scalar_lea.hbm %s10203_s5, 6144 }
  0x17   :  { %p8546_p8 = scmp.ne.s32.totalorder %s10203_s5, %s8545_s29  ;;  %p8549_p9 = scmp.lt.u32.totalorder %s8545_s29, %s10203_s5 }
  0x19   :  { %p8551_p10 = pnand %p8549_p9, %p8546_p8 }
  0x1b   :  { %8554 = shalt.err (!%p8551_p10)
}
  0x1c   :  { %s8555_s1 = scalar_lea.vmem %s64_s24, 6144  ;;  %p8560_p12 = scmp.lt.s32.totalorder %s64_s24, %s64_s24 }
  0x1d   :  { %p8556_p11 = scmp.ne.s32.totalorder %s64_s24, %s8555_s1  ;;  %p8561_p13 = scmp.lt.s32.totalorder %s8555_s1, %s8555_s1 }
  0x1f   :  { %p8562_p0 = por %p8561_p13, %p8560_p12 }
  0x21   :  { %p8563_p1 = pnand %p8562_p0, %p8556_p11 }
  0x23   :  { %8566 = shalt.err (!%p8563_p1)
}
  0x24   :  { %69 = dma.hbm_to_vmem [thread:$0]  %s10203_s5, 6144, %s64_s24, [#allocation9], %s8664_s19, %s8664_s19, %s8665_s20  }
  0x25   :  { %s8567_s17 = scalar_lea.hbm %s10198_s0, 1024 }
  0x26   :  { %p8568_p2 = scmp.ne.s32.totalorder %s10198_s0, %s8567_s17  ;;  %p8571_p3 = scmp.lt.u32.totalorder %s8567_s17, %s10198_s0 }
  0x28   :  { %p8573_p4 = pnand %p8571_p3, %p8568_p2 }
  0x2a   :  { %8576 = shalt.err (!%p8573_p4)
}
  0x2b   :  { %s8577_s25 = scalar_lea.vmem %s24_s26, 1024  ;;  %p8582_p6 = scmp.lt.s32.totalorder %s24_s26, %s24_s26 }
  0x2c   :  { %p8578_p5 = scmp.ne.s32.totalorder %s24_s26, %s8577_s25  ;;  %p8583_p7 = scmp.lt.s32.totalorder %s8577_s25, %s8577_s25 }
  0x2e   :  { %p8584_p8 = por %p8583_p7, %p8582_p6 }
  0x30   :  { %p8585_p9 = pnand %p8584_p8, %p8578_p5 }
  0x32   :  { %8588 = shalt.err (!%p8585_p9)
}
  0x33   :  { %s8668_s5 = smov 128   ;;  %s8669_s24 = smov 8  }
  0x34   :  { %29 = dma.hbm_to_vmem [thread:$0]  %s10198_s0, 1024, %s24_s26, [#allocation3], %s8668_s5, %s8668_s5, %s8669_s24  }
  0x35   :  { %s8670_s29 = smov [#allocation7]   ;;  %s8671_s11 = smov [#allocation10]  }
  0x36   :  { %s47_s30 = sshll.u32 %s8670_s29, 4  ;;  %s75_s12 = sshll.u32 %s8671_s11, 4  ;;  %s48_s30 = int_to_ptr.vmem [resolvable:$true] %s47_s30  ;;  %s76_s12 = int_to_ptr.vmem [resolvable:$true] %s75_s12 }
  0x37   :  { %s8589_s10 = scalar_lea.hbm %s10200_s2, 6144 }
  0x38   :  { %p8590_p10 = scmp.ne.s32.totalorder %s10200_s2, %s8589_s10  ;;  %p8593_p11 = scmp.lt.u32.totalorder %s8589_s10, %s10200_s2 }
  0x3a   :  { %p8595_p12 = pnand %p8593_p11, %p8590_p10 }
  0x3c   :  { %8598 = shalt.err (!%p8595_p12)
}
  0x3d   :  { %s8599_s0 = scalar_lea.vmem %s48_s30, 6144  ;;  %p8604_p0 = scmp.lt.s32.totalorder %s48_s30, %s48_s30 }
  0x3e   :  { %p8600_p13 = scmp.ne.s32.totalorder %s48_s30, %s8599_s0  ;;  %p8605_p1 = scmp.lt.s32.totalorder %s8599_s0, %s8599_s0 }
  0x40   :  { %p8606_p2 = por %p8605_p1, %p8604_p0 }
  0x42   :  { %p8607_p3 = pnand %p8606_p2, %p8600_p13 }
  0x44   :  { %8610 = shalt.err (!%p8607_p3)
}
  0x45   :  { %53 = dma.hbm_to_vmem [thread:$0]  %s10200_s2, 6144, %s48_s30, [#allocation6], %s8664_s19, %s8664_s19, %s8665_s20  }
  0x46   :  { %s8611_s23 = scalar_lea.hbm %s10204_s6, 6144 }
  0x47   :  { %p8612_p4 = scmp.ne.s32.totalorder %s10204_s6, %s8611_s23  ;;  %p8615_p5 = scmp.lt.u32.totalorder %s8611_s23, %s10204_s6 }
  0x49   :  { %p8617_p6 = pnand %p8615_p5, %p8612_p4 }
  0x4b   :  { %8620 = shalt.err (!%p8617_p6)
}
  0x4c   :  { %s8621_s28 = scalar_lea.vmem %s76_s12, 6144  ;;  %p8626_p8 = scmp.lt.s32.totalorder %s76_s12, %s76_s12 }
  0x4d   :  { %p8622_p7 = scmp.ne.s32.totalorder %s76_s12, %s8621_s28  ;;  %p8627_p9 = scmp.lt.s32.totalorder %s8621_s28, %s8621_s28 }
  0x4f   :  { %p8628_p10 = por %p8627_p9, %p8626_p8 }
  0x51   :  { %p8629_p11 = pnand %p8628_p10, %p8622_p7 }
  0x53   :  { %8632 = shalt.err (!%p8629_p11)
}
  0x54   :  { %81 = dma.hbm_to_vmem [thread:$0]  %s10204_s6, 6144, %s76_s12, [#allocation9], %s8664_s19, %s8664_s19, %s8665_s20  }
  0x55   :  { %8655 = dma.done.wait [#allocation3], 1024  }
  0x56   :  { %8656 = vsyncadd [#allocation3], 4294966272 }
  0x57   :  { %8657 = dma.done.wait [#allocation6], 6912  }
  0x58   :  { %8658 = vsyncadd [#allocation6], 4294960384 }
  0x59   :  { %8659 = dma.done.wait [#allocation9], 12288  }
  0x5a   :  { %8660 = vsyncadd [#allocation9], 4294955008  ;;  %v10208_v0 = vmov 0.0   ;;  %vm311_vm0 = vcmask 1041408   ;;  %v10210_v1 = vmov 0.0|0.0   ;;  %vm8674_vm1 = vmmov 0  }
  0x5b   :  { %385 = vmatprep.mubr.f32.mxu0 %v10208_v0  ;;  %6863 = vmatprep.subr.bf16.mxu1 %v10210_v1  ;;  %vm8675_vm2 = vmmov 1   ;;  %v102_v3 = vld [vmem:[#allocation5 + $0x8] sm:$0xff]  ;;  %v105_v4 = vld [vmem:[#allocation5 + $0x20] sm:$0x3]  ;;  %v104_v7 = vld [vmem:[#allocation5 + $0x18] sm:$0x3] }
  0x5c   :  { %5965 = vmatprep.mubr.msk.f32.mxu1 %vm8674_vm1, %v10208_v0  ;;  %vm8803_vm3 = vmpackc.low %vm311_vm0, %vm8675_vm2  ;;  %v101_v5 = vld [vmem:[#allocation5] sm:$0xff]  ;;  %v8807_v6 = vpack.c.bf16 %v105_v4, %v102_v3  ;;  %v108_v8 = vld [vmem:[#allocation7 + $0x8] sm:$0xff]  ;;  %vm288_vm4 = vcmask 1041409   ;;  %vm291_vm5 = vcmask 1042434   ;;  %vm294_vm6 = vcmask 1043459  }
  0x5d   :  { %v111_v9 = vld [vmem:[#allocation7 + $0x20] sm:$0xff]  ;;  %v8809_v10 = vpack.c.bf16 %v104_v7, %v101_v5  ;;  %v255_v12 = vld [vmem:[#allocation2] sm:$0x1]  ;;  %v256_v13 = vld [vmem:[#allocation2 + $0x8] sm:$0x1]  ;;  %vm297_vm7 = vcmask 1044484  }
  0x5e   :  { %v8811_v11 = vpack.c.bf16 %v111_v9, %v108_v8  ;;  %v257_v14 = vld [vmem:[#allocation2 + $0x10] sm:$0x1]  ;;  %6859 = vmatprep.subr.msk.bf16.mxu0 %vm8803_vm3, %v8807_v6  ;;  %v258_v15 = vld [vmem:[#allocation2 + $0x18] sm:$0x1]  ;;  %v259_v16 = vld [vmem:[#allocation2 + $0x20] sm:$0x1] }
  0x5f   :  { %v260_v17 = vld [vmem:[#allocation2 + $0x28] sm:$0x1]  ;;  %6862 = vmatpush1.bf16.msk.msra.mxu0 %vm8803_vm3, %v8809_v10  ;;  %v261_v18 = vld [vmem:[#allocation2 + $0x30] sm:$0x1]  ;;  %v287_v19 = vrot.slane %v256_v13, 7  ;;  %v290_v20 = vrot.slane %v257_v14, 6 }
  0x60   :  { %6868 = vmatprep.subr.bf16.mxu0 %v8811_v11  ;;  %v262_v21 = vld [vmem:[#allocation2 + $0x38] sm:$0x1]  ;;  %v293_v22 = vrot.slane %v258_v15, 5  ;;  %v296_v23 = vrot.slane %v259_v16, 4  ;;  %v299_v25 = vrot.slane %v260_v17, 3  ;;  %vm300_vm8 = vcmask 1045509  }
  0x61   :  { %v289_v24 = vsel %vm288_vm4, %v287_v19, %v255_v12  ;;  %v302_v27 = vrot.slane %v261_v18, 2  ;;  %v107_v28 = vld [vmem:[#allocation7] sm:$0xff]  ;;  %v110_v29 = vld [vmem:[#allocation7 + $0x18] sm:$0xff]  ;;  %vm303_vm9 = vcmask 1046534   ;;  %v305_v31 = vrot.slane %v262_v21, 1  ;;  %v117_v33 = vld [vmem:[#allocation7 + $0x50] sm:$0xff] }
  0x62   :  { %v292_v26 = vsel %vm291_vm5, %v290_v20, %v289_v24  ;;  %v114_v32 = vld [vmem:[#allocation7 + $0x38] sm:$0xff]  ;;  %vm306_vm10 = vcmask 1047559   ;;  %vm308_vm11 = vcmask 80896   ;;  %v8825_v36 = vpack.c.bf16 %v110_v29, %v107_v28  ;;  %v113_v39 = vld [vmem:[#allocation7 + $0x30] sm:$0xff]  ;;  %v116_v40 = vld [vmem:[#allocation7 + $0x48] sm:$0xff] }
  0x63   :  { %v295_v30 = vsel %vm294_vm6, %v293_v22, %v292_v26  ;;  %v8828_v38 = vpack.c.bf16 %v117_v33, %v114_v32  ;;  %v120_v42 = vld [vmem:[#allocation7 + $0x68] sm:$0xff]  ;;  %v123_v43 = vld [vmem:[#allocation7 + $0x80] sm:$0xff]  ;;  %v106_v45 = vld [vmem:[#allocation5 + $0x28] sm:$0x3]  ;;  %v8833_v46 = vpack.c.bf16 %v116_v40, %v113_v39 }
  0x64   :  { %v298_v34 = vsel %vm297_vm7, %v296_v23, %v295_v30  ;;  %v103_v44 = vld [vmem:[#allocation5 + $0x10] sm:$0xff]  ;;  %v109_v48 = vld [vmem:[#allocation7 + $0x10] sm:$0xff]  ;;  %v8839_v49 = vpack.c.bf16 %v123_v43, %v120_v42  ;;  %v122_v51 = vld [vmem:[#allocation7 + $0x78] sm:$0xff] }
  0x65   :  { %v301_v35 = vsel %vm300_vm8, %v299_v25, %v298_v34  ;;  %v8835_v47 = vpack.c.bf16 %v106_v45, %v103_v44  ;;  %v119_v50 = vld [vmem:[#allocation7 + $0x60] sm:$0xff]  ;;  %v112_v52 = vld [vmem:[#allocation7 + $0x28] sm:$0xff]  ;;  %v126_v53 = vld [vmem:[#allocation7 + $0x98] sm:$0xff] }
  0x66   :  { %v304_v37 = vsel %vm303_vm9, %v302_v27, %v301_v35  ;;  %v129_v54 = vld [vmem:[#allocation7 + $0xb0] sm:$0xff]  ;;  %v8844_v55 = vpack.c.bf16 %v112_v52, %v109_v48  ;;  %v115_v56 = vld [vmem:[#allocation7 + $0x40] sm:$0xff]  ;;  %v118_v57 = vld [vmem:[#allocation7 + $0x58] sm:$0xff]  ;;  %v8848_v58 = vpack.c.bf16 %v122_v51, %v119_v50 }
  0x67   :  { %v307_v41 = vsel %vm306_vm10, %v305_v31, %v304_v37  ;;  %6866 = vmatpush3.bf16.msk.msra.mxu1 %vm8803_vm3, %v8835_v47  ;;  %v8851_v59 = vpack.c.bf16 %v129_v54, %v126_v53  ;;  %v125_v60 = vld [vmem:[#allocation7 + $0x90] sm:$0xff]  ;;  %v128_v61 = vld [vmem:[#allocation7 + $0xa8] sm:$0xff]  ;;  %v135_v63 = vld [vmem:[#allocation7 + $0xe0] sm:$0xff]  ;;  %v8855_v3 = vpack.c.bf16 %v118_v57, %v115_v56 }
  0x68   :  { %5457 = vmatmul.mubr.msk.f32.vlgmr.msra.gmra.mrb[0].mxu0 %vm308_vm11, %v307_v41  ;;  %6899 = vmatprep.subr.bf16.mxu1 %v10210_v1  ;;  %v132_v62 = vld [vmem:[#allocation7 + $0xc8] sm:$0xff]  ;;  %v121_v4 = vld [vmem:[#allocation7 + $0x70] sm:$0xff]  ;;  %v8861_v7 = vpack.c.bf16 %v128_v61, %v125_v60  ;;  %v131_v9 = vld [vmem:[#allocation7 + $0xc0] sm:$0xff] }
  0x69   :  { %6870 = vmatpush1.bf16.msra.mxu0 %v8825_v36  ;;  %526 = vmatprep.mubr.f32.mxu0 %v10208_v0  ;;  %10351 = vst [vmem:[#allocation16_spill] sm:$0xff] %v8851_v59  ;;  %v124_v5 = vld [vmem:[#allocation7 + $0x88] sm:$0xff]  ;;  %v8864_v8 = vpack.c.bf16 %v135_v63, %v132_v62  ;;  %v134_v12 = vld [vmem:[#allocation7 + $0xd8] sm:$0xff]  ;;  %v141_v14 = vld [vmem:[#allocation7 + $0x110] sm:$0xff] }
  0x6a   :  { %6872 = vmatprep.subr.bf16.mxu0 %v8828_v38  ;;  %5966 = vmatmul.mubr.msk.f32.vlgmr.msra.gmra.mrb[0].mxu1 %vm308_vm11, %v307_v41  ;;  %10352 = vst [vmem:[#allocation17_spill] sm:$0xff] %v8861_v7  ;;  %v138_v13 = vld [vmem:[#allocation7 + $0xf8] sm:$0xff]  ;;  %v8867_v15 = vpack.c.bf16 %v124_v5, %v121_v4  ;;  %v127_v16 = vld [vmem:[#allocation7 + $0xa0] sm:$0xff]  ;;  %v8871_v18 = vpack.c.bf16 %v134_v12, %v131_v9  ;;  %v137_v20 = vld [vmem:[#allocation7 + $0xf0] sm:$0xff] }
  0x6b   :  { %6901 = vmatpush3.bf16.msra.mxu1 %v8844_v55  ;;  %6000 = vmatprep.mubr.msk.f32.mxu1 %vm8674_vm1, %v10208_v0  ;;  %10353 = vst [vmem:[#allocation18_spill] sm:$0xff] %v8864_v8  ;;  %v130_v17 = vld [vmem:[#allocation7 + $0xb8] sm:$0xff]  ;;  %v8874_v19 = vpack.c.bf16 %v141_v14, %v138_v13  ;;  %v140_v21 = vld [vmem:[#allocation7 + $0x108] sm:$0xff]  ;;  %v147_v23 = vld [vmem:[#allocation7 + $0x140] sm:$0xff] }
  0x6c   :  { %6902 = vmatprep.subr.bf16.mxu1 %v10210_v1  ;;  %10354 = vst [vmem:[#allocation19_spill] sm:$0xff] %v8867_v15  ;;  %10355 = vst [vmem:[#allocation20_spill] sm:$0xff] %v8871_v18  ;;  %v144_v22 = vld [vmem:[#allocation7 + $0x128] sm:$0xff]  ;;  %v8877_v24 = vpack.c.bf16 %v130_v17, %v127_v16  ;;  %v133_v25 = vld [vmem:[#allocation7 + $0xd0] sm:$0xff]  ;;  %v8881_v27 = vpack.c.bf16 %v140_v21, %v137_v20 }
  0x6d   :  { %6874 = vmatpush1.bf16.msra.mxu0 %v8833_v46  ;;  %10356 = vst [vmem:[#allocation21_spill] sm:$0xff] %v8874_v19  ;;  %v136_v26 = vld [vmem:[#allocation7 + $0xe8] sm:$0xff]  ;;  %v8884_v28 = vpack.c.bf16 %v147_v23, %v144_v22  ;;  %v143_v29 = vld [vmem:[#allocation7 + $0x120] sm:$0xff]  ;;  %v146_v30 = vld [vmem:[#allocation7 + $0x138] sm:$0xff] }
  0x6e   :  { %6876 = vmatprep.subr.bf16.mxu0 %v8839_v49  ;;  %10357 = vst [vmem:[#allocation22_spill] sm:$0xff] %v8877_v24  ;;  %10358 = vst [vmem:[#allocation23_spill] sm:$0xff] %v8881_v27  ;;  %v150_v31 = vld [vmem:[#allocation7 + $0x158] sm:$0xff]  ;;  %v153_v32 = vld [vmem:[#allocation7 + $0x170] sm:$0xff]  ;;  %v8887_v33 = vpack.c.bf16 %v136_v26, %v133_v25  ;;  %v8891_v37 = vpack.c.bf16 %v146_v30, %v143_v29 }
  0x6f   :  { %6904 = vmatpush3.bf16.msra.mxu1 %v8855_v3  ;;  %10359 = vst [vmem:[#allocation24_spill] sm:$0xff] %v8884_v28  ;;  %v139_v34 = vld [vmem:[#allocation7 + $0x100] sm:$0xff]  ;;  %v142_v35 = vld [vmem:[#allocation7 + $0x118] sm:$0xff]  ;;  %v8894_v39 = vpack.c.bf16 %v153_v32, %v150_v31  ;;  %v149_v40 = vld [vmem:[#allocation7 + $0x150] sm:$0xff] }
  0x70   :  { %6905 = vmatprep.subr.bf16.mxu1 %v10210_v1  ;;  %10360 = vst [vmem:[#allocation25_spill] sm:$0xff] %v8887_v33  ;;  %10361 = vst [vmem:[#allocation26_spill] sm:$0xff] %v8891_v37  ;;  %v152_v41 = vld [vmem:[#allocation7 + $0x168] sm:$0xff]  ;;  %v8897_v42 = vpack.c.bf16 %v142_v35, %v139_v34  ;;  %v145_v43 = vld [vmem:[#allocation7 + $0x130] sm:$0xff] }
  0x71   :  { %6878 = vmatpush1.bf16.msra.mxu0 %v8848_v58  ;;  %10362 = vst [vmem:[#allocation27_spill] sm:$0xff] %v8894_v39  ;;  %v148_v44 = vld [vmem:[#allocation7 + $0x148] sm:$0xff]  ;;  %v8901_v45 = vpack.c.bf16 %v152_v41, %v149_v40  ;;  %v151_v50 = vld [vmem:[#allocation7 + $0x160] sm:$0xff]  ;;  %v154_v51 = vld [vmem:[#allocation7 + $0x178] sm:$0xff] }
  0x72   :  { %6880 = vmatprep.subr.bf16.mxu0 %v8851_v59  ;;  %10363 = vst [vmem:[#allocation28_spill] sm:$0xff] %v8897_v42  ;;  %v8905_v48 = vpack.c.bf16 %v148_v44, %v145_v43  ;;  %v8910_v52 = vpack.c.bf16 %v154_v51, %v151_v50  ;;  %v158_v53 = vld [vmem:[#allocation8 + $0x8] sm:$0xff]  ;;  %v161_v54 = vld [vmem:[#allocation8 + $0x20] sm:$0xff]  ;;  %v160_v60 = vld [vmem:[#allocation8 + $0x18] sm:$0xff] }
  0x73   :  { %6907 = vmatpush3.bf16.msra.mxu1 %v8867_v15  ;;  %10364 = vst [vmem:[#allocation29_spill] sm:$0xff] %v8901_v45  ;;  %v8920_v56 = vpack.c.bf16 %v161_v54, %v158_v53  ;;  %v157_v57 = vld [vmem:[#allocation8] sm:$0xff]  ;;  %v159_v61 = vld [vmem:[#allocation8 + $0x10] sm:$0xff]  ;;  %v162_v63 = vld [vmem:[#allocation8 + $0x28] sm:$0xff] }
  0x74   :  { %6908 = vmatprep.subr.bf16.mxu1 %v10210_v1  ;;  %10365 = vst [vmem:[#allocation30_spill] sm:$0xff] %v8905_v48  ;;  %10366 = vst [vmem:[#allocation31_spill] sm:$0xff] %v8910_v52  ;;  %v8922_v62 = vpack.c.bf16 %v160_v60, %v157_v57  ;;  %v8925_v4 = vpack.c.bf16 %v162_v63, %v159_v61  ;;  %v164_v5 = vld [vmem:[#allocation8 + $0x38] sm:$0xff]  ;;  %v167_v9 = vld [vmem:[#allocation8 + $0x50] sm:$0xff] }
  0x75   :  { %6882 = vmatpush1.bf16.msra.mxu0 %v8861_v7  ;;  %10367 = vst [vmem:[#allocation32_spill] sm:$0xff] %v8920_v56  ;;  %v8929_v12 = vpack.c.bf16 %v167_v9, %v164_v5  ;;  %v163_v13 = vld [vmem:[#allocation8 + $0x30] sm:$0xff]  ;;  %v166_v14 = vld [vmem:[#allocation8 + $0x48] sm:$0xff]  ;;  %v165_v16 = vld [vmem:[#allocation8 + $0x40] sm:$0xff] }
  0x76   :  { %6884 = vmatprep.subr.bf16.mxu0 %v8864_v8  ;;  %10368 = vst [vmem:[#allocation33_spill] sm:$0xff] %v8922_v62  ;;  %10369 = vst [vmem:[#allocation34_spill] sm:$0xff] %v8925_v4  ;;  %v8932_v17 = vpack.c.bf16 %v166_v14, %v163_v13  ;;  %v168_v20 = vld [vmem:[#allocation8 + $0x58] sm:$0xff]  ;;  %v170_v22 = vld [vmem:[#allocation8 + $0x68] sm:$0xff] }
  0x77   :  { %6910 = vmatpush3.bf16.msra.mxu1 %v8877_v24  ;;  %10370 = vst [vmem:[#allocation35_spill] sm:$0xff] %v8929_v12  ;;  %v8935_v21 = vpack.c.bf16 %v168_v20, %v165_v16  ;;  %v173_v23 = vld [vmem:[#allocation8 + $0x80] sm:$0xff]  ;;  %v172_v29 = vld [vmem:[#allocation8 + $0x78] sm:$0xff]  ;;  %v171_v30 = vld [vmem:[#allocation8 + $0x70] sm:$0xff] }
  0x78   :  { %6911 = vmatprep.subr.bf16.mxu1 %v10210_v1  ;;  %10371 = vst [vmem:[#allocation36_spill] sm:$0xff] %v8932_v17  ;;  %v8939_v25 = vpack.c.bf16 %v173_v23, %v170_v22  ;;  %v169_v26 = vld [vmem:[#allocation8 + $0x60] sm:$0xff]  ;;  %v174_v32 = vld [vmem:[#allocation8 + $0x88] sm:$0xff]  ;;  %v176_v35 = vld [vmem:[#allocation8 + $0x98] sm:$0xff] }
  0x79   :  { %6886 = vmatpush1.bf16.msra.mxu0 %v8871_v18  ;;  %10372 = vst [vmem:[#allocation37_spill] sm:$0xff] %v8935_v21  ;;  %v8942_v31 = vpack.c.bf16 %v172_v29, %v169_v26  ;;  %v8945_v34 = vpack.c.bf16 %v174_v32, %v171_v30  ;;  %v179_v40 = vld [vmem:[#allocation8 + $0xb0] sm:$0xff]  ;;  %v178_v44 = vld [vmem:[#allocation8 + $0xa8] sm:$0xff]  ;;  %v177_v50 = vld [vmem:[#allocation8 + $0xa0] sm:$0xff] }
  0x7a   :  { %6888 = vmatprep.subr.bf16.mxu0 %v8874_v19  ;;  %10373 = vst [vmem:[#allocation38_spill] sm:$0xff] %v8939_v25  ;;  %v8949_v41 = vpack.c.bf16 %v179_v40, %v176_v35  ;;  %v175_v43 = vld [vmem:[#allocation8 + $0x90] sm:$0xff]  ;;  %v180_v53 = vld [vmem:[#allocation8 + $0xb8] sm:$0xff]  ;;  %v182_v57 = vld [vmem:[#allocation8 + $0xc8] sm:$0xff] }
  0x7b   :  { %6913 = vmatpush3.bf16.msra.mxu1 %v8887_v33  ;;  %10374 = vst [vmem:[#allocation39_spill] sm:$0xff] %v8942_v31  ;;  %10375 = vst [vmem:[#allocation40_spill] sm:$0xff] %v8945_v34  ;;  %v8952_v51 = vpack.c.bf16 %v178_v44, %v175_v43  ;;  %v8955_v54 = vpack.c.bf16 %v180_v53, %v177_v50  ;;  %v185_v60 = vld [vmem:[#allocation8 + $0xe0] sm:$0xff]  ;;  %v184_v5 = vld [vmem:[#allocation8 + $0xd8] sm:$0xff] }
  0x7c   :  { %6914 = vmatprep.subr.bf16.mxu1 %v10210_v1  ;;  %10376 = vst [vmem:[#allocation41_spill] sm:$0xff] %v8949_v41  ;;  %v8959_v61 = vpack.c.bf16 %v185_v60, %v182_v57  ;;  %v181_v63 = vld [vmem:[#allocation8 + $0xc0] sm:$0xff]  ;;  %v183_v9 = vld [vmem:[#allocation8 + $0xd0] sm:$0xff]  ;;  %v186_v14 = vld [vmem:[#allocation8 + $0xe8] sm:$0xff] }
  0x7d   :  { %6890 = vmatpush1.bf16.msra.mxu0 %v8881_v27  ;;  %10377 = vst [vmem:[#allocation42_spill] sm:$0xff] %v8952_v51  ;;  %10378 = vst [vmem:[#allocation43_spill] sm:$0xff] %v8955_v54  ;;  %v8962_v13 = vpack.c.bf16 %v184_v5, %v181_v63  ;;  %v8965_v16 = vpack.c.bf16 %v186_v14, %v183_v9  ;;  %v188_v20 = vld [vmem:[#allocation8 + $0xf8] sm:$0xff]  ;;  %v191_v22 = vld [vmem:[#allocation8 + $0x110] sm:$0xff] }
  0x7e   :  { %6892 = vmatprep.subr.bf16.mxu0 %v8884_v28  ;;  %10379 = vst [vmem:[#allocation44_spill] sm:$0xff] %v8959_v61  ;;  %v8969_v23 = vpack.c.bf16 %v191_v22, %v188_v20  ;;  %v187_v26 = vld [vmem:[#allocation8 + $0xf0] sm:$0xff]  ;;  %v190_v29 = vld [vmem:[#allocation8 + $0x108] sm:$0xff]  ;;  %v189_v30 = vld [vmem:[#allocation8 + $0x100] sm:$0xff] }
  0x7f   :  { %6916 = vmatpush3.bf16.msra.mxu1 %v8897_v42  ;;  %10380 = vst [vmem:[#allocation45_spill] sm:$0xff] %v8962_v13  ;;  %10381 = vst [vmem:[#allocation46_spill] sm:$0xff] %v8965_v16  ;;  %v8972_v32 = vpack.c.bf16 %v190_v29, %v187_v26  ;;  %v192_v35 = vld [vmem:[#allocation8 + $0x118] sm:$0xff]  ;;  %v194_v40 = vld [vmem:[#allocation8 + $0x128] sm:$0xff] }
  0x80   :  { %6917 = vmatprep.subr.bf16.mxu1 %v10210_v1  ;;  %10382 = vst [vmem:[#allocation47_spill] sm:$0xff] %v8969_v23  ;;  %v197_v43 = vld [vmem:[#allocation8 + $0x140] sm:$0xff]  ;;  %v8975_v44 = vpack.c.bf16 %v192_v35, %v189_v30  ;;  %v196_v57 = vld [vmem:[#allocation8 + $0x138] sm:$0xff]  ;;  %v195_v60 = vld [vmem:[#allocation8 + $0x130] sm:$0xff] }
  0x81   :  { %6894 = vmatpush1.bf16.msra.mxu0 %v8891_v37  ;;  %10383 = vst [vmem:[#allocation48_spill] sm:$0xff] %v8972_v32  ;;  %v8977_v50 = vpack.c.bf16 %v197_v43, %v194_v40  ;;  %v193_v53 = vld [vmem:[#allocation8 + $0x120] sm:$0xff]  ;;  %v198_v5 = vld [vmem:[#allocation8 + $0x148] sm:$0xff]  ;;  %v200_v9 = vld [vmem:[#allocation8 + $0x158] sm:$0xff] }
  0x82   :  { %6896 = vmatprep.subr.bf16.mxu0 %v8894_v39  ;;  %10384 = vst [vmem:[#allocation49_spill] sm:$0xff] %v8975_v44  ;;  %v8980_v63 = vpack.c.bf16 %v196_v57, %v193_v53  ;;  %v203_v14 = vld [vmem:[#allocation8 + $0x170] sm:$0xff]  ;;  %v8984_v20 = vpack.c.bf16 %v198_v5, %v195_v60  ;;  %v202_v29 = vld [vmem:[#allocation8 + $0x168] sm:$0xff]  ;;  %v201_v30 = vld [vmem:[#allocation8 + $0x160] sm:$0xff] }
  0x83   :  { %6919 = vmatpush3.bf16.msra.mxu1 %v8905_v48  ;;  %10385 = vst [vmem:[#allocation50_spill] sm:$0xff] %v8977_v50  ;;  %v8986_v22 = vpack.c.bf16 %v203_v14, %v200_v9  ;;  %v199_v26 = vld [vmem:[#allocation8 + $0x150] sm:$0xff]  ;;  %v204_v35 = vld [vmem:[#allocation8 + $0x178] sm:$0xff]  ;;  %v206_v40 = vld [vmem:[#allocation10 + $0x8] sm:$0xff]  ;;  %v264_v14 = vlaneseq }
  0x84   :  { %6920 = vmatprep.subr.bf16.mxu1 %v10210_v1  ;;  %10386 = vst [vmem:[#allocation51_spill] sm:$0xff] %v8980_v63  ;;  %10387 = vst [vmem:[#allocation52_spill] sm:$0xff] %v8984_v20  ;;  %v209_v43 = vld [vmem:[#allocation10 + $0x20] sm:$0xff]  ;;  %v8990_v53 = vpack.c.bf16 %v202_v29, %v199_v26  ;;  %v8994_v57 = vpack.c.bf16 %v204_v35, %v201_v30  ;;  %v155_v30 = vld [vmem:[%s10201_s3] sm:$0x7] }
  0x85   :  { %6898 = vmatpush1.bf16.msra.mxu0 %v8901_v45  ;;  %10388 = vst [vmem:[#allocation53_spill] sm:$0xff] %v8986_v22  ;;  %v8996_v60 = vpack.c.bf16 %v209_v43, %v206_v40  ;;  %v9003_v26 = vshrl.u32 %v264_v14, 7  ;;  %v10658_v2 = vld [vmem:[#allocation16_spill] sm:$0xff] }
  0x86   :  { %6924 = vmatprep.subr.bf16.mxu0 %v8920_v56  ;;  %10389 = vst [vmem:[#allocation54_spill] sm:$0xff] %v8990_v53  ;;  %10390 = vst [vmem:[#allocation55_spill] sm:$0xff] %v8994_v57 }
  0x87   :  { %6922 = vmatpush3.bf16.msra.mxu1 %v8910_v52  ;;  %10391 = vst [vmem:[#allocation56_spill] sm:$0xff] %v8996_v60  ;;  %10392 = vst [vmem:[#allocation57_spill] sm:$0xff] %v9003_v26  ;;  %v10224_v29 = vsub.s32 0, %v9003_v26  ;;  %v10227_v35 = vsub.s32 1, %v9003_v26 }
  0x88   :  { %527 = vmatmul.mubr.f32.vlgmr.msra.gmra.mrb[0].mxu0 %v10208_v0  ;;  %6955 = vmatprep.subr.bf16.mxu1 %v10210_v1 }
  0x89   :  { %711 = vmatprep.mubr.f32.mxu0 %v10208_v0  ;;  %6926 = vmatpush1.bf16.msra.mxu0 %v8922_v62  ;;  %v9012_v40 = vrot.slane %v155_v30, %v10224_v29  ;;  %v10240_v29 = vsub.s32 2, %v9003_v26  ;;  %v212_v26 = vld [vmem:[#allocation10 + $0x38] sm:$0xff] }
  0x8a   :  { %6001 = vmatmul.mubr.f32.vlgmr.msra.gmra.mrb[2].mxu1 %v10208_v0  ;;  %6928 = vmatprep.subr.bf16.mxu0 %v8929_v12 }
  0x8b   :  { %6035 = vmatprep.mubr.msk.f32.mxu1 %vm8674_vm1, %v10208_v0  ;;  %6957 = vmatpush3.bf16.msra.mxu1 %v8925_v4  ;;  %10393 = vst [vmem:[#allocation58_spill] sm:$0xff] %v9012_v40  ;;  %v9016_v0 = vrot.slane %v155_v30, %v10227_v35  ;;  %v9024_v35 = vld [vmem:[%s10202_s4] ss:$0 sm:$0xff] }
  0x8c   :  { %6958 = vmatprep.subr.bf16.mxu1 %v10210_v1  ;;  %10395 = vst [vmem:[#allocation60_spill] sm:$0xff] %v9024_v35 }
  0x8d   :  { %6930 = vmatpush1.bf16.msra.mxu0 %v8932_v17  ;;  %10394 = vst [vmem:[#allocation59_spill] sm:$0xff] %v9016_v0 }
  0x8e   :  { %6932 = vmatprep.subr.bf16.mxu0 %v8939_v25 }
  0x8f   :  { %6960 = vmatpush3.bf16.msra.mxu1 %v8935_v21 }
  0x90   :  { %6961 = vmatprep.subr.bf16.mxu1 %v10210_v1 }
  0x91   :  { %6934 = vmatpush1.bf16.msra.mxu0 %v8942_v31 }
  0x92   :  { %6936 = vmatprep.subr.bf16.mxu0 %v8949_v41 }
  0x93   :  { %6963 = vmatpush3.bf16.msra.mxu1 %v8945_v34 }
  0x94   :  { %6964 = vmatprep.subr.bf16.mxu1 %v10210_v1 }
  0x95   :  { %6938 = vmatpush1.bf16.msra.mxu0 %v8952_v51 }
  0x96   :  { %6940 = vmatprep.subr.bf16.mxu0 %v8959_v61  ;;  %v957_v61 = vld [vmem:[#allocation2 + $0x1] sm:$0x1] }
  0x97   :  { %6966 = vmatpush3.bf16.msra.mxu1 %v8955_v54  ;;  %v242_v54 = vld [vmem:[#allocation10 + $0x128] sm:$0xff] }
  0x98   :  { %6967 = vmatprep.subr.bf16.mxu1 %v10210_v1 }
  0x99   :  { %6942 = vmatpush1.bf16.msra.mxu0 %v8962_v13  ;;  %v959_v13 = vld [vmem:[#allocation2 + $0x11] sm:$0x1] }
  0x9a   :  { %6944 = vmatprep.subr.bf16.mxu0 %v8969_v23 }
  0x9b   :  { %6969 = vmatpush3.bf16.msra.mxu1 %v8965_v16 }
  0x9c   :  { %6970 = vmatprep.subr.bf16.mxu1 %v10210_v1 }
  0x9d   :  { %6946 = vmatpush1.bf16.msra.mxu0 %v8972_v32  ;;  %v210_v32 = vld [vmem:[#allocation10 + $0x28] sm:$0xff] }
  0x9e   :  { %6948 = vmatprep.subr.bf16.mxu0 %v8977_v50 }
  0x9f   :  { %6972 = vmatpush3.bf16.msra.mxu1 %v8975_v44  ;;  %v207_v44 = vld [vmem:[#allocation10 + $0x10] sm:$0xff] }
  0xa0   :  { %6973 = vmatprep.subr.bf16.mxu1 %v10210_v1 }
  0xa1   :  { %6950 = vmatpush1.bf16.msra.mxu0 %v8980_v63 }
  0xa2   :  { %6952 = vmatprep.subr.bf16.mxu0 %v8986_v22 }
  0xa3   :  { %6975 = vmatpush3.bf16.msra.mxu1 %v8984_v20 }
  0xa4   :  { %6976 = vmatprep.subr.bf16.mxu1 %v10210_v1 }
  0xa5   :  { %6954 = vmatpush1.bf16.msra.mxu0 %v8990_v53 }
  0xa6   :  { %6980 = vmatprep.subr.bf16.mxu0 %v8996_v60 }
  0xa7   :  { %6978 = vmatpush3.bf16.msra.mxu1 %v8994_v57 }
  0xa8   :  { %7011 = vmatprep.subr.bf16.mxu1 %v10210_v1 }
 0x13d   :  { %v458_v5 = vpop.f32.mrb[0].mxu1 }
 0x13e   :  { %v5967_v9 = vpop.f32.mrb[1].mxu1 }
 0x15b   :  { %v528_v43 = vpop.f32.mrb[0].mxu0 }
 0x15c   :  { %v8281_v9 = vadd.f32 %v528_v43, %v9012_v40  ;;  %v530_v14 = vpop.f32.mrb[1].mxu0  ;;  %v9028_v43 = vrot.slane %v155_v30, %v10240_v29  ;;  %v208_v40 = vld [vmem:[#allocation10 + $0x18] sm:$0xff]  ;;  %v215_v30 = vld [vmem:[#allocation10 + $0x50] sm:$0xff] }
 0x15d   :  { %v8282_v60 = vadd.f32 %v530_v14, %v9016_v0  ;;  %v599_v57 = vpop.f32.mrb[2].mxu1  ;;  %v205_v14 = vld [vmem:[#allocation10] sm:$0xff] }
 0x15e   :  { %v5460_v1 = vmul.f32 -1.442695, %v8281_v9  ;;  %v6002_v53 = vpop.f32.mrb[3].mxu1  ;;  %10396 = vst [vmem:[#allocation61_spill] sm:$0xff] %v9028_v43  ;;  %v9032_v16 = vpack.c.bf16 %v208_v40, %v205_v14  ;;  %v219_v40 = vld [vmem:[#allocation10 + $0x70] sm:$0xff]  ;;  %v224_v14 = vld [vmem:[#allocation10 + $0x98] sm:$0xff] }
 0x15f   :  { %v5461_v22 = vmul.f32 -1.442695, %v8282_v60  ;;  %v623_v53 = vadd.f32 %v9024_v35, %v599_v57  ;;  %v9034_v57 = vpack.c.bf16 %v210_v32, %v207_v44  ;;  %v217_v32 = vld [vmem:[#allocation10 + $0x60] sm:$0xff]  ;;  %v10402_v44 = vmov 0.0|0.0   ;;  %v958_v35 = vld [vmem:[#allocation2 + $0x9] sm:$0x1] }
 0x160   :  { %8359 = vpow2.f32 %v5460_v1  ;;  %10397 = vst [vmem:[#allocation62_spill] sm:$0xff] %v9032_v16 }
 0x161   :  { %8361 = vpow2.f32 %v5461_v22  ;;  %v459_v22 = vadd.f32 %v458_v5, %v9028_v43  ;;  %10398 = vst [vmem:[#allocation63_spill] sm:$0xff] %v9034_v57  ;;  %v211_v5 = vld [vmem:[#allocation10 + $0x30] sm:$0xff]  ;;  %v221_v43 = vld [vmem:[#allocation10 + $0x80] sm:$0xff] }
 0x16a   :  { %v8360_v20 = vpop.eup %8359 }
 0x16b   :  { %v611_v63 = vadd.f32 1.0, %v8360_v20  ;;  %v8362_v50 = vpop.eup %8361 }
 0x16c   :  { %v612_v1 = vadd.f32 1.0, %v8362_v50 }
 0x16d   :  { %8363 = vrcp.f32 %v611_v63 }
 0x16e   :  { %8365 = vrcp.f32 %v612_v1 }
 0x177   :  { %v8364_v60 = vpop.eup %8363 }
 0x178   :  { %v624_v63 = vmul.f32 %v8364_v60, %v623_v53  ;;  %v8366_v9 = vpop.eup %8365  ;;  %v9038_v53 = vpack.c.bf16 %v215_v30, %v212_v26  ;;  %v214_v60 = vld [vmem:[#allocation10 + $0x48] sm:$0xff]  ;;  %v227_v30 = vld [vmem:[#allocation10 + $0xb0] sm:$0xff] }
 0x179   :  { %v627_v0 = vsub.f32 1.0, %v8366_v9  ;;  %v629_v50 = vmul.f32 0.0, %v8366_v9  ;;  %v222_v9 = vld [vmem:[#allocation10 + $0x88] sm:$0xff] }
 0x17a   :  { %v625_v20 = vadd.f32 %v624_v63, %v459_v22  ;;  %10399 = vst [vmem:[#allocation64_spill] sm:$0xff] %v9038_v53  ;;  %v213_v22 = vld [vmem:[#allocation10 + $0x40] sm:$0xff]  ;;  %v216_v63 = vld [vmem:[#allocation10 + $0x58] sm:$0xff] }
 0x17c   :  { %8367 = vtanh.f32 %v625_v20  ;;  %v218_v20 = vld [vmem:[#allocation10 + $0x68] sm:$0xff] }
 0x17d   :  { %v9050_v26 = vpack.c.bf16 %v221_v43, %v218_v20  ;;  %v223_v43 = vld [vmem:[#allocation10 + $0x90] sm:$0xff]  ;;  %v225_v20 = vld [vmem:[#allocation10 + $0xa0] sm:$0xff] }
 0x17f   :  { %10403 = vst [vmem:[#allocation67_spill] sm:$0xff] %v9050_v26 }
 0x186   :  { %v8368_v23 = vpop.eup %8367 }
 0x187   :  { %v628_v29 = vmul.f32 %v8368_v23, %v627_v0  ;;  %v9044_v0 = vpack.c.bf16 %v214_v60, %v211_v5  ;;  %v9046_v23 = vpack.c.bf16 %v216_v63, %v213_v22  ;;  %v9059_v60 = vpack.c.bf16 %v222_v9, %v219_v40  ;;  %v226_v63 = vld [vmem:[#allocation10 + $0xa8] sm:$0xff]  ;;  %v229_v40 = vld [vmem:[#allocation10 + $0xc0] sm:$0xff] }
 0x188   :  { %v9063_v22 = vpack.c.bf16 %v227_v30, %v224_v14  ;;  %v232_v14 = vld [vmem:[#allocation10 + $0xd8] sm:$0xff]  ;;  %v231_v30 = vld [vmem:[#allocation10 + $0xd0] sm:$0xff] }
 0x189   :  { %v9036_v1 = vadd.f32 %v629_v50, %v628_v29  ;;  %10400 = vst [vmem:[#allocation65_spill] sm:$0xff] %v9044_v0  ;;  %10401 = vst [vmem:[#allocation66_spill] sm:$0xff] %v9046_v23  ;;  %v220_v29 = vld [vmem:[#allocation10 + $0x78] sm:$0xff]  ;;  %v10404_v50 = vmov 0.0  }
 0x18a   :  { %v9057_v5 = vpack.c.bf16 %v220_v29, %v217_v32  ;;  %10406 = vst [vmem:[#allocation69_spill] sm:$0xff] %v9059_v60  ;;  %10407 = vst [vmem:[#allocation70_spill] sm:$0xff] %v9063_v22  ;;  %v9067_v32 = vpack.c.bf16 %v226_v63, %v223_v43  ;;  %v235_v63 = vld [vmem:[#allocation10 + $0xf0] sm:$0xff] }
 0x18b   :  { %712 = vmatmul.mubr.f32.vlgmr.msra.gmra.mrb[2].mxu0 %v9036_v1  ;;  %6036 = vmatmul.mubr.f32.vlgmr.msra.gmra.mrb[4].mxu1 %v9036_v1 }
 0x18c   :  { %6982 = vmatpush1.bf16.msra.mxu0 %v9032_v16  ;;  %7013 = vmatpush3.bf16.msra.mxu1 %v9034_v57  ;;  %10405 = vst [vmem:[#allocation68_spill] sm:$0xff] %v9057_v5  ;;  %v230_v57 = vld [vmem:[#allocation10 + $0xc8] sm:$0xff]  ;;  %v233_v16 = vld [vmem:[#allocation10 + $0xe0] sm:$0xff]  ;;  %10408 = vst [vmem:[#allocation71_spill] sm:$0xff] %v9067_v32 }
 0x18d   :  { %6984 = vmatprep.subr.bf16.mxu0 %v9038_v53  ;;  %7014 = vmatprep.subr.bf16.mxu1 %v10402_v44  ;;  %v228_v53 = vld [vmem:[#allocation10 + $0xb8] sm:$0xff]  ;;  %v9073_v9 = vpack.c.bf16 %v233_v16, %v230_v57  ;;  %v237_v57 = vld [vmem:[#allocation10 + $0x100] sm:$0xff] }
 0x18e   :  { %852 = vmatprep.mubr.f32.mxu0 %v10404_v50  ;;  %6070 = vmatprep.mubr.msk.f32.mxu1 %vm8674_vm1, %v10404_v50  ;;  %v9069_v29 = vpack.c.bf16 %v228_v53, %v225_v20  ;;  %v9077_v53 = vpack.c.bf16 %v232_v14, %v229_v40  ;;  %v238_v20 = vld [vmem:[#allocation10 + $0x108] sm:$0xff]  ;;  %v241_v14 = vld [vmem:[#allocation10 + $0x120] sm:$0xff] }
 0x18f   :  { %10410 = vst [vmem:[#allocation73_spill] sm:$0xff] %v9073_v9 }
 0x190   :  { %6986 = vmatpush1.bf16.msra.mxu0 %v9044_v0  ;;  %7016 = vmatpush3.bf16.msra.mxu1 %v9046_v23  ;;  %10409 = vst [vmem:[#allocation72_spill] sm:$0xff] %v9069_v29  ;;  %v236_v23 = vld [vmem:[#allocation10 + $0xf8] sm:$0xff]  ;;  %v239_v0 = vld [vmem:[#allocation10 + $0x110] sm:$0xff]  ;;  %10411 = vst [vmem:[#allocation74_spill] sm:$0xff] %v9077_v53 }
 0x191   :  { %6988 = vmatprep.subr.bf16.mxu0 %v9050_v26  ;;  %7017 = vmatprep.subr.bf16.mxu1 %v10402_v44  ;;  %v234_v26 = vld [vmem:[#allocation10 + $0xe8] sm:$0xff]  ;;  %v9083_v16 = vpack.c.bf16 %v239_v0, %v236_v23  ;;  %v244_v23 = vld [vmem:[#allocation10 + $0x138] sm:$0xff] }
 0x192   :  { %v9079_v43 = vpack.c.bf16 %v234_v26, %v231_v30  ;;  %v9088_v26 = vpack.c.bf16 %v238_v20, %v235_v63  ;;  %v961_v30 = vld [vmem:[#allocation2 + $0x21] sm:$0x1]  ;;  %v962_v63 = vld [vmem:[#allocation2 + $0x29] sm:$0x1] }
 0x193   :  { %10413 = vst [vmem:[#allocation76_spill] sm:$0xff] %v9083_v16  ;;  %v979_v20 = vrot.slane %v961_v30, 4  ;;  %v252_v30 = vld [vmem:[#allocation10 + $0x178] sm:$0xff] }
 0x194   :  { %6990 = vmatpush1.bf16.msra.mxu0 %v9057_v5  ;;  %7019 = vmatpush3.bf16.msra.mxu1 %v9059_v60  ;;  %v973_v5 = vrot.slane %v958_v35, 7  ;;  %10412 = vst [vmem:[#allocation75_spill] sm:$0xff] %v9079_v43  ;;  %v960_v35 = vld [vmem:[#allocation2 + $0x19] sm:$0x1]  ;;  %v975_v60 = vrot.slane %v959_v13, 6  ;;  %10414 = vst [vmem:[#allocation77_spill] sm:$0xff] %v9088_v26 }
 0x195   :  { %6992 = vmatprep.subr.bf16.mxu0 %v9063_v22  ;;  %7020 = vmatprep.subr.bf16.mxu1 %v10402_v44  ;;  %v240_v22 = vld [vmem:[#allocation10 + $0x118] sm:$0xff]  ;;  %v977_v0 = vrot.slane %v960_v35, 5  ;;  %v247_v35 = vld [vmem:[#allocation10 + $0x150] sm:$0xff] }
 0x196   :  { %v9090_v40 = vpack.c.bf16 %v240_v22, %v237_v57  ;;  %v9099_v22 = vpack.c.bf16 %v244_v23, %v241_v14 }
 0x198   :  { %6994 = vmatpush1.bf16.msra.mxu0 %v9067_v32  ;;  %7022 = vmatpush3.bf16.msra.mxu1 %v9069_v29  ;;  %v245_v32 = vld [vmem:[#allocation10 + $0x140] sm:$0xff]  ;;  %v974_v29 = vsel %vm288_vm4, %v973_v5, %v957_v61  ;;  %10415 = vst [vmem:[#allocation78_spill] sm:$0xff] %v9090_v40  ;;  %v246_v61 = vld [vmem:[#allocation10 + $0x148] sm:$0xff] }
 0x199   :  { %6996 = vmatprep.subr.bf16.mxu0 %v9073_v9  ;;  %7023 = vmatprep.subr.bf16.mxu1 %v10402_v44  ;;  %v9094_v13 = vpack.c.bf16 %v245_v32, %v242_v54  ;;  %v243_v9 = vld [vmem:[#allocation10 + $0x130] sm:$0xff]  ;;  %v976_v5 = vsel %vm291_vm5, %v975_v60, %v974_v29  ;;  %v250_v32 = vld [vmem:[#allocation10 + $0x168] sm:$0xff]  ;;  %v249_v29 = vld [vmem:[#allocation10 + $0x160] sm:$0xff] }
 0x19a   :  { %v9101_v57 = vpack.c.bf16 %v246_v61, %v243_v9  ;;  %v978_v54 = vsel %vm294_vm6, %v977_v0, %v976_v5  ;;  %v9111_v9 = vpack.c.bf16 %v250_v32, %v247_v35  ;;  %v9113_v14 = vpack.c.bf16 %v252_v30, %v249_v29  ;;  %v10418_v5 = vld [vmem:[#allocation45_spill] sm:$0xff]  ;;  %v10421_v35 = vld [vmem:[#allocation48_spill] sm:$0xff]  ;;  %v10423_v32 = vld [vmem:[#allocation50_spill] sm:$0xff] }
 0x19b   :  { %v10424_v29 = vld [vmem:[#allocation51_spill] sm:$0xff]  ;;  %v10425_v30 = vld [vmem:[#allocation52_spill] sm:$0xff] }
 0x19c   :  { %6998 = vmatpush1.bf16.msra.mxu0 %v9077_v53  ;;  %7025 = vmatpush3.bf16.msra.mxu1 %v9079_v43  ;;  %v248_v53 = vld [vmem:[#allocation10 + $0x158] sm:$0xff]  ;;  %v251_v43 = vld [vmem:[#allocation10 + $0x170] sm:$0xff] }
 0x19d   :  { %7000 = vmatprep.subr.bf16.mxu0 %v9083_v16  ;;  %7026 = vmatprep.subr.bf16.mxu1 %v10402_v44  ;;  %v9106_v60 = vpack.c.bf16 %v251_v43, %v248_v53  ;;  %v963_v16 = vld [vmem:[#allocation2 + $0x31] sm:$0x1]  ;;  %v964_v53 = vld [vmem:[#allocation2 + $0x39] sm:$0x1] }
 0x19e   :  { %v983_v43 = vrot.slane %v963_v16, 2  ;;  %v985_v23 = vrot.slane %v964_v53, 1  ;;  %v10426_v53 = vld [vmem:[#allocation53_spill] sm:$0xff] }
 0x1a0   :  { %7002 = vmatpush1.bf16.msra.mxu0 %v9088_v26  ;;  %7028 = vmatpush3.bf16.msra.mxu1 %v9090_v40  ;;  %v981_v26 = vrot.slane %v962_v63, 3  ;;  %v980_v40 = vsel %vm297_vm7, %v979_v20, %v978_v54  ;;  %v10419_v63 = vld [vmem:[#allocation46_spill] sm:$0xff]  ;;  %v10420_v20 = vld [vmem:[#allocation47_spill] sm:$0xff]  ;;  %v10422_v54 = vld [vmem:[#allocation49_spill] sm:$0xff] }
 0x1a1   :  { %7004 = vmatprep.subr.bf16.mxu0 %v9094_v13  ;;  %7029 = vmatprep.subr.bf16.mxu1 %v10402_v44 }
 0x1a2   :  { %v982_v0 = vsel %vm300_vm8, %v981_v26, %v980_v40  ;;  %v10416_v26 = vld [vmem:[#allocation43_spill] sm:$0xff]  ;;  %v10417_v40 = vld [vmem:[#allocation44_spill] sm:$0xff] }
 0x1a3   :  { %v984_v61 = vsel %vm303_vm9, %v983_v43, %v982_v0  ;;  %v10427_v43 = vld [vmem:[#allocation54_spill] sm:$0xff]  ;;  %v10428_v0 = vld [vmem:[#allocation55_spill] sm:$0xff] }
 0x1a4   :  { %7006 = vmatpush1.bf16.msra.mxu0 %v9099_v22  ;;  %7031 = vmatpush3.bf16.msra.mxu1 %v9101_v57  ;;  %v986_v16 = vsel %vm306_vm10, %v985_v23, %v984_v61  ;;  %v10429_v23 = vld [vmem:[#allocation56_spill] sm:$0xff] }
 0x1a5   :  { %7008 = vmatprep.subr.bf16.mxu0 %v9106_v60  ;;  %7032 = vmatprep.subr.bf16.mxu1 %v10402_v44 }
 0x1a8   :  { %7010 = vmatpush1.bf16.msra.mxu0 %v9111_v9  ;;  %7034 = vmatpush3.bf16.msra.mxu1 %v9113_v14 }
 0x1a9   :  { %7037 = vmatprep.subr.msk.bf16.mxu0 %vm8803_vm3, %v8807_v6  ;;  %7041 = vmatprep.subr.bf16.mxu1 %v10402_v44 }
 0x1ab   :  { %853 = vmatmul.mubr.f32.vlgmr.msra.gmra.mrb[2].mxu0 %v10404_v50  ;;  %6071 = vmatmul.mubr.f32.vlgmr.msra.gmra.mrb[6].mxu1 %v10404_v50 }
 0x1ac   :  { %7040 = vmatpush1.bf16.msk.msra.mxu0 %vm8803_vm3, %v8809_v10  ;;  %7044 = vmatpush3.bf16.msk.msra.mxu1 %vm8803_vm3, %v8835_v47 }
 0x1ad   :  { %1053 = vmatprep.mubr.f32.mxu0 %v10404_v50  ;;  %6077 = vmatprep.mubr.msk.f32.mxu1 %vm8674_vm1, %v10404_v50 }
 0x1ae   :  { %7046 = vmatprep.subr.bf16.mxu0 %v8811_v11  ;;  %7077 = vmatprep.subr.bf16.mxu1 %v10402_v44 }
 0x1af   :  { %5468 = vmatmul.mubr.msk.f32.vlgmr.msra.gmra.mrb[4].mxu0 %vm308_vm11, %v986_v16  ;;  %6078 = vmatmul.mubr.msk.f32.vlgmr.msra.gmra.mrb[8].mxu1 %vm308_vm11, %v986_v16 }
 0x1b0   :  { %7048 = vmatpush1.bf16.msra.mxu0 %v8825_v36  ;;  %7079 = vmatpush3.bf16.msra.mxu1 %v8844_v55 }
 0x1b1   :  { %7050 = vmatprep.subr.bf16.mxu0 %v8828_v38  ;;  %7080 = vmatprep.subr.bf16.mxu1 %v10402_v44 }
 0x1b2   :  { %1194 = vmatprep.mubr.f32.mxu0 %v10404_v50  ;;  %6112 = vmatprep.mubr.msk.f32.mxu1 %vm8674_vm1, %v10404_v50 }
 0x1b4   :  { %7052 = vmatpush1.bf16.msra.mxu0 %v8833_v46  ;;  %7082 = vmatpush3.bf16.msra.mxu1 %v8855_v3 }
 0x1b5   :  { %7054 = vmatprep.subr.bf16.mxu0 %v8839_v49  ;;  %7083 = vmatprep.subr.bf16.mxu1 %v10402_v44 }
 0x1b8   :  { %7056 = vmatpush1.bf16.msra.mxu0 %v8848_v58  ;;  %7085 = vmatpush3.bf16.msra.mxu1 %v8867_v15 }
 0x1b9   :  { %7058 = vmatprep.subr.bf16.mxu0 %v8851_v59  ;;  %7086 = vmatprep.subr.bf16.mxu1 %v10402_v44 }
 0x1bc   :  { %7060 = vmatpush1.bf16.msra.mxu0 %v8861_v7  ;;  %7088 = vmatpush3.bf16.msra.mxu1 %v8877_v24 }
 0x1bd   :  { %7062 = vmatprep.subr.bf16.mxu0 %v8864_v8  ;;  %7089 = vmatprep.subr.bf16.mxu1 %v10402_v44 }
 0x1c0   :  { %7064 = vmatpush1.bf16.msra.mxu0 %v8871_v18  ;;  %7091 = vmatpush3.bf16.msra.mxu1 %v8887_v33 }
 0x1c1   :  { %7066 = vmatprep.subr.bf16.mxu0 %v8874_v19  ;;  %7092 = vmatprep.subr.bf16.mxu1 %v10402_v44 }
 0x1c4   :  { %7068 = vmatpush1.bf16.msra.mxu0 %v8881_v27  ;;  %7094 = vmatpush3.bf16.msra.mxu1 %v8897_v42 }
 0x1c5   :  { %7070 = vmatprep.subr.bf16.mxu0 %v8884_v28  ;;  %7095 = vmatprep.subr.bf16.mxu1 %v10402_v44 }
 0x1c8   :  { %7072 = vmatpush1.bf16.msra.mxu0 %v8891_v37  ;;  %7097 = vmatpush3.bf16.msra.mxu1 %v8905_v48 }
 0x1c9   :  { %7074 = vmatprep.subr.bf16.mxu0 %v8894_v39  ;;  %7098 = vmatprep.subr.bf16.mxu1 %v10402_v44 }
 0x1cc   :  { %7076 = vmatpush1.bf16.msra.mxu0 %v8901_v45  ;;  %7100 = vmatpush3.bf16.msra.mxu1 %v8910_v52 }
 0x1cd   :  { %7102 = vmatprep.subr.bf16.mxu0 %v8920_v56  ;;  %7133 = vmatprep.subr.bf16.mxu1 %v10402_v44 }
 0x1cf   :  { %1195 = vmatmul.mubr.f32.vlgmr.msra.gmra.mrb[4].mxu0 %v9036_v1  ;;  %6113 = vmatmul.mubr.f32.vlgmr.msra.gmra.mrb[10].mxu1 %v9036_v1 }
 0x1d0   :  { %7104 = vmatpush1.bf16.msra.mxu0 %v8922_v62  ;;  %7135 = vmatpush3.bf16.msra.mxu1 %v8925_v4 }
 0x1d1   :  { %7106 = vmatprep.subr.bf16.mxu0 %v8929_v12  ;;  %7136 = vmatprep.subr.bf16.mxu1 %v10402_v44 }
 0x1d2   :  { %1357 = vmatprep.mubr.f32.mxu0 %v10404_v50  ;;  %6147 = vmatprep.mubr.msk.f32.mxu1 %vm8674_vm1, %v10404_v50 }
 0x1d4   :  { %7108 = vmatpush1.bf16.msra.mxu0 %v8932_v17  ;;  %7138 = vmatpush3.bf16.msra.mxu1 %v8935_v21 }
 0x1d5   :  { %7110 = vmatprep.subr.bf16.mxu0 %v8939_v25  ;;  %7139 = vmatprep.subr.bf16.mxu1 %v10402_v44 }
 0x1d8   :  { %7112 = vmatpush1.bf16.msra.mxu0 %v8942_v31  ;;  %7141 = vmatpush3.bf16.msra.mxu1 %v8945_v34 }
 0x1d9   :  { %7114 = vmatprep.subr.bf16.mxu0 %v8949_v41  ;;  %7142 = vmatprep.subr.bf16.mxu1 %v10402_v44 }
 0x1dc   :  { %7116 = vmatpush1.bf16.msra.mxu0 %v8952_v51  ;;  %7144 = vmatpush3.bf16.msra.mxu1 %v10416_v26 }
 0x1dd   :  { %7118 = vmatprep.subr.bf16.mxu0 %v10417_v40  ;;  %7145 = vmatprep.subr.bf16.mxu1 %v10402_v44 }
 0x1e0   :  { %7120 = vmatpush1.bf16.msra.mxu0 %v10418_v5  ;;  %7147 = vmatpush3.bf16.msra.mxu1 %v10419_v63 }
 0x1e1   :  { %7122 = vmatprep.subr.bf16.mxu0 %v10420_v20  ;;  %7148 = vmatprep.subr.bf16.mxu1 %v10402_v44 }
 0x1e4   :  { %7124 = vmatpush1.bf16.msra.mxu0 %v10421_v35  ;;  %7150 = vmatpush3.bf16.msra.mxu1 %v10422_v54 }
 0x1e5   :  { %7126 = vmatprep.subr.bf16.mxu0 %v10423_v32  ;;  %7151 = vmatprep.subr.bf16.mxu1 %v10402_v44  ;;  %v10430_v32 = vld [vmem:[#allocation57_spill] sm:$0xff] }
 0x1e6   :  { %v10433_v35 = vsub.s32 1, %v10430_v32 }
 0x1e8   :  { %7128 = vmatpush1.bf16.msra.mxu0 %v10424_v29  ;;  %7153 = vmatpush3.bf16.msra.mxu1 %v10425_v30  ;;  %v253_v29 = vld [vmem:[%s10205_s7] sm:$0x7]  ;;  %v10431_v30 = vsub.s32 0, %v10430_v32 }
 0x1e9   :  { %7130 = vmatprep.subr.bf16.mxu0 %v10426_v53  ;;  %7154 = vmatprep.subr.bf16.mxu1 %v10402_v44 }
 0x1ea   :  { %v9218_v54 = vrot.slane %v253_v29, %v10431_v30 }
 0x1ec   :  { %7132 = vmatpush1.bf16.msra.mxu0 %v10427_v43  ;;  %7156 = vmatpush3.bf16.msra.mxu1 %v10428_v0  ;;  %10432 = vst [vmem:[#allocation57_spill] sm:$0xff] %v9218_v54  ;;  %v9222_v43 = vrot.slane %v253_v29, %v10433_v35  ;;  %v9229_v35 = vld [vmem:[%s10206_s8] ss:$0 sm:$0xff] }
 0x1ed   :  { %7158 = vmatprep.subr.bf16.mxu0 %v10429_v23  ;;  %7189 = vmatprep.subr.bf16.mxu1 %v10402_v44  ;;  %10435 = vst [vmem:[#allocation80_spill] sm:$0xff] %v9229_v35 }
 0x1ee   :  { %10434 = vst [vmem:[#allocation79_spill] sm:$0xff] %v9222_v43 }
 0x25e   :  { %v784_v61 = vpop.f32.mrb[4].mxu1 }
 0x25f   :  { %v6037_v16 = vpop.f32.mrb[5].mxu1 }
 0x27e   :  { %v854_v53 = vpop.f32.mrb[2].mxu0  ;;  %v925_v0 = vpop.f32.mrb[6].mxu1 }
 0x27f   :  { %v8283_v23 = vadd.f32 %v854_v53, %v9218_v54  ;;  %v856_v20 = vpop.f32.mrb[3].mxu0  ;;  %v6072_v63 = vpop.f32.mrb[7].mxu1  ;;  %v10436_v53 = vsub.s32 2, %v10430_v32 }
 0x280   :  { %v8284_v16 = vadd.f32 %v856_v20, %v9222_v43  ;;  %v949_v20 = vadd.f32 %v9229_v35, %v925_v0  ;;  %v10437_v43 = vld [vmem:[#allocation58_spill] sm:$0xff] }
 0x281   :  { %v5463_v5 = vmul.f32 -1.442695, %v8283_v23  ;;  %v9233_v63 = vrot.slane %v253_v29, %v10436_v53  ;;  %v10438_v29 = vld [vmem:[#allocation59_spill] sm:$0xff] }
 0x282   :  { %v1126_v40 = vpop.f32.mrb[8].mxu1  ;;  %v5464_v51 = vmul.f32 -1.442695, %v8284_v16 }
 0x283   :  { %8369 = vpow2.f32 %v5463_v5  ;;  %v6079_v26 = vpop.f32.mrb[9].mxu1 }
 0x284   :  { %8371 = vpow2.f32 %v5464_v51  ;;  %v785_v26 = vadd.f32 %v784_v61, %v9233_v63 }
 0x28d   :  { %v8370_v30 = vpop.eup %8369 }
 0x28e   :  { %v937_v41 = vadd.f32 1.0, %v8370_v30  ;;  %v8372_v34 = vpop.eup %8371 }
 0x28f   :  { %v938_v23 = vadd.f32 1.0, %v8372_v34 }
 0x290   :  { %8373 = vrcp.f32 %v937_v41 }
 0x291   :  { %8375 = vrcp.f32 %v938_v23 }
 0x29a   :  { %v8374_v5 = vpop.eup %8373 }
 0x29b   :  { %v950_v51 = vmul.f32 %v8374_v5, %v949_v20  ;;  %v8376_v21 = vpop.eup %8375 }
 0x29c   :  { %v953_v34 = vsub.f32 1.0, %v8376_v21  ;;  %v955_v61 = vmul.f32 0.0, %v8376_v21 }
 0x29d   :  { %v951_v16 = vadd.f32 %v950_v51, %v785_v26 }
 0x29f   :  { %8377 = vtanh.f32 %v951_v16  ;;  %v10439_v16 = vld [vmem:[#allocation60_spill] sm:$0xff] }
 0x2a2   :  { %v1196_v41 = vpop.f32.mrb[4].mxu0  ;;  %v1267_v30 = vpop.f32.mrb[10].mxu1 }
 0x2a3   :  { %v8285_v54 = vadd.f32 %v1196_v41, %v10437_v43  ;;  %v1198_v31 = vpop.f32.mrb[5].mxu0  ;;  %v6114_v25 = vpop.f32.mrb[11].mxu1 }
 0x2a4   :  { %v8286_v53 = vadd.f32 %v1198_v31, %v10438_v29  ;;  %v1285_v25 = vadd.f32 %v10439_v16, %v1267_v30  ;;  %v10441_v30 = vld [vmem:[#allocation62_spill] sm:$0xff] }
 0x2a5   :  { %v5471_v32 = vmul.f32 -1.442695, %v8285_v54  ;;  %v10440_v54 = vld [vmem:[#allocation61_spill] sm:$0xff] }
 0x2a6   :  { %v5472_v35 = vmul.f32 -1.442695, %v8286_v53  ;;  %v1127_v43 = vadd.f32 %v1126_v40, %v10440_v54  ;;  %v10443_v40 = vld [vmem:[#allocation64_spill] sm:$0xff] }
 0x2a7   :  { %8379 = vpow2.f32 %v5471_v32 }
 0x2a8   :  { %8381 = vpow2.f32 %v5472_v35 }
 0x2a9   :  { %v8378_v0 = vpop.eup %8377 }
 0x2aa   :  { %v954_v17 = vmul.f32 %v8378_v0, %v953_v34 }
 0x2ac   :  { %v9239_v23 = vadd.f32 %v955_v61, %v954_v17  ;;  %v10442_v61 = vld [vmem:[#allocation63_spill] sm:$0xff] }
 0x2b1   :  { %v8380_v20 = vpop.eup %8379 }
 0x2b2   :  { %v1279_v5 = vadd.f32 1.0, %v8380_v20  ;;  %v8382_v26 = vpop.eup %8381  ;;  %v10446_v20 = vld [vmem:[#allocation67_spill] sm:$0xff] }
 0x2b3   :  { %v1280_v51 = vadd.f32 1.0, %v8382_v26  ;;  %v10447_v26 = vld [vmem:[#allocation68_spill] sm:$0xff] }
 0x2b4   :  { %8383 = vrcp.f32 %v1279_v5  ;;  %v1598_v5 = vld [vmem:[#allocation2 + $0xa] sm:$0x1] }
 0x2b5   :  { %8385 = vrcp.f32 %v1280_v51  ;;  %v10448_v51 = vld [vmem:[#allocation69_spill] sm:$0xff] }
 0x2be   :  { %v8384_v41 = vpop.eup %8383 }
 0x2bf   :  { %v1286_v31 = vmul.f32 %v8384_v41, %v1285_v25  ;;  %v8386_v53 = vpop.eup %8385  ;;  %v10449_v25 = vld [vmem:[#allocation70_spill] sm:$0xff]  ;;  %v1599_v41 = vld [vmem:[#allocation2 + $0x12] sm:$0x1] }
 0x2c0   :  { %v1289_v34 = vsub.f32 1.0, %v8386_v53  ;;  %v1291_v35 = vmul.f32 %v8386_v53, %v9036_v1  ;;  %v10444_v1 = vld [vmem:[#allocation65_spill] sm:$0xff]  ;;  %v10450_v53 = vld [vmem:[#allocation71_spill] sm:$0xff] }
 0x2c1   :  { %v1287_v32 = vadd.f32 %v1286_v31, %v1127_v43  ;;  %v10445_v43 = vld [vmem:[#allocation66_spill] sm:$0xff]  ;;  %v1613_v31 = vrot.slane %v1598_v5, 7  ;;  %v10455_v5 = vld [vmem:[#allocation76_spill] sm:$0xff] }
 0x2c3   :  { %8387 = vtanh.f32 %v1287_v32  ;;  %v1597_v32 = vld [vmem:[#allocation2 + $0x2] sm:$0x1] }
 0x2cd   :  { %v8388_v21 = vpop.eup %8387 }
 0x2ce   :  { %v1290_v17 = vmul.f32 %v8388_v21, %v1289_v34  ;;  %v10451_v34 = vld [vmem:[#allocation72_spill] sm:$0xff]  ;;  %v10452_v21 = vld [vmem:[#allocation73_spill] sm:$0xff] }
 0x2d0   :  { %v9244_v0 = vadd.f32 %v1291_v35, %v1290_v17  ;;  %v1600_v17 = vld [vmem:[#allocation2 + $0x1a] sm:$0x1]  ;;  %v1615_v35 = vrot.slane %v1599_v41, 6 }
 0x2d2   :  { %1358 = vmatmul.mubr.f32.vlgmr.msra.gmra.mrb[6].mxu0 %v9244_v0  ;;  %6148 = vmatmul.mubr.f32.vlgmr.msra.gmra.mrb[12].mxu1 %v9244_v0 }
 0x2d3   :  { %7160 = vmatpush1.bf16.msra.mxu0 %v10441_v30  ;;  %7191 = vmatpush3.bf16.msra.mxu1 %v10442_v61 }
 0x2d4   :  { %7162 = vmatprep.subr.bf16.mxu0 %v10443_v40  ;;  %7192 = vmatprep.subr.bf16.mxu1 %v10402_v44  ;;  %v10457_v40 = vld [vmem:[#allocation78_spill] sm:$0xff] }
 0x2d5   :  { %1498 = vmatprep.mubr.f32.mxu0 %v10404_v50  ;;  %6182 = vmatprep.mubr.msk.f32.mxu1 %vm8674_vm1, %v10404_v50 }
 0x2d7   :  { %7164 = vmatpush1.bf16.msra.mxu0 %v10444_v1  ;;  %7194 = vmatpush3.bf16.msra.mxu1 %v10445_v43  ;;  %v1617_v43 = vrot.slane %v1600_v17, 5  ;;  %v10456_v1 = vld [vmem:[#allocation77_spill] sm:$0xff] }
 0x2d8   :  { %7166 = vmatprep.subr.bf16.mxu0 %v10446_v20  ;;  %7195 = vmatprep.subr.bf16.mxu1 %v10402_v44  ;;  %v1601_v20 = vld [vmem:[#allocation2 + $0x22] sm:$0x1] }
 0x2db   :  { %7168 = vmatpush1.bf16.msra.mxu0 %v10447_v26  ;;  %7197 = vmatpush3.bf16.msra.mxu1 %v10448_v51  ;;  %v1614_v26 = vsel %vm288_vm4, %v1613_v31, %v1597_v32  ;;  %v10453_v51 = vld [vmem:[#allocation74_spill] sm:$0xff]  ;;  %v1603_v31 = vld [vmem:[#allocation2 + $0x32] sm:$0x1] }
 0x2dc   :  { %7170 = vmatprep.subr.bf16.mxu0 %v10449_v25  ;;  %7198 = vmatprep.subr.bf16.mxu1 %v10402_v44  ;;  %v10454_v25 = vld [vmem:[#allocation75_spill] sm:$0xff] }
 0x2df   :  { %7172 = vmatpush1.bf16.msra.mxu0 %v10450_v53  ;;  %7200 = vmatpush3.bf16.msra.mxu1 %v10451_v34  ;;  %v1616_v34 = vsel %vm291_vm5, %v1615_v35, %v1614_v26  ;;  %v1602_v53 = vld [vmem:[#allocation2 + $0x2a] sm:$0x1]  ;;  %v1623_v26 = vrot.slane %v1603_v31, 2  ;;  %v10458_v35 = vld [vmem:[#allocation36_spill] sm:$0xff] }
 0x2e0   :  { %7174 = vmatprep.subr.bf16.mxu0 %v10452_v21  ;;  %7201 = vmatprep.subr.bf16.mxu1 %v10402_v44  ;;  %v1619_v21 = vrot.slane %v1601_v20, 4  ;;  %v1618_v41 = vsel %vm294_vm6, %v1617_v43, %v1616_v34  ;;  %v1621_v32 = vrot.slane %v1602_v53, 3  ;;  %v1604_v20 = vld [vmem:[#allocation2 + $0x3a] sm:$0x1]  ;;  %v10460_v31 = vld [vmem:[#allocation38_spill] sm:$0xff] }
 0x2e1   :  { %v1625_v34 = vrot.slane %v1604_v20, 1  ;;  %v10463_v20 = vld [vmem:[#allocation41_spill] sm:$0xff] }
 0x2e2   :  { %v1620_v17 = vsel %vm297_vm7, %v1619_v21, %v1618_v41  ;;  %v10459_v41 = vld [vmem:[#allocation37_spill] sm:$0xff] }
 0x2e3   :  { %7176 = vmatpush1.bf16.msra.mxu0 %v10453_v51  ;;  %7203 = vmatpush3.bf16.msra.mxu1 %v10454_v25  ;;  %v1622_v43 = vsel %vm300_vm8, %v1621_v32, %v1620_v17  ;;  %v10461_v32 = vld [vmem:[#allocation39_spill] sm:$0xff]  ;;  %v10462_v17 = vld [vmem:[#allocation40_spill] sm:$0xff] }
 0x2e4   :  { %7178 = vmatprep.subr.bf16.mxu0 %v10455_v5  ;;  %7204 = vmatprep.subr.bf16.mxu1 %v10402_v44  ;;  %v1624_v53 = vsel %vm303_vm9, %v1623_v26, %v1622_v43  ;;  %v10464_v26 = vld [vmem:[#allocation42_spill] sm:$0xff]  ;;  %v10465_v43 = vld [vmem:[#allocation43_spill] sm:$0xff] }
 0x2e5   :  { %v1626_v21 = vsel %vm306_vm10, %v1625_v34, %v1624_v53  ;;  %v10466_v34 = vld [vmem:[#allocation44_spill] sm:$0xff]  ;;  %v10467_v53 = vld [vmem:[#allocation45_spill] sm:$0xff] }
 0x2e7   :  { %7180 = vmatpush1.bf16.msra.mxu0 %v10456_v1  ;;  %7206 = vmatpush3.bf16.msra.mxu1 %v10457_v40 }
 0x2e8   :  { %7182 = vmatprep.subr.bf16.mxu0 %v9094_v13  ;;  %7207 = vmatprep.subr.bf16.mxu1 %v10402_v44 }
 0x2eb   :  { %7184 = vmatpush1.bf16.msra.mxu0 %v9099_v22  ;;  %7209 = vmatpush3.bf16.msra.mxu1 %v9101_v57 }
 0x2ec   :  { %7186 = vmatprep.subr.bf16.mxu0 %v9106_v60  ;;  %7210 = vmatprep.subr.bf16.mxu1 %v10402_v44 }
 0x2ef   :  { %7188 = vmatpush1.bf16.msra.mxu0 %v9111_v9  ;;  %7212 = vmatpush3.bf16.msra.mxu1 %v9113_v14 }
 0x2f0   :  { %7215 = vmatprep.subr.msk.bf16.mxu0 %vm8803_vm3, %v8807_v6  ;;  %7219 = vmatprep.subr.bf16.mxu1 %v10402_v44 }
 0x2f2   :  { %1499 = vmatmul.mubr.f32.vlgmr.msra.gmra.mrb[6].mxu0 %v9239_v23  ;;  %6183 = vmatmul.mubr.f32.vlgmr.msra.gmra.mrb[14].mxu1 %v9239_v23 }
 0x2f3   :  { %7218 = vmatpush1.bf16.msk.msra.mxu0 %vm8803_vm3, %v8809_v10  ;;  %7222 = vmatpush3.bf16.msk.msra.mxu1 %vm8803_vm3, %v8835_v47 }
 0x2f4   :  { %1693 = vmatprep.mubr.f32.mxu0 %v10404_v50  ;;  %6189 = vmatprep.mubr.msk.f32.mxu1 %vm8674_vm1, %v10404_v50 }
 0x2f5   :  { %7224 = vmatprep.subr.bf16.mxu0 %v8811_v11  ;;  %7255 = vmatprep.subr.bf16.mxu1 %v10402_v44 }
 0x2f6   :  { %5477 = vmatmul.mubr.msk.f32.vlgmr.msra.gmra.mrb[8].mxu0 %vm308_vm11, %v1626_v21  ;;  %6190 = vmatmul.mubr.msk.f32.vlgmr.msra.gmra.mrb[16].mxu1 %vm308_vm11, %v1626_v21  ;;  %v10468_v21 = vld [vmem:[#allocation46_spill] sm:$0xff] }
 0x2f7   :  { %7226 = vmatpush1.bf16.msra.mxu0 %v8825_v36  ;;  %7257 = vmatpush3.bf16.msra.mxu1 %v8844_v55 }
 0x2f8   :  { %7228 = vmatprep.subr.bf16.mxu0 %v8828_v38  ;;  %7258 = vmatprep.subr.bf16.mxu1 %v10402_v44 }
 0x2f9   :  { %1834 = vmatprep.mubr.f32.mxu0 %v10404_v50  ;;  %6224 = vmatprep.mubr.msk.f32.mxu1 %vm8674_vm1, %v10404_v50 }
 0x2fb   :  { %7230 = vmatpush1.bf16.msra.mxu0 %v8833_v46  ;;  %7260 = vmatpush3.bf16.msra.mxu1 %v8855_v3 }
 0x2fc   :  { %7232 = vmatprep.subr.bf16.mxu0 %v8839_v49  ;;  %7261 = vmatprep.subr.bf16.mxu1 %v10402_v44 }
 0x2ff   :  { %7234 = vmatpush1.bf16.msra.mxu0 %v8848_v58  ;;  %7263 = vmatpush3.bf16.msra.mxu1 %v8867_v15 }
 0x300   :  { %7236 = vmatprep.subr.bf16.mxu0 %v8851_v59  ;;  %7264 = vmatprep.subr.bf16.mxu1 %v10402_v44 }
 0x303   :  { %7238 = vmatpush1.bf16.msra.mxu0 %v8861_v7  ;;  %7266 = vmatpush3.bf16.msra.mxu1 %v8877_v24 }
 0x304   :  { %7240 = vmatprep.subr.bf16.mxu0 %v8864_v8  ;;  %7267 = vmatprep.subr.bf16.mxu1 %v10402_v44 }
 0x307   :  { %7242 = vmatpush1.bf16.msra.mxu0 %v8871_v18  ;;  %7269 = vmatpush3.bf16.msra.mxu1 %v8887_v33 }
 0x308   :  { %7244 = vmatprep.subr.bf16.mxu0 %v8874_v19  ;;  %7270 = vmatprep.subr.bf16.mxu1 %v10402_v44 }
 0x30b   :  { %7246 = vmatpush1.bf16.msra.mxu0 %v8881_v27  ;;  %7272 = vmatpush3.bf16.msra.mxu1 %v8897_v42 }
 0x30c   :  { %7248 = vmatprep.subr.bf16.mxu0 %v8884_v28  ;;  %7273 = vmatprep.subr.bf16.mxu1 %v10402_v44 }
 0x30f   :  { %7250 = vmatpush1.bf16.msra.mxu0 %v8891_v37  ;;  %7275 = vmatpush3.bf16.msra.mxu1 %v8905_v48 }
 0x310   :  { %7252 = vmatprep.subr.bf16.mxu0 %v8894_v39  ;;  %7276 = vmatprep.subr.bf16.mxu1 %v10402_v44 }
 0x313   :  { %7254 = vmatpush1.bf16.msra.mxu0 %v8901_v45  ;;  %7278 = vmatpush3.bf16.msra.mxu1 %v8910_v52 }
 0x314   :  { %7280 = vmatprep.subr.bf16.mxu0 %v8920_v56  ;;  %7311 = vmatprep.subr.bf16.mxu1 %v10402_v44 }
 0x316   :  { %1835 = vmatmul.mubr.f32.vlgmr.msra.gmra.mrb[8].mxu0 %v9244_v0  ;;  %6225 = vmatmul.mubr.f32.vlgmr.msra.gmra.mrb[18].mxu1 %v9244_v0 }
 0x317   :  { %7282 = vmatpush1.bf16.msra.mxu0 %v8922_v62  ;;  %7313 = vmatpush3.bf16.msra.mxu1 %v8925_v4 }
 0x318   :  { %7284 = vmatprep.subr.bf16.mxu0 %v8929_v12  ;;  %7314 = vmatprep.subr.bf16.mxu1 %v10402_v44 }
 0x319   :  { %1997 = vmatprep.mubr.f32.mxu0 %v10404_v50  ;;  %6259 = vmatprep.mubr.msk.f32.mxu1 %vm8674_vm1, %v10404_v50 }
 0x31b   :  { %7286 = vmatpush1.bf16.msra.mxu0 %v10458_v35  ;;  %7316 = vmatpush3.bf16.msra.mxu1 %v10459_v41  ;;  %v10479_v35 = vld [vmem:[#allocation57_spill] sm:$0xff] }
 0x31c   :  { %7288 = vmatprep.subr.bf16.mxu0 %v10460_v31  ;;  %7317 = vmatprep.subr.bf16.mxu1 %v10402_v44  ;;  %v10469_v31 = vld [vmem:[#allocation47_spill] sm:$0xff] }
 0x31f   :  { %7290 = vmatpush1.bf16.msra.mxu0 %v10461_v32  ;;  %7319 = vmatpush3.bf16.msra.mxu1 %v10462_v17  ;;  %v10470_v17 = vld [vmem:[#allocation48_spill] sm:$0xff]  ;;  %v10472_v32 = vld [vmem:[#allocation50_spill] sm:$0xff] }
 0x320   :  { %7292 = vmatprep.subr.bf16.mxu0 %v10463_v20  ;;  %7320 = vmatprep.subr.bf16.mxu1 %v10402_v44  ;;  %v10471_v20 = vld [vmem:[#allocation49_spill] sm:$0xff] }
 0x323   :  { %7294 = vmatpush1.bf16.msra.mxu0 %v10464_v26  ;;  %7322 = vmatpush3.bf16.msra.mxu1 %v10465_v43  ;;  %v10473_v43 = vld [vmem:[#allocation51_spill] sm:$0xff]  ;;  %v10475_v26 = vld [vmem:[#allocation53_spill] sm:$0xff] }
 0x324   :  { %7296 = vmatprep.subr.bf16.mxu0 %v10466_v34  ;;  %7323 = vmatprep.subr.bf16.mxu1 %v10402_v44  ;;  %v10474_v34 = vld [vmem:[#allocation52_spill] sm:$0xff] }
 0x327   :  { %7298 = vmatpush1.bf16.msra.mxu0 %v10467_v53  ;;  %7325 = vmatpush3.bf16.msra.mxu1 %v10468_v21  ;;  %v10476_v21 = vld [vmem:[#allocation54_spill] sm:$0xff]  ;;  %v10478_v53 = vld [vmem:[#allocation56_spill] sm:$0xff] }
 0x328   :  { %7300 = vmatprep.subr.bf16.mxu0 %v10469_v31  ;;  %7326 = vmatprep.subr.bf16.mxu1 %v10402_v44  ;;  %v10477_v31 = vld [vmem:[#allocation55_spill] sm:$0xff] }
 0x32b   :  { %7302 = vmatpush1.bf16.msra.mxu0 %v10470_v17  ;;  %7328 = vmatpush3.bf16.msra.mxu1 %v10471_v20 }
 0x32c   :  { %7304 = vmatprep.subr.bf16.mxu0 %v10472_v32  ;;  %7329 = vmatprep.subr.bf16.mxu1 %v10402_v44 }
 0x32f   :  { %7306 = vmatpush1.bf16.msra.mxu0 %v10473_v43  ;;  %7331 = vmatpush3.bf16.msra.mxu1 %v10474_v34 }
 0x330   :  { %7308 = vmatprep.subr.bf16.mxu0 %v10475_v26  ;;  %7332 = vmatprep.subr.bf16.mxu1 %v10402_v44  ;;  %v10480_v26 = vld [vmem:[#allocation79_spill] sm:$0xff] }
 0x333   :  { %7310 = vmatpush1.bf16.msra.mxu0 %v10476_v21  ;;  %7334 = vmatpush3.bf16.msra.mxu1 %v10477_v31 }
 0x334   :  { %7336 = vmatprep.subr.bf16.mxu0 %v10478_v53  ;;  %7367 = vmatprep.subr.bf16.mxu1 %v10402_v44 }
 0x3a5   :  { %v1430_v20 = vpop.f32.mrb[12].mxu1 }
 0x3a6   :  { %v6149_v32 = vpop.f32.mrb[13].mxu1 }
 0x3a7   :  { %v10481_v32 = vld [vmem:[#allocation80_spill] sm:$0xff] }
 0x3c5   :  { %v1500_v17 = vpop.f32.mrb[6].mxu0  ;;  %v1571_v41 = vpop.f32.mrb[14].mxu1 }
 0x3c6   :  { %v8287_v43 = vadd.f32 %v1500_v17, %v10479_v35  ;;  %v1502_v12 = vpop.f32.mrb[7].mxu0  ;;  %v6184_v34 = vpop.f32.mrb[15].mxu1  ;;  %v1589_v48 = vadd.f32 %v10481_v32, %v1571_v41  ;;  %v1431_v17 = vadd.f32 %v1430_v20, %v9233_v63 }
 0x3c7   :  { %v8288_v62 = vadd.f32 %v1502_v12, %v10480_v26 }
 0x3c8   :  { %v5473_v4 = vmul.f32 -1.442695, %v8287_v43 }
 0x3c9   :  { %v1766_v56 = vpop.f32.mrb[16].mxu1  ;;  %v5474_v52 = vmul.f32 -1.442695, %v8288_v62 }
 0x3ca   :  { %8389 = vpow2.f32 %v5473_v4  ;;  %v6191_v21 = vpop.f32.mrb[17].mxu1  ;;  %v10482_v4 = vld [vmem:[#allocation58_spill] sm:$0xff] }
 0x3cb   :  { %8391 = vpow2.f32 %v5474_v52 }
 0x3d4   :  { %v8390_v31 = vpop.eup %8389 }
 0x3d5   :  { %v1583_v53 = vadd.f32 1.0, %v8390_v31  ;;  %v8392_v45 = vpop.eup %8391 }
 0x3d6   :  { %v1584_v39 = vadd.f32 1.0, %v8392_v45 }
 0x3d7   :  { %8393 = vrcp.f32 %v1583_v53 }
 0x3d8   :  { %8395 = vrcp.f32 %v1584_v39 }
 0x3e1   :  { %v8394_v37 = vpop.eup %8393 }
 0x3e2   :  { %v1590_v35 = vmul.f32 %v8394_v37, %v1589_v48  ;;  %v8396_v26 = vpop.eup %8395 }
 0x3e3   :  { %v1593_v45 = vsub.f32 1.0, %v8396_v26  ;;  %v1595_v37 = vmul.f32 %v8396_v26, %v9239_v23 }
 0x3e4   :  { %v1591_v43 = vadd.f32 %v1590_v35, %v1431_v17 }
 0x3e6   :  { %8397 = vtanh.f32 %v1591_v43 }
 0x3e9   :  { %v1836_v12 = vpop.f32.mrb[8].mxu0  ;;  %v1907_v34 = vpop.f32.mrb[18].mxu1 }
 0x3ea   :  { %v8289_v21 = vadd.f32 %v1836_v12, %v10482_v4  ;;  %v1838_v62 = vpop.f32.mrb[9].mxu0  ;;  %v6226_v52 = vpop.f32.mrb[19].mxu1  ;;  %v1925_v43 = vadd.f32 %v10439_v16, %v1907_v34  ;;  %v10484_v16 = vld [vmem:[#allocation65_spill] sm:$0xff]  ;;  %v10486_v34 = vld [vmem:[#allocation67_spill] sm:$0xff] }
 0x3eb   :  { %v8290_v53 = vadd.f32 %v1838_v62, %v10438_v29 }
 0x3ec   :  { %v5480_v31 = vmul.f32 -1.442695, %v8289_v21  ;;  %v1767_v21 = vadd.f32 %v1766_v56, %v10440_v54  ;;  %v10483_v56 = vld [vmem:[#allocation64_spill] sm:$0xff] }
 0x3ed   :  { %v5481_v32 = vmul.f32 -1.442695, %v8290_v53 }
 0x3ee   :  { %8399 = vpow2.f32 %v5480_v31 }
 0x3ef   :  { %8401 = vpow2.f32 %v5481_v32 }
 0x3f0   :  { %v8398_v41 = vpop.eup %8397 }
 0x3f1   :  { %v1594_v28 = vmul.f32 %v8398_v41, %v1593_v45  ;;  %v2238_v45 = vld [vmem:[#allocation2 + $0xb] sm:$0x1]  ;;  %v10487_v41 = vld [vmem:[#allocation68_spill] sm:$0xff] }
 0x3f3   :  { %v9386_v39 = vadd.f32 %v1595_v37, %v1594_v28  ;;  %v10488_v37 = vld [vmem:[#allocation69_spill] sm:$0xff] }
 0x3f8   :  { %v8400_v48 = vpop.eup %8399 }
 0x3f9   :  { %v1919_v35 = vadd.f32 1.0, %v8400_v48  ;;  %v8402_v20 = vpop.eup %8401  ;;  %v10489_v48 = vld [vmem:[#allocation70_spill] sm:$0xff] }
 0x3fa   :  { %v1920_v17 = vadd.f32 1.0, %v8402_v20  ;;  %v2253_v20 = vrot.slane %v2238_v45, 7 }
 0x3fb   :  { %8403 = vrcp.f32 %v1919_v35  ;;  %v2239_v35 = vld [vmem:[#allocation2 + $0x13] sm:$0x1] }
 0x3fc   :  { %8405 = vrcp.f32 %v1920_v17  ;;  %v2237_v17 = vld [vmem:[#allocation2 + $0x3] sm:$0x1] }
 0x405   :  { %v8404_v12 = vpop.eup %8403 }
 0x406   :  { %v1926_v62 = vmul.f32 %v8404_v12, %v1925_v43  ;;  %v8406_v31 = vpop.eup %8405  ;;  %v10490_v43 = vld [vmem:[#allocation71_spill] sm:$0xff]  ;;  %v10491_v12 = vld [vmem:[#allocation72_spill] sm:$0xff] }
 0x407   :  { %v1929_v53 = vsub.f32 1.0, %v8406_v31  ;;  %v1931_v26 = vmul.f32 %v8406_v31, %v9244_v0  ;;  %v10485_v0 = vld [vmem:[#allocation66_spill] sm:$0xff]  ;;  %v2254_v31 = vsel %vm288_vm4, %v2253_v20, %v2237_v17  ;;  %v2243_v20 = vld [vmem:[#allocation2 + $0x33] sm:$0x1] }
 0x408   :  { %v1927_v52 = vadd.f32 %v1926_v62, %v1767_v21  ;;  %v10492_v21 = vld [vmem:[#allocation73_spill] sm:$0xff]  ;;  %v2240_v62 = vld [vmem:[#allocation2 + $0x1b] sm:$0x1] }
 0x40a   :  { %8407 = vtanh.f32 %v1927_v52  ;;  %v2255_v52 = vrot.slane %v2239_v35, 6 }
 0x414   :  { %v8408_v23 = vpop.eup %8407 }
 0x415   :  { %v1930_v28 = vmul.f32 %v8408_v23, %v1929_v53  ;;  %v2241_v53 = vld [vmem:[#allocation2 + $0x23] sm:$0x1]  ;;  %v2257_v23 = vrot.slane %v2240_v62, 5 }
 0x416   :  { %v2259_v45 = vrot.slane %v2241_v53, 4 }
 0x417   :  { %v9391_v32 = vadd.f32 %v1931_v26, %v1930_v28  ;;  %v2256_v28 = vsel %vm291_vm5, %v2255_v52, %v2254_v31  ;;  %v2242_v26 = vld [vmem:[#allocation2 + $0x2b] sm:$0x1]  ;;  %v2244_v52 = vld [vmem:[#allocation2 + $0x3b] sm:$0x1]  ;;  %v2263_v31 = vrot.slane %v2243_v20, 2 }
 0x418   :  { %v2258_v35 = vsel %vm294_vm6, %v2257_v23, %v2256_v28  ;;  %v2261_v17 = vrot.slane %v2242_v26, 3  ;;  %v2265_v23 = vrot.slane %v2244_v52, 1  ;;  %v10495_v20 = vld [vmem:[#allocation30_spill] sm:$0xff]  ;;  %v10498_v52 = vld [vmem:[#allocation31_spill] sm:$0xff] }
 0x419   :  { %1998 = vmatmul.mubr.f32.vlgmr.msra.gmra.mrb[10].mxu0 %v9391_v32  ;;  %6260 = vmatmul.mubr.f32.vlgmr.msra.gmra.mrb[20].mxu1 %v9391_v32  ;;  %v2260_v62 = vsel %vm297_vm7, %v2259_v45, %v2258_v35  ;;  %v10493_v45 = vld [vmem:[#allocation24_spill] sm:$0xff]  ;;  %v10494_v35 = vld [vmem:[#allocation26_spill] sm:$0xff] }
 0x41a   :  { %7338 = vmatpush1.bf16.msra.mxu0 %v10441_v30  ;;  %7369 = vmatpush3.bf16.msra.mxu1 %v10442_v61  ;;  %v2262_v53 = vsel %vm300_vm8, %v2261_v17, %v2260_v62  ;;  %v10496_v17 = vld [vmem:[#allocation27_spill] sm:$0xff]  ;;  %v10497_v62 = vld [vmem:[#allocation29_spill] sm:$0xff] }
 0x41b   :  { %7340 = vmatprep.subr.bf16.mxu0 %v10483_v56  ;;  %7370 = vmatprep.subr.bf16.mxu1 %v10402_v44  ;;  %v2264_v28 = vsel %vm303_vm9, %v2263_v31, %v2262_v53  ;;  %v10499_v31 = vld [vmem:[#allocation32_spill] sm:$0xff]  ;;  %v10500_v53 = vld [vmem:[#allocation33_spill] sm:$0xff] }
 0x41c   :  { %2138 = vmatprep.mubr.f32.mxu0 %v10404_v50  ;;  %6294 = vmatprep.mubr.msk.f32.mxu1 %vm8674_vm1, %v10404_v50  ;;  %v2266_v26 = vsel %vm306_vm10, %v2265_v23, %v2264_v28  ;;  %v10501_v23 = vld [vmem:[#allocation34_spill] sm:$0xff]  ;;  %v10502_v28 = vld [vmem:[#allocation35_spill] sm:$0xff] }
 0x41e   :  { %7342 = vmatpush1.bf16.msra.mxu0 %v10484_v16  ;;  %7372 = vmatpush3.bf16.msra.mxu1 %v10485_v0 }
 0x41f   :  { %7344 = vmatprep.subr.bf16.mxu0 %v10486_v34  ;;  %7373 = vmatprep.subr.bf16.mxu1 %v10402_v44 }
 0x422   :  { %7346 = vmatpush1.bf16.msra.mxu0 %v10487_v41  ;;  %7375 = vmatpush3.bf16.msra.mxu1 %v10488_v37 }
 0x423   :  { %7348 = vmatprep.subr.bf16.mxu0 %v10489_v48  ;;  %7376 = vmatprep.subr.bf16.mxu1 %v10402_v44 }
 0x426   :  { %7350 = vmatpush1.bf16.msra.mxu0 %v10490_v43  ;;  %7378 = vmatpush3.bf16.msra.mxu1 %v10491_v12 }
 0x427   :  { %7352 = vmatprep.subr.bf16.mxu0 %v10492_v21  ;;  %7379 = vmatprep.subr.bf16.mxu1 %v10402_v44 }
 0x42a   :  { %7354 = vmatpush1.bf16.msra.mxu0 %v10453_v51  ;;  %7381 = vmatpush3.bf16.msra.mxu1 %v10454_v25 }
 0x42b   :  { %7356 = vmatprep.subr.bf16.mxu0 %v10455_v5  ;;  %7382 = vmatprep.subr.bf16.mxu1 %v10402_v44 }
 0x42e   :  { %7358 = vmatpush1.bf16.msra.mxu0 %v10456_v1  ;;  %7384 = vmatpush3.bf16.msra.mxu1 %v10457_v40 }
 0x42f   :  { %7360 = vmatprep.subr.bf16.mxu0 %v9094_v13  ;;  %7385 = vmatprep.subr.bf16.mxu1 %v10402_v44 }
 0x432   :  { %7362 = vmatpush1.bf16.msra.mxu0 %v9099_v22  ;;  %7387 = vmatpush3.bf16.msra.mxu1 %v9101_v57 }
 0x433   :  { %7364 = vmatprep.subr.bf16.mxu0 %v9106_v60  ;;  %7388 = vmatprep.subr.bf16.mxu1 %v10402_v44 }
 0x436   :  { %7366 = vmatpush1.bf16.msra.mxu0 %v9111_v9  ;;  %7390 = vmatpush3.bf16.msra.mxu1 %v9113_v14 }
 0x437   :  { %7393 = vmatprep.subr.msk.bf16.mxu0 %vm8803_vm3, %v8807_v6  ;;  %7397 = vmatprep.subr.bf16.mxu1 %v10402_v44 }
 0x439   :  { %2139 = vmatmul.mubr.f32.vlgmr.msra.gmra.mrb[10].mxu0 %v9386_v39  ;;  %6295 = vmatmul.mubr.f32.vlgmr.msra.gmra.mrb[22].mxu1 %v9386_v39 }
 0x43a   :  { %7396 = vmatpush1.bf16.msk.msra.mxu0 %vm8803_vm3, %v8809_v10  ;;  %7400 = vmatpush3.bf16.msk.msra.mxu1 %vm8803_vm3, %v8835_v47 }
 0x43b   :  { %2333 = vmatprep.mubr.f32.mxu0 %v10404_v50  ;;  %6301 = vmatprep.mubr.msk.f32.mxu1 %vm8674_vm1, %v10404_v50 }
 0x43c   :  { %7402 = vmatprep.subr.bf16.mxu0 %v8811_v11  ;;  %7433 = vmatprep.subr.bf16.mxu1 %v10402_v44 }
 0x43d   :  { %5486 = vmatmul.mubr.msk.f32.vlgmr.msra.gmra.mrb[12].mxu0 %vm308_vm11, %v2266_v26  ;;  %6302 = vmatmul.mubr.msk.f32.vlgmr.msra.gmra.mrb[24].mxu1 %vm308_vm11, %v2266_v26  ;;  %v10503_v26 = vld [vmem:[#allocation36_spill] sm:$0xff] }
 0x43e   :  { %7404 = vmatpush1.bf16.msra.mxu0 %v8825_v36  ;;  %7435 = vmatpush3.bf16.msra.mxu1 %v8844_v55 }
 0x43f   :  { %7406 = vmatprep.subr.bf16.mxu0 %v8828_v38  ;;  %7436 = vmatprep.subr.bf16.mxu1 %v10402_v44 }
 0x440   :  { %2474 = vmatprep.mubr.f32.mxu0 %v10404_v50  ;;  %6336 = vmatprep.mubr.msk.f32.mxu1 %vm8674_vm1, %v10404_v50 }
 0x442   :  { %7408 = vmatpush1.bf16.msra.mxu0 %v8833_v46  ;;  %7438 = vmatpush3.bf16.msra.mxu1 %v8855_v3 }
 0x443   :  { %7410 = vmatprep.subr.bf16.mxu0 %v8839_v49  ;;  %7439 = vmatprep.subr.bf16.mxu1 %v10402_v44 }
 0x446   :  { %7412 = vmatpush1.bf16.msra.mxu0 %v8848_v58  ;;  %7441 = vmatpush3.bf16.msra.mxu1 %v8867_v15 }
 0x447   :  { %7414 = vmatprep.subr.bf16.mxu0 %v8851_v59  ;;  %7442 = vmatprep.subr.bf16.mxu1 %v10402_v44 }
 0x44a   :  { %7416 = vmatpush1.bf16.msra.mxu0 %v8861_v7  ;;  %7444 = vmatpush3.bf16.msra.mxu1 %v8877_v24 }
 0x44b   :  { %7418 = vmatprep.subr.bf16.mxu0 %v8864_v8  ;;  %7445 = vmatprep.subr.bf16.mxu1 %v10402_v44 }
 0x44e   :  { %7420 = vmatpush1.bf16.msra.mxu0 %v8871_v18  ;;  %7447 = vmatpush3.bf16.msra.mxu1 %v8887_v33 }
 0x44f   :  { %7422 = vmatprep.subr.bf16.mxu0 %v8874_v19  ;;  %7448 = vmatprep.subr.bf16.mxu1 %v10402_v44 }
 0x452   :  { %7424 = vmatpush1.bf16.msra.mxu0 %v8881_v27  ;;  %7450 = vmatpush3.bf16.msra.mxu1 %v8897_v42 }
 0x453   :  { %7426 = vmatprep.subr.bf16.mxu0 %v10493_v45  ;;  %7451 = vmatprep.subr.bf16.mxu1 %v10402_v44  ;;  %v10524_v45 = vld [vmem:[#allocation57_spill] sm:$0xff] }
 0x456   :  { %7428 = vmatpush1.bf16.msra.mxu0 %v10494_v35  ;;  %7453 = vmatpush3.bf16.msra.mxu1 %v10495_v20  ;;  %v10511_v20 = vld [vmem:[#allocation44_spill] sm:$0xff] }
 0x457   :  { %7430 = vmatprep.subr.bf16.mxu0 %v10496_v17  ;;  %7454 = vmatprep.subr.bf16.mxu1 %v10402_v44  ;;  %v10510_v17 = vld [vmem:[#allocation43_spill] sm:$0xff] }
 0x45a   :  { %7432 = vmatpush1.bf16.msra.mxu0 %v10497_v62  ;;  %7456 = vmatpush3.bf16.msra.mxu1 %v10498_v52  ;;  %v10505_v52 = vld [vmem:[#allocation38_spill] sm:$0xff] }
 0x45b   :  { %7458 = vmatprep.subr.bf16.mxu0 %v10499_v31  ;;  %7489 = vmatprep.subr.bf16.mxu1 %v10402_v44  ;;  %v10504_v31 = vld [vmem:[#allocation37_spill] sm:$0xff]  ;;  %v10509_v62 = vld [vmem:[#allocation42_spill] sm:$0xff] }
 0x45d   :  { %2475 = vmatmul.mubr.f32.vlgmr.msra.gmra.mrb[12].mxu0 %v9391_v32  ;;  %6337 = vmatmul.mubr.f32.vlgmr.msra.gmra.mrb[26].mxu1 %v9391_v32 }
 0x45e   :  { %7460 = vmatpush1.bf16.msra.mxu0 %v10500_v53  ;;  %7491 = vmatpush3.bf16.msra.mxu1 %v10501_v23  ;;  %v10506_v53 = vld [vmem:[#allocation39_spill] sm:$0xff]  ;;  %v10507_v23 = vld [vmem:[#allocation40_spill] sm:$0xff] }
 0x45f   :  { %7462 = vmatprep.subr.bf16.mxu0 %v10502_v28  ;;  %7492 = vmatprep.subr.bf16.mxu1 %v10402_v44  ;;  %v10508_v28 = vld [vmem:[#allocation41_spill] sm:$0xff] }
 0x460   :  { %2637 = vmatprep.mubr.f32.mxu0 %v10404_v50  ;;  %6371 = vmatprep.mubr.msk.f32.mxu1 %vm8674_vm1, %v10404_v50 }
 0x462   :  { %7464 = vmatpush1.bf16.msra.mxu0 %v10503_v26  ;;  %7494 = vmatpush3.bf16.msra.mxu1 %v10504_v31  ;;  %v10512_v31 = vld [vmem:[#allocation45_spill] sm:$0xff]  ;;  %v10514_v26 = vld [vmem:[#allocation47_spill] sm:$0xff] }
 0x463   :  { %7466 = vmatprep.subr.bf16.mxu0 %v10505_v52  ;;  %7495 = vmatprep.subr.bf16.mxu1 %v10402_v44  ;;  %v10513_v52 = vld [vmem:[#allocation46_spill] sm:$0xff] }
 0x466   :  { %7468 = vmatpush1.bf16.msra.mxu0 %v10506_v53  ;;  %7497 = vmatpush3.bf16.msra.mxu1 %v10507_v23  ;;  %v10515_v23 = vld [vmem:[#allocation48_spill] sm:$0xff]  ;;  %v10517_v53 = vld [vmem:[#allocation50_spill] sm:$0xff] }
 0x467   :  { %7470 = vmatprep.subr.bf16.mxu0 %v10508_v28  ;;  %7498 = vmatprep.subr.bf16.mxu1 %v10402_v44  ;;  %v10516_v28 = vld [vmem:[#allocation49_spill] sm:$0xff] }
 0x46a   :  { %7472 = vmatpush1.bf16.msra.mxu0 %v10509_v62  ;;  %7500 = vmatpush3.bf16.msra.mxu1 %v10510_v17  ;;  %v10518_v17 = vld [vmem:[#allocation51_spill] sm:$0xff]  ;;  %v10520_v62 = vld [vmem:[#allocation53_spill] sm:$0xff] }
 0x46b   :  { %7474 = vmatprep.subr.bf16.mxu0 %v10511_v20  ;;  %7501 = vmatprep.subr.bf16.mxu1 %v10402_v44  ;;  %v10519_v20 = vld [vmem:[#allocation52_spill] sm:$0xff] }
 0x46e   :  { %7476 = vmatpush1.bf16.msra.mxu0 %v10512_v31  ;;  %7503 = vmatpush3.bf16.msra.mxu1 %v10513_v52  ;;  %v10521_v52 = vld [vmem:[#allocation54_spill] sm:$0xff]  ;;  %v10523_v31 = vld [vmem:[#allocation56_spill] sm:$0xff] }
 0x46f   :  { %7478 = vmatprep.subr.bf16.mxu0 %v10514_v26  ;;  %7504 = vmatprep.subr.bf16.mxu1 %v10402_v44  ;;  %v10522_v26 = vld [vmem:[#allocation55_spill] sm:$0xff] }
 0x472   :  { %7480 = vmatpush1.bf16.msra.mxu0 %v10515_v23  ;;  %7506 = vmatpush3.bf16.msra.mxu1 %v10516_v28 }
 0x473   :  { %7482 = vmatprep.subr.bf16.mxu0 %v10517_v53  ;;  %7507 = vmatprep.subr.bf16.mxu1 %v10402_v44 }
 0x476   :  { %7484 = vmatpush1.bf16.msra.mxu0 %v10518_v17  ;;  %7509 = vmatpush3.bf16.msra.mxu1 %v10519_v20 }
 0x477   :  { %7486 = vmatprep.subr.bf16.mxu0 %v10520_v62  ;;  %7510 = vmatprep.subr.bf16.mxu1 %v10402_v44  ;;  %v10525_v62 = vld [vmem:[#allocation79_spill] sm:$0xff] }
 0x47a   :  { %7488 = vmatpush1.bf16.msra.mxu0 %v10521_v52  ;;  %7512 = vmatpush3.bf16.msra.mxu1 %v10522_v26 }
 0x47b   :  { %7514 = vmatprep.subr.bf16.mxu0 %v10523_v31  ;;  %7545 = vmatprep.subr.bf16.mxu1 %v10402_v44 }
 0x4ec   :  { %v2070_v28 = vpop.f32.mrb[20].mxu1 }
 0x4ed   :  { %v6261_v53 = vpop.f32.mrb[21].mxu1 }
 0x4ee   :  { %v10526_v53 = vld [vmem:[#allocation80_spill] sm:$0xff] }
 0x50c   :  { %v2140_v23 = vpop.f32.mrb[10].mxu0  ;;  %v2211_v35 = vpop.f32.mrb[22].mxu1 }
 0x50d   :  { %v8291_v17 = vadd.f32 %v2140_v23, %v10524_v45  ;;  %v2142_v42 = vpop.f32.mrb[11].mxu0  ;;  %v6296_v20 = vpop.f32.mrb[23].mxu1  ;;  %v2229_v7 = vadd.f32 %v10526_v53, %v2211_v35  ;;  %v2071_v23 = vadd.f32 %v2070_v28, %v9233_v63 }
 0x50e   :  { %v8292_v19 = vadd.f32 %v2142_v42, %v10525_v62 }
 0x50f   :  { %v5482_v27 = vmul.f32 -1.442695, %v8291_v17 }
 0x510   :  { %v2406_v33 = vpop.f32.mrb[24].mxu1  ;;  %v5483_v18 = vmul.f32 -1.442695, %v8292_v19 }
 0x511   :  { %8409 = vpow2.f32 %v5482_v27  ;;  %v6303_v52 = vpop.f32.mrb[25].mxu1 }
 0x512   :  { %8411 = vpow2.f32 %v5483_v18 }
 0x51b   :  { %v8410_v26 = vpop.eup %8409 }
 0x51c   :  { %v2223_v31 = vadd.f32 1.0, %v8410_v26  ;;  %v8412_v8 = vpop.eup %8411 }
 0x51d   :  { %v2224_v24 = vadd.f32 1.0, %v8412_v8 }
 0x51e   :  { %8413 = vrcp.f32 %v2223_v31 }
 0x51f   :  { %8415 = vrcp.f32 %v2224_v24 }
 0x528   :  { %v8414_v59 = vpop.eup %8413 }
 0x529   :  { %v2230_v45 = vmul.f32 %v8414_v59, %v2229_v7  ;;  %v8416_v52 = vpop.eup %8415 }
 0x52a   :  { %v2233_v8 = vsub.f32 1.0, %v8416_v52  ;;  %v2235_v59 = vmul.f32 %v8416_v52, %v9386_v39 }
 0x52b   :  { %v2231_v20 = vadd.f32 %v2230_v45, %v2071_v23 }
 0x52d   :  { %8417 = vtanh.f32 %v2231_v20  ;;  %v9538_v20 = vld [vmem:[%s10202_s4] ss:$0 sm:$0xff] }
 0x530   :  { %v2476_v42 = vpop.f32.mrb[12].mxu0  ;;  %v2547_v17 = vpop.f32.mrb[26].mxu1 }
 0x531   :  { %v8293_v27 = vadd.f32 %v2476_v42, %v10482_v4  ;;  %v2478_v19 = vpop.f32.mrb[13].mxu0  ;;  %v6338_v18 = vpop.f32.mrb[27].mxu1  ;;  %v2565_v42 = vadd.f32 %v9538_v20, %v2547_v17 }
 0x532   :  { %v8294_v31 = vadd.f32 %v2478_v19, %v10438_v29  ;;  %v2407_v19 = vadd.f32 %v2406_v33, %v10440_v54  ;;  %v2878_v33 = vld [vmem:[#allocation2 + $0xc] sm:$0x1] }
 0x533   :  { %v5489_v26 = vmul.f32 -1.442695, %v8293_v27  ;;  %v2893_v17 = vrot.slane %v2878_v33, 7 }
 0x534   :  { %v5490_v53 = vmul.f32 -1.442695, %v8294_v31 }
 0x535   :  { %8419 = vpow2.f32 %v5489_v26 }
 0x536   :  { %8421 = vpow2.f32 %v5490_v53  ;;  %v2877_v53 = vld [vmem:[#allocation2 + $0x4] sm:$0x1] }
 0x537   :  { %v8418_v35 = vpop.eup %8417 }
 0x538   :  { %v2234_v62 = vmul.f32 %v8418_v35, %v2233_v8 }
 0x53a   :  { %v9533_v7 = vadd.f32 %v2235_v59, %v2234_v62  ;;  %v2880_v59 = vld [vmem:[#allocation2 + $0x1c] sm:$0x1] }
 0x53f   :  { %v8420_v24 = vpop.eup %8419 }
 0x540   :  { %v2559_v45 = vadd.f32 1.0, %v8420_v24  ;;  %v8422_v28 = vpop.eup %8421 }
 0x541   :  { %v2560_v23 = vadd.f32 1.0, %v8422_v28  ;;  %v2881_v28 = vld [vmem:[#allocation2 + $0x24] sm:$0x1] }
 0x542   :  { %8423 = vrcp.f32 %v2559_v45  ;;  %v2894_v45 = vsel %vm288_vm4, %v2893_v17, %v2877_v53  ;;  %v10527_v53 = vld [vmem:[#allocation16_spill] sm:$0xff] }
 0x543   :  { %8425 = vrcp.f32 %v2560_v23  ;;  %v2897_v23 = vrot.slane %v2880_v59, 5  ;;  %v10528_v59 = vld [vmem:[#allocation17_spill] sm:$0xff] }
 0x54c   :  { %v8424_v27 = vpop.eup %8423 }
 0x54d   :  { %v2566_v18 = vmul.f32 %v8424_v27, %v2565_v42  ;;  %v8426_v62 = vpop.eup %8425  ;;  %v2882_v27 = vld [vmem:[#allocation2 + $0x2c] sm:$0x1] }
 0x54e   :  { %v2569_v52 = vsub.f32 1.0, %v8426_v62  ;;  %v2571_v8 = vmul.f32 %v8426_v62, %v9391_v32  ;;  %v2879_v32 = vld [vmem:[#allocation2 + $0x14] sm:$0x1]  ;;  %v2901_v62 = vrot.slane %v2882_v27, 3 }
 0x54f   :  { %v2567_v39 = vadd.f32 %v2566_v18, %v2407_v19  ;;  %v2895_v24 = vrot.slane %v2879_v32, 6  ;;  %v2899_v19 = vrot.slane %v2881_v28, 4  ;;  %v10531_v28 = vld [vmem:[#allocation20_spill] sm:$0xff]  ;;  %v10534_v27 = vld [vmem:[#allocation23_spill] sm:$0xff] }
 0x551   :  { %8427 = vtanh.f32 %v2567_v39  ;;  %v2896_v42 = vsel %vm291_vm5, %v2895_v24, %v2894_v45  ;;  %v2883_v39 = vld [vmem:[#allocation2 + $0x34] sm:$0x1]  ;;  %v10529_v24 = vld [vmem:[#allocation22_spill] sm:$0xff] }
 0x552   :  { %v2898_v18 = vsel %vm294_vm6, %v2897_v23, %v2896_v42  ;;  %v10530_v45 = vld [vmem:[#allocation18_spill] sm:$0xff]  ;;  %v10532_v23 = vld [vmem:[#allocation25_spill] sm:$0xff] }
 0x553   :  { %v10533_v42 = vld [vmem:[#allocation21_spill] sm:$0xff] }
 0x55b   :  { %v8428_v26 = vpop.eup %8427 }
 0x55c   :  { %v2570_v31 = vmul.f32 %v8428_v26, %v2569_v52  ;;  %v2900_v52 = vsel %vm297_vm7, %v2899_v19, %v2898_v18  ;;  %v2884_v26 = vld [vmem:[#allocation2 + $0x3c] sm:$0x1] }
 0x55d   :  { %v2905_v33 = vrot.slane %v2884_v26, 1  ;;  %v10535_v19 = vld [vmem:[#allocation28_spill] sm:$0xff]  ;;  %v10540_v26 = vld [vmem:[#allocation29_spill] sm:$0xff] }
 0x55e   :  { %v9543_v35 = vadd.f32 %v2571_v8, %v2570_v31  ;;  %v2903_v31 = vrot.slane %v2883_v39, 2  ;;  %v2902_v8 = vsel %vm300_vm8, %v2901_v62, %v2900_v52  ;;  %v10536_v18 = vld [vmem:[#allocation24_spill] sm:$0xff]  ;;  %v10537_v39 = vld [vmem:[#allocation26_spill] sm:$0xff]  ;;  %v10539_v52 = vld [vmem:[#allocation27_spill] sm:$0xff] }
 0x55f   :  { %v10538_v62 = vld [vmem:[#allocation30_spill] sm:$0xff] }
 0x560   :  { %2638 = vmatmul.mubr.f32.vlgmr.msra.gmra.mrb[14].mxu0 %v9543_v35  ;;  %6372 = vmatmul.mubr.f32.vlgmr.msra.gmra.mrb[28].mxu1 %v9543_v35  ;;  %v2904_v32 = vsel %vm303_vm9, %v2903_v31, %v2902_v8  ;;  %v10541_v31 = vld [vmem:[#allocation31_spill] sm:$0xff]  ;;  %v10542_v8 = vld [vmem:[#allocation32_spill] sm:$0xff] }
 0x561   :  { %7516 = vmatpush1.bf16.msra.mxu0 %v10441_v30  ;;  %7547 = vmatpush3.bf16.msra.mxu1 %v10442_v61  ;;  %v2906_v17 = vsel %vm306_vm10, %v2905_v33, %v2904_v32  ;;  %v10543_v33 = vld [vmem:[#allocation33_spill] sm:$0xff]  ;;  %v10544_v32 = vld [vmem:[#allocation34_spill] sm:$0xff] }
 0x562   :  { %7518 = vmatprep.subr.bf16.mxu0 %v10483_v56  ;;  %7548 = vmatprep.subr.bf16.mxu1 %v10402_v44 }
 0x563   :  { %2778 = vmatprep.mubr.f32.mxu0 %v10404_v50  ;;  %6406 = vmatprep.mubr.msk.f32.mxu1 %vm8674_vm1, %v10404_v50 }
 0x565   :  { %7520 = vmatpush1.bf16.msra.mxu0 %v10484_v16  ;;  %7550 = vmatpush3.bf16.msra.mxu1 %v10485_v0 }
 0x566   :  { %7522 = vmatprep.subr.bf16.mxu0 %v10486_v34  ;;  %7551 = vmatprep.subr.bf16.mxu1 %v10402_v44 }
 0x569   :  { %7524 = vmatpush1.bf16.msra.mxu0 %v10487_v41  ;;  %7553 = vmatpush3.bf16.msra.mxu1 %v10488_v37 }
 0x56a   :  { %7526 = vmatprep.subr.bf16.mxu0 %v10489_v48  ;;  %7554 = vmatprep.subr.bf16.mxu1 %v10402_v44 }
 0x56d   :  { %7528 = vmatpush1.bf16.msra.mxu0 %v10490_v43  ;;  %7556 = vmatpush3.bf16.msra.mxu1 %v10491_v12 }
 0x56e   :  { %7530 = vmatprep.subr.bf16.mxu0 %v10492_v21  ;;  %7557 = vmatprep.subr.bf16.mxu1 %v10402_v44 }
 0x571   :  { %7532 = vmatpush1.bf16.msra.mxu0 %v10453_v51  ;;  %7559 = vmatpush3.bf16.msra.mxu1 %v10454_v25 }
 0x572   :  { %7534 = vmatprep.subr.bf16.mxu0 %v10455_v5  ;;  %7560 = vmatprep.subr.bf16.mxu1 %v10402_v44 }
 0x575   :  { %7536 = vmatpush1.bf16.msra.mxu0 %v10456_v1  ;;  %7562 = vmatpush3.bf16.msra.mxu1 %v10457_v40 }
 0x576   :  { %7538 = vmatprep.subr.bf16.mxu0 %v9094_v13  ;;  %7563 = vmatprep.subr.bf16.mxu1 %v10402_v44 }
 0x579   :  { %7540 = vmatpush1.bf16.msra.mxu0 %v9099_v22  ;;  %7565 = vmatpush3.bf16.msra.mxu1 %v9101_v57 }
 0x57a   :  { %7542 = vmatprep.subr.bf16.mxu0 %v9106_v60  ;;  %7566 = vmatprep.subr.bf16.mxu1 %v10402_v44 }
 0x57d   :  { %7544 = vmatpush1.bf16.msra.mxu0 %v9111_v9  ;;  %7568 = vmatpush3.bf16.msra.mxu1 %v9113_v14 }
 0x57e   :  { %7571 = vmatprep.subr.msk.bf16.mxu0 %vm8803_vm3, %v8807_v6  ;;  %7575 = vmatprep.subr.bf16.mxu1 %v10402_v44 }
 0x580   :  { %2779 = vmatmul.mubr.f32.vlgmr.msra.gmra.mrb[14].mxu0 %v9533_v7  ;;  %6407 = vmatmul.mubr.f32.vlgmr.msra.gmra.mrb[30].mxu1 %v9533_v7 }
 0x581   :  { %7574 = vmatpush1.bf16.msk.msra.mxu0 %vm8803_vm3, %v8809_v10  ;;  %7578 = vmatpush3.bf16.msk.msra.mxu1 %vm8803_vm3, %v8835_v47 }
 0x582   :  { %2973 = vmatprep.mubr.f32.mxu0 %v10404_v50  ;;  %6413 = vmatprep.mubr.msk.f32.mxu1 %vm8674_vm1, %v10404_v50 }
 0x583   :  { %7580 = vmatprep.subr.bf16.mxu0 %v8811_v11  ;;  %7611 = vmatprep.subr.bf16.mxu1 %v10402_v44 }
 0x584   :  { %5495 = vmatmul.mubr.msk.f32.vlgmr.msra.gmra.mrb[16].mxu0 %vm308_vm11, %v2906_v17  ;;  %6414 = vmatmul.mubr.msk.f32.vlgmr.msra.gmra.mrb[32].mxu1 %vm308_vm11, %v2906_v17  ;;  %v10545_v17 = vld [vmem:[#allocation35_spill] sm:$0xff] }
 0x585   :  { %7582 = vmatpush1.bf16.msra.mxu0 %v8825_v36  ;;  %7613 = vmatpush3.bf16.msra.mxu1 %v8844_v55 }
 0x586   :  { %7584 = vmatprep.subr.bf16.mxu0 %v8828_v38  ;;  %7614 = vmatprep.subr.bf16.mxu1 %v10402_v44 }
 0x587   :  { %3114 = vmatprep.mubr.f32.mxu0 %v10404_v50  ;;  %6448 = vmatprep.mubr.msk.f32.mxu1 %vm8674_vm1, %v10404_v50 }
 0x589   :  { %7586 = vmatpush1.bf16.msra.mxu0 %v8833_v46  ;;  %7616 = vmatpush3.bf16.msra.mxu1 %v8855_v3 }
 0x58a   :  { %7588 = vmatprep.subr.bf16.mxu0 %v8839_v49  ;;  %7617 = vmatprep.subr.bf16.mxu1 %v10402_v44 }
 0x58d   :  { %7590 = vmatpush1.bf16.msra.mxu0 %v8848_v58  ;;  %7619 = vmatpush3.bf16.msra.mxu1 %v8867_v15 }
 0x58e   :  { %7592 = vmatprep.subr.bf16.mxu0 %v10527_v53  ;;  %7620 = vmatprep.subr.bf16.mxu1 %v10402_v44 }
 0x591   :  { %7594 = vmatpush1.bf16.msra.mxu0 %v10528_v59  ;;  %7622 = vmatpush3.bf16.msra.mxu1 %v10529_v24 }
 0x592   :  { %7596 = vmatprep.subr.bf16.mxu0 %v10530_v45  ;;  %7623 = vmatprep.subr.bf16.mxu1 %v10402_v44 }
 0x595   :  { %7598 = vmatpush1.bf16.msra.mxu0 %v10531_v28  ;;  %7625 = vmatpush3.bf16.msra.mxu1 %v10532_v23 }
 0x596   :  { %7600 = vmatprep.subr.bf16.mxu0 %v10533_v42  ;;  %7626 = vmatprep.subr.bf16.mxu1 %v10402_v44 }
 0x599   :  { %7602 = vmatpush1.bf16.msra.mxu0 %v10534_v27  ;;  %7628 = vmatpush3.bf16.msra.mxu1 %v10535_v19  ;;  %v10567_v19 = vld [vmem:[#allocation57_spill] sm:$0xff] }
 0x59a   :  { %7604 = vmatprep.subr.bf16.mxu0 %v10536_v18  ;;  %7629 = vmatprep.subr.bf16.mxu1 %v10402_v44 }
 0x59d   :  { %7606 = vmatpush1.bf16.msra.mxu0 %v10537_v39  ;;  %7631 = vmatpush3.bf16.msra.mxu1 %v10538_v62  ;;  %v10553_v62 = vld [vmem:[#allocation43_spill] sm:$0xff]  ;;  %v10554_v39 = vld [vmem:[#allocation44_spill] sm:$0xff] }
 0x59e   :  { %7608 = vmatprep.subr.bf16.mxu0 %v10539_v52  ;;  %7632 = vmatprep.subr.bf16.mxu1 %v10402_v44  ;;  %v10552_v52 = vld [vmem:[#allocation42_spill] sm:$0xff] }
 0x5a1   :  { %7610 = vmatpush1.bf16.msra.mxu0 %v10540_v26  ;;  %7634 = vmatpush3.bf16.msra.mxu1 %v10541_v31  ;;  %v10547_v31 = vld [vmem:[#allocation37_spill] sm:$0xff]  ;;  %v10548_v26 = vld [vmem:[#allocation38_spill] sm:$0xff] }
 0x5a2   :  { %7636 = vmatprep.subr.bf16.mxu0 %v10542_v8  ;;  %7667 = vmatprep.subr.bf16.mxu1 %v10402_v44  ;;  %v10546_v8 = vld [vmem:[#allocation36_spill] sm:$0xff] }
 0x5a4   :  { %3115 = vmatmul.mubr.f32.vlgmr.msra.gmra.mrb[16].mxu0 %v9543_v35  ;;  %6449 = vmatmul.mubr.f32.vlgmr.msra.gmra.mrb[34].mxu1 %v9543_v35 }
 0x5a5   :  { %7638 = vmatpush1.bf16.msra.mxu0 %v10543_v33  ;;  %7669 = vmatpush3.bf16.msra.mxu1 %v10544_v32  ;;  %v10549_v33 = vld [vmem:[#allocation39_spill] sm:$0xff]  ;;  %v10550_v32 = vld [vmem:[#allocation40_spill] sm:$0xff] }
 0x5a6   :  { %7640 = vmatprep.subr.bf16.mxu0 %v10545_v17  ;;  %7670 = vmatprep.subr.bf16.mxu1 %v10402_v44  ;;  %v10551_v17 = vld [vmem:[#allocation41_spill] sm:$0xff] }
 0x5a7   :  { %3277 = vmatprep.mubr.f32.mxu0 %v10404_v50  ;;  %6483 = vmatprep.mubr.msk.f32.mxu1 %vm8674_vm1, %v10404_v50 }
 0x5a9   :  { %7642 = vmatpush1.bf16.msra.mxu0 %v10546_v8  ;;  %7672 = vmatpush3.bf16.msra.mxu1 %v10547_v31  ;;  %v10555_v31 = vld [vmem:[#allocation45_spill] sm:$0xff]  ;;  %v10557_v8 = vld [vmem:[#allocation47_spill] sm:$0xff] }
 0x5aa   :  { %7644 = vmatprep.subr.bf16.mxu0 %v10548_v26  ;;  %7673 = vmatprep.subr.bf16.mxu1 %v10402_v44  ;;  %v10556_v26 = vld [vmem:[#allocation46_spill] sm:$0xff] }
 0x5ad   :  { %7646 = vmatpush1.bf16.msra.mxu0 %v10549_v33  ;;  %7675 = vmatpush3.bf16.msra.mxu1 %v10550_v32  ;;  %v10558_v32 = vld [vmem:[#allocation48_spill] sm:$0xff]  ;;  %v10560_v33 = vld [vmem:[#allocation50_spill] sm:$0xff] }
 0x5ae   :  { %7648 = vmatprep.subr.bf16.mxu0 %v10551_v17  ;;  %7676 = vmatprep.subr.bf16.mxu1 %v10402_v44  ;;  %v10559_v17 = vld [vmem:[#allocation49_spill] sm:$0xff] }
 0x5b1   :  { %7650 = vmatpush1.bf16.msra.mxu0 %v10552_v52  ;;  %7678 = vmatpush3.bf16.msra.mxu1 %v10553_v62  ;;  %v10561_v62 = vld [vmem:[#allocation51_spill] sm:$0xff]  ;;  %v10563_v52 = vld [vmem:[#allocation53_spill] sm:$0xff] }
 0x5b2   :  { %7652 = vmatprep.subr.bf16.mxu0 %v10554_v39  ;;  %7679 = vmatprep.subr.bf16.mxu1 %v10402_v44  ;;  %v10562_v39 = vld [vmem:[#allocation52_spill] sm:$0xff] }
 0x5b5   :  { %7654 = vmatpush1.bf16.msra.mxu0 %v10555_v31  ;;  %7681 = vmatpush3.bf16.msra.mxu1 %v10556_v26  ;;  %v10564_v26 = vld [vmem:[#allocation54_spill] sm:$0xff]  ;;  %v10566_v31 = vld [vmem:[#allocation56_spill] sm:$0xff] }
 0x5b6   :  { %7656 = vmatprep.subr.bf16.mxu0 %v10557_v8  ;;  %7682 = vmatprep.subr.bf16.mxu1 %v10402_v44  ;;  %v10565_v8 = vld [vmem:[#allocation55_spill] sm:$0xff] }
 0x5b9   :  { %7658 = vmatpush1.bf16.msra.mxu0 %v10558_v32  ;;  %7684 = vmatpush3.bf16.msra.mxu1 %v10559_v17 }
 0x5ba   :  { %7660 = vmatprep.subr.bf16.mxu0 %v10560_v33  ;;  %7685 = vmatprep.subr.bf16.mxu1 %v10402_v44 }
 0x5bd   :  { %7662 = vmatpush1.bf16.msra.mxu0 %v10561_v62  ;;  %7687 = vmatpush3.bf16.msra.mxu1 %v10562_v39 }
 0x5be   :  { %7664 = vmatprep.subr.bf16.mxu0 %v10563_v52  ;;  %7688 = vmatprep.subr.bf16.mxu1 %v10402_v44  ;;  %v10568_v52 = vld [vmem:[#allocation79_spill] sm:$0xff] }
 0x5c1   :  { %7666 = vmatpush1.bf16.msra.mxu0 %v10564_v26  ;;  %7690 = vmatpush3.bf16.msra.mxu1 %v10565_v8 }
 0x5c2   :  { %7692 = vmatprep.subr.bf16.mxu0 %v10566_v31  ;;  %7723 = vmatprep.subr.bf16.mxu1 %v10402_v44 }
 0x633   :  { %v2710_v17 = vpop.f32.mrb[28].mxu1 }
 0x634   :  { %v6373_v33 = vpop.f32.mrb[29].mxu1 }
 0x635   :  { %v9683_v33 = vld [vmem:[%s10206_s8] ss:$0 sm:$0xff] }
 0x636   :  { %10569 = vst [vmem:[#allocation59_spill] sm:$0xff] %v9683_v33 }
 0x653   :  { %v2780_v32 = vpop.f32.mrb[14].mxu0  ;;  %v2851_v18 = vpop.f32.mrb[30].mxu1 }
 0x654   :  { %v8295_v62 = vadd.f32 %v2780_v32, %v10567_v19  ;;  %v2782_v27 = vpop.f32.mrb[15].mxu0  ;;  %v6408_v39 = vpop.f32.mrb[31].mxu1 }
 0x655   :  { %v8296_v23 = vadd.f32 %v2782_v27, %v10568_v52  ;;  %v2869_v39 = vadd.f32 %v9683_v33, %v2851_v18  ;;  %v2711_v27 = vadd.f32 %v2710_v17, %v9233_v63 }
 0x656   :  { %v5491_v42 = vmul.f32 -1.442695, %v8295_v62 }
 0x657   :  { %v3046_v28 = vpop.f32.mrb[32].mxu1  ;;  %v5492_v45 = vmul.f32 -1.442695, %v8296_v23 }
 0x658   :  { %8429 = vpow2.f32 %v5491_v42  ;;  %v6415_v26 = vpop.f32.mrb[33].mxu1 }
 0x659   :  { %8431 = vpow2.f32 %v5492_v45 }
 0x662   :  { %v8430_v8 = vpop.eup %8429 }
 0x663   :  { %v2863_v31 = vadd.f32 1.0, %v8430_v8  ;;  %v8432_v24 = vpop.eup %8431 }
 0x664   :  { %v2864_v59 = vadd.f32 1.0, %v8432_v24 }
 0x665   :  { %8433 = vrcp.f32 %v2863_v31 }
 0x666   :  { %8435 = vrcp.f32 %v2864_v59 }
 0x66f   :  { %v8434_v62 = vpop.eup %8433 }
 0x670   :  { %v2870_v32 = vmul.f32 %v8434_v62, %v2869_v39  ;;  %v8436_v8 = vpop.eup %8435 }
 0x671   :  { %v2873_v53 = vsub.f32 1.0, %v8436_v8  ;;  %v2875_v17 = vmul.f32 %v8436_v8, %v9533_v7  ;;  %v3517_v8 = vld [vmem:[#allocation2 + $0x5] sm:$0x1] }
 0x672   :  { %v2871_v42 = vadd.f32 %v2870_v32, %v2711_v27 }
 0x674   :  { %8437 = vtanh.f32 %v2871_v42 }
 0x677   :  { %v3116_v45 = vpop.f32.mrb[16].mxu0  ;;  %v3187_v23 = vpop.f32.mrb[34].mxu1 }
 0x678   :  { %v8297_v26 = vadd.f32 %v3116_v45, %v10482_v4  ;;  %v3118_v31 = vpop.f32.mrb[17].mxu0  ;;  %v6450_v24 = vpop.f32.mrb[35].mxu1  ;;  %v3205_v42 = vadd.f32 %v9538_v20, %v3187_v23 }
 0x679   :  { %v8298_v19 = vadd.f32 %v3118_v31, %v10438_v29 }
 0x67a   :  { %v5498_v52 = vmul.f32 -1.442695, %v8297_v26  ;;  %v3047_v26 = vadd.f32 %v3046_v28, %v10440_v54  ;;  %v3519_v28 = vld [vmem:[#allocation2 + $0x15] sm:$0x1] }
 0x67b   :  { %v5499_v33 = vmul.f32 -1.442695, %v8298_v19 }
 0x67c   :  { %8439 = vpow2.f32 %v5498_v52 }
 0x67d   :  { %8441 = vpow2.f32 %v5499_v33 }
 0x67e   :  { %v8438_v18 = vpop.eup %8437 }
 0x67f   :  { %v2874_v15 = vmul.f32 %v8438_v18, %v2873_v53  ;;  %v3520_v18 = vld [vmem:[#allocation2 + $0x1d] sm:$0x1] }
 0x681   :  { %v9690_v59 = vadd.f32 %v2875_v17, %v2874_v15  ;;  %v3535_v17 = vrot.slane %v3519_v28, 6 }
 0x686   :  { %v8440_v39 = vpop.eup %8439 }
 0x687   :  { %v3199_v62 = vadd.f32 1.0, %v8440_v39  ;;  %v8442_v27 = vpop.eup %8441 }
 0x688   :  { %v3200_v32 = vadd.f32 1.0, %v8442_v27  ;;  %v3537_v27 = vrot.slane %v3520_v18, 5  ;;  %v10572_v18 = vld [vmem:[#allocation17_spill] sm:$0xff] }
 0x689   :  { %8443 = vrcp.f32 %v3199_v62  ;;  %v3521_v62 = vld [vmem:[#allocation2 + $0x25] sm:$0x1] }
 0x68a   :  { %8445 = vrcp.f32 %v3200_v32 }
 0x693   :  { %v8444_v45 = vpop.eup %8443 }
 0x694   :  { %v3206_v52 = vmul.f32 %v8444_v45, %v3205_v42  ;;  %v8446_v53 = vpop.eup %8445  ;;  %v3522_v42 = vld [vmem:[#allocation2 + $0x2d] sm:$0x1]  ;;  %v3539_v45 = vrot.slane %v3521_v62, 4  ;;  %v10575_v62 = vld [vmem:[#allocation20_spill] sm:$0xff] }
 0x695   :  { %v3209_v19 = vsub.f32 1.0, %v8446_v53  ;;  %v3211_v33 = vmul.f32 %v8446_v53, %v9543_v35  ;;  %v3518_v35 = vld [vmem:[#allocation2 + $0xd] sm:$0x1] }
 0x696   :  { %v3207_v31 = vadd.f32 %v3206_v52, %v3047_v26  ;;  %v3533_v23 = vrot.slane %v3518_v35, 7  ;;  %v3523_v52 = vld [vmem:[#allocation2 + $0x35] sm:$0x1] }
 0x698   :  { %8447 = vtanh.f32 %v3207_v31  ;;  %v3534_v39 = vsel %vm288_vm4, %v3533_v23, %v3517_v8  ;;  %v3541_v31 = vrot.slane %v3522_v42, 3  ;;  %v10570_v23 = vld [vmem:[#allocation19_spill] sm:$0xff]  ;;  %v10571_v8 = vld [vmem:[#allocation16_spill] sm:$0xff] }
 0x699   :  { %v3536_v32 = vsel %vm291_vm5, %v3535_v17, %v3534_v39  ;;  %v10573_v17 = vld [vmem:[#allocation22_spill] sm:$0xff]  ;;  %v10578_v42 = vld [vmem:[#allocation23_spill] sm:$0xff] }
 0x69a   :  { %v3538_v26 = vsel %vm294_vm6, %v3537_v27, %v3536_v32  ;;  %v10574_v39 = vld [vmem:[#allocation18_spill] sm:$0xff]  ;;  %v10576_v27 = vld [vmem:[#allocation25_spill] sm:$0xff] }
 0x69b   :  { %v3540_v53 = vsel %vm297_vm7, %v3539_v45, %v3538_v26  ;;  %v10577_v32 = vld [vmem:[#allocation21_spill] sm:$0xff]  ;;  %v10579_v45 = vld [vmem:[#allocation28_spill] sm:$0xff] }
 0x69c   :  { %v10580_v26 = vld [vmem:[#allocation24_spill] sm:$0xff] }
 0x6a2   :  { %v8448_v7 = vpop.eup %8447 }
 0x6a3   :  { %v3210_v15 = vmul.f32 %v8448_v7, %v3209_v19  ;;  %v3524_v19 = vld [vmem:[#allocation2 + $0x3d] sm:$0x1]  ;;  %v3543_v7 = vrot.slane %v3523_v52, 2  ;;  %v10581_v52 = vld [vmem:[#allocation26_spill] sm:$0xff] }
 0x6a5   :  { %v9695_v24 = vadd.f32 %v3211_v33, %v3210_v15  ;;  %v3542_v15 = vsel %vm300_vm8, %v3541_v31, %v3540_v53  ;;  %v3545_v33 = vrot.slane %v3524_v19, 1  ;;  %v10582_v31 = vld [vmem:[#allocation30_spill] sm:$0xff]  ;;  %v10583_v53 = vld [vmem:[#allocation27_spill] sm:$0xff]  ;;  %v10584_v19 = vld [vmem:[#allocation29_spill] sm:$0xff] }
 0x6a6   :  { %v3544_v35 = vsel %vm303_vm9, %v3543_v7, %v3542_v15  ;;  %v10585_v7 = vld [vmem:[#allocation31_spill] sm:$0xff]  ;;  %v10586_v15 = vld [vmem:[#allocation32_spill] sm:$0xff] }
 0x6a7   :  { %3278 = vmatmul.mubr.f32.vlgmr.msra.gmra.mrb[18].mxu0 %v9695_v24  ;;  %6484 = vmatmul.mubr.f32.vlgmr.msra.gmra.mrb[36].mxu1 %v9695_v24  ;;  %v3546_v28 = vsel %vm306_vm10, %v3545_v33, %v3544_v35  ;;  %v10587_v33 = vld [vmem:[#allocation33_spill] sm:$0xff]  ;;  %v10588_v35 = vld [vmem:[#allocation34_spill] sm:$0xff] }
 0x6a8   :  { %7694 = vmatpush1.bf16.msra.mxu0 %v10441_v30  ;;  %7725 = vmatpush3.bf16.msra.mxu1 %v10442_v61 }
 0x6a9   :  { %7696 = vmatprep.subr.bf16.mxu0 %v10483_v56  ;;  %7726 = vmatprep.subr.bf16.mxu1 %v10402_v44 }
 0x6aa   :  { %3418 = vmatprep.mubr.f32.mxu0 %v10404_v50  ;;  %6518 = vmatprep.mubr.msk.f32.mxu1 %vm8674_vm1, %v10404_v50 }
 0x6ac   :  { %7698 = vmatpush1.bf16.msra.mxu0 %v10484_v16  ;;  %7728 = vmatpush3.bf16.msra.mxu1 %v10485_v0 }
 0x6ad   :  { %7700 = vmatprep.subr.bf16.mxu0 %v10486_v34  ;;  %7729 = vmatprep.subr.bf16.mxu1 %v10402_v44 }
 0x6b0   :  { %7702 = vmatpush1.bf16.msra.mxu0 %v10487_v41  ;;  %7731 = vmatpush3.bf16.msra.mxu1 %v10488_v37 }
 0x6b1   :  { %7704 = vmatprep.subr.bf16.mxu0 %v10489_v48  ;;  %7732 = vmatprep.subr.bf16.mxu1 %v10402_v44 }
 0x6b4   :  { %7706 = vmatpush1.bf16.msra.mxu0 %v10490_v43  ;;  %7734 = vmatpush3.bf16.msra.mxu1 %v10491_v12 }
 0x6b5   :  { %7708 = vmatprep.subr.bf16.mxu0 %v10492_v21  ;;  %7735 = vmatprep.subr.bf16.mxu1 %v10402_v44 }
 0x6b8   :  { %7710 = vmatpush1.bf16.msra.mxu0 %v10453_v51  ;;  %7737 = vmatpush3.bf16.msra.mxu1 %v10454_v25 }
 0x6b9   :  { %7712 = vmatprep.subr.bf16.mxu0 %v10455_v5  ;;  %7738 = vmatprep.subr.bf16.mxu1 %v10402_v44 }
 0x6bc   :  { %7714 = vmatpush1.bf16.msra.mxu0 %v10456_v1  ;;  %7740 = vmatpush3.bf16.msra.mxu1 %v10457_v40 }
 0x6bd   :  { %7716 = vmatprep.subr.bf16.mxu0 %v9094_v13  ;;  %7741 = vmatprep.subr.bf16.mxu1 %v10402_v44 }
 0x6c0   :  { %7718 = vmatpush1.bf16.msra.mxu0 %v9099_v22  ;;  %7743 = vmatpush3.bf16.msra.mxu1 %v9101_v57 }
 0x6c1   :  { %7720 = vmatprep.subr.bf16.mxu0 %v9106_v60  ;;  %7744 = vmatprep.subr.bf16.mxu1 %v10402_v44 }
 0x6c4   :  { %7722 = vmatpush1.bf16.msra.mxu0 %v9111_v9  ;;  %7746 = vmatpush3.bf16.msra.mxu1 %v9113_v14 }
 0x6c5   :  { %7749 = vmatprep.subr.msk.bf16.mxu0 %vm8803_vm3, %v8807_v6  ;;  %7753 = vmatprep.subr.bf16.mxu1 %v10402_v44 }
 0x6c7   :  { %3419 = vmatmul.mubr.f32.vlgmr.msra.gmra.mrb[18].mxu0 %v9690_v59  ;;  %6519 = vmatmul.mubr.f32.vlgmr.msra.gmra.mrb[38].mxu1 %v9690_v59 }
 0x6c8   :  { %7752 = vmatpush1.bf16.msk.msra.mxu0 %vm8803_vm3, %v8809_v10  ;;  %7756 = vmatpush3.bf16.msk.msra.mxu1 %vm8803_vm3, %v8835_v47 }
 0x6c9   :  { %3613 = vmatprep.mubr.f32.mxu0 %v10404_v50  ;;  %6525 = vmatprep.mubr.msk.f32.mxu1 %vm8674_vm1, %v10404_v50 }
 0x6ca   :  { %7758 = vmatprep.subr.bf16.mxu0 %v8811_v11  ;;  %7789 = vmatprep.subr.bf16.mxu1 %v10402_v44 }
 0x6cb   :  { %5504 = vmatmul.mubr.msk.f32.vlgmr.msra.gmra.mrb[20].mxu0 %vm308_vm11, %v3546_v28  ;;  %6526 = vmatmul.mubr.msk.f32.vlgmr.msra.gmra.mrb[40].mxu1 %vm308_vm11, %v3546_v28  ;;  %v10589_v28 = vld [vmem:[#allocation35_spill] sm:$0xff] }
 0x6cc   :  { %7760 = vmatpush1.bf16.msra.mxu0 %v8825_v36  ;;  %7791 = vmatpush3.bf16.msra.mxu1 %v8844_v55 }
 0x6cd   :  { %7762 = vmatprep.subr.bf16.mxu0 %v8828_v38  ;;  %7792 = vmatprep.subr.bf16.mxu1 %v10402_v44 }
 0x6ce   :  { %3754 = vmatprep.mubr.f32.mxu0 %v10404_v50  ;;  %6560 = vmatprep.mubr.msk.f32.mxu1 %vm8674_vm1, %v10404_v50 }
 0x6d0   :  { %7764 = vmatpush1.bf16.msra.mxu0 %v8833_v46  ;;  %7794 = vmatpush3.bf16.msra.mxu1 %v8855_v3 }
 0x6d1   :  { %7766 = vmatprep.subr.bf16.mxu0 %v8839_v49  ;;  %7795 = vmatprep.subr.bf16.mxu1 %v10402_v44 }
 0x6d4   :  { %7768 = vmatpush1.bf16.msra.mxu0 %v8848_v58  ;;  %7797 = vmatpush3.bf16.msra.mxu1 %v10570_v23 }
 0x6d5   :  { %7770 = vmatprep.subr.bf16.mxu0 %v10571_v8  ;;  %7798 = vmatprep.subr.bf16.mxu1 %v10402_v44 }
 0x6d8   :  { %7772 = vmatpush1.bf16.msra.mxu0 %v10572_v18  ;;  %7800 = vmatpush3.bf16.msra.mxu1 %v10573_v17 }
 0x6d9   :  { %7774 = vmatprep.subr.bf16.mxu0 %v10574_v39  ;;  %7801 = vmatprep.subr.bf16.mxu1 %v10402_v44 }
 0x6dc   :  { %7776 = vmatpush1.bf16.msra.mxu0 %v10575_v62  ;;  %7803 = vmatpush3.bf16.msra.mxu1 %v10576_v27 }
 0x6dd   :  { %7778 = vmatprep.subr.bf16.mxu0 %v10577_v32  ;;  %7804 = vmatprep.subr.bf16.mxu1 %v10402_v44 }
 0x6e0   :  { %7780 = vmatpush1.bf16.msra.mxu0 %v10578_v42  ;;  %7806 = vmatpush3.bf16.msra.mxu1 %v10579_v45  ;;  %v10611_v45 = vld [vmem:[#allocation57_spill] sm:$0xff] }
 0x6e1   :  { %7782 = vmatprep.subr.bf16.mxu0 %v10580_v26  ;;  %7807 = vmatprep.subr.bf16.mxu1 %v10402_v44 }
 0x6e4   :  { %7784 = vmatpush1.bf16.msra.mxu0 %v10581_v52  ;;  %7809 = vmatpush3.bf16.msra.mxu1 %v10582_v31  ;;  %v10597_v31 = vld [vmem:[#allocation43_spill] sm:$0xff]  ;;  %v10598_v52 = vld [vmem:[#allocation44_spill] sm:$0xff] }
 0x6e5   :  { %7786 = vmatprep.subr.bf16.mxu0 %v10583_v53  ;;  %7810 = vmatprep.subr.bf16.mxu1 %v10402_v44  ;;  %v10596_v53 = vld [vmem:[#allocation42_spill] sm:$0xff] }
 0x6e8   :  { %7788 = vmatpush1.bf16.msra.mxu0 %v10584_v19  ;;  %7812 = vmatpush3.bf16.msra.mxu1 %v10585_v7  ;;  %v10591_v7 = vld [vmem:[#allocation37_spill] sm:$0xff]  ;;  %v10592_v19 = vld [vmem:[#allocation38_spill] sm:$0xff] }
 0x6e9   :  { %7814 = vmatprep.subr.bf16.mxu0 %v10586_v15  ;;  %7845 = vmatprep.subr.bf16.mxu1 %v10402_v44  ;;  %v10590_v15 = vld [vmem:[#allocation36_spill] sm:$0xff] }
 0x6eb   :  { %3755 = vmatmul.mubr.f32.vlgmr.msra.gmra.mrb[20].mxu0 %v9695_v24  ;;  %6561 = vmatmul.mubr.f32.vlgmr.msra.gmra.mrb[42].mxu1 %v9695_v24 }
 0x6ec   :  { %7816 = vmatpush1.bf16.msra.mxu0 %v10587_v33  ;;  %7847 = vmatpush3.bf16.msra.mxu1 %v10588_v35  ;;  %v10593_v33 = vld [vmem:[#allocation39_spill] sm:$0xff]  ;;  %v10594_v35 = vld [vmem:[#allocation40_spill] sm:$0xff] }
 0x6ed   :  { %7818 = vmatprep.subr.bf16.mxu0 %v10589_v28  ;;  %7848 = vmatprep.subr.bf16.mxu1 %v10402_v44  ;;  %v10595_v28 = vld [vmem:[#allocation41_spill] sm:$0xff] }
 0x6ee   :  { %3917 = vmatprep.mubr.f32.mxu0 %v10404_v50  ;;  %6595 = vmatprep.mubr.msk.f32.mxu1 %vm8674_vm1, %v10404_v50 }
 0x6f0   :  { %7820 = vmatpush1.bf16.msra.mxu0 %v10590_v15  ;;  %7850 = vmatpush3.bf16.msra.mxu1 %v10591_v7  ;;  %v10599_v7 = vld [vmem:[#allocation45_spill] sm:$0xff]  ;;  %v10601_v15 = vld [vmem:[#allocation47_spill] sm:$0xff] }
 0x6f1   :  { %7822 = vmatprep.subr.bf16.mxu0 %v10592_v19  ;;  %7851 = vmatprep.subr.bf16.mxu1 %v10402_v44  ;;  %v10600_v19 = vld [vmem:[#allocation46_spill] sm:$0xff] }
 0x6f4   :  { %7824 = vmatpush1.bf16.msra.mxu0 %v10593_v33  ;;  %7853 = vmatpush3.bf16.msra.mxu1 %v10594_v35  ;;  %v10602_v35 = vld [vmem:[#allocation48_spill] sm:$0xff]  ;;  %v10604_v33 = vld [vmem:[#allocation50_spill] sm:$0xff] }
 0x6f5   :  { %7826 = vmatprep.subr.bf16.mxu0 %v10595_v28  ;;  %7854 = vmatprep.subr.bf16.mxu1 %v10402_v44  ;;  %v10603_v28 = vld [vmem:[#allocation49_spill] sm:$0xff] }
 0x6f8   :  { %7828 = vmatpush1.bf16.msra.mxu0 %v10596_v53  ;;  %7856 = vmatpush3.bf16.msra.mxu1 %v10597_v31  ;;  %v10605_v31 = vld [vmem:[#allocation51_spill] sm:$0xff]  ;;  %v10607_v53 = vld [vmem:[#allocation53_spill] sm:$0xff] }
 0x6f9   :  { %7830 = vmatprep.subr.bf16.mxu0 %v10598_v52  ;;  %7857 = vmatprep.subr.bf16.mxu1 %v10402_v44  ;;  %v10606_v52 = vld [vmem:[#allocation52_spill] sm:$0xff] }
 0x6fc   :  { %7832 = vmatpush1.bf16.msra.mxu0 %v10599_v7  ;;  %7859 = vmatpush3.bf16.msra.mxu1 %v10600_v19  ;;  %v10608_v19 = vld [vmem:[#allocation54_spill] sm:$0xff]  ;;  %v10610_v7 = vld [vmem:[#allocation56_spill] sm:$0xff] }
 0x6fd   :  { %7834 = vmatprep.subr.bf16.mxu0 %v10601_v15  ;;  %7860 = vmatprep.subr.bf16.mxu1 %v10402_v44  ;;  %v10609_v15 = vld [vmem:[#allocation55_spill] sm:$0xff] }
 0x700   :  { %7836 = vmatpush1.bf16.msra.mxu0 %v10602_v35  ;;  %7862 = vmatpush3.bf16.msra.mxu1 %v10603_v28 }
 0x701   :  { %7838 = vmatprep.subr.bf16.mxu0 %v10604_v33  ;;  %7863 = vmatprep.subr.bf16.mxu1 %v10402_v44 }
 0x704   :  { %7840 = vmatpush1.bf16.msra.mxu0 %v10605_v31  ;;  %7865 = vmatpush3.bf16.msra.mxu1 %v10606_v52 }
 0x705   :  { %7842 = vmatprep.subr.bf16.mxu0 %v10607_v53  ;;  %7866 = vmatprep.subr.bf16.mxu1 %v10402_v44  ;;  %v10612_v53 = vld [vmem:[#allocation79_spill] sm:$0xff] }
 0x708   :  { %7844 = vmatpush1.bf16.msra.mxu0 %v10608_v19  ;;  %7868 = vmatpush3.bf16.msra.mxu1 %v10609_v15 }
 0x709   :  { %7870 = vmatprep.subr.bf16.mxu0 %v10610_v7  ;;  %7901 = vmatprep.subr.bf16.mxu1 %v10402_v44 }
 0x77a   :  { %v3350_v28 = vpop.f32.mrb[36].mxu1 }
 0x77b   :  { %v6485_v33 = vpop.f32.mrb[37].mxu1 }
 0x77c   :  { %v10613_v33 = vld [vmem:[#allocation59_spill] sm:$0xff] }
 0x79a   :  { %v3420_v35 = vpop.f32.mrb[18].mxu0  ;;  %v3491_v26 = vpop.f32.mrb[38].mxu1 }
 0x79b   :  { %v8299_v31 = vadd.f32 %v3420_v35, %v10611_v45  ;;  %v3422_v42 = vpop.f32.mrb[19].mxu0  ;;  %v6520_v52 = vpop.f32.mrb[39].mxu1  ;;  %v3509_v8 = vadd.f32 %v10613_v33, %v3491_v26  ;;  %v3351_v35 = vadd.f32 %v3350_v28, %v9233_v63 }
 0x79c   :  { %v8300_v27 = vadd.f32 %v3422_v42, %v10612_v53 }
 0x79d   :  { %v5500_v32 = vmul.f32 -1.442695, %v8299_v31 }
 0x79e   :  { %v3686_v62 = vpop.f32.mrb[40].mxu1  ;;  %v5501_v39 = vmul.f32 -1.442695, %v8300_v27 }
 0x79f   :  { %8449 = vpow2.f32 %v5500_v32  ;;  %v6527_v19 = vpop.f32.mrb[41].mxu1 }
 0x7a0   :  { %8451 = vpow2.f32 %v5501_v39 }
 0x7a9   :  { %v8450_v15 = vpop.eup %8449 }
 0x7aa   :  { %v3503_v7 = vadd.f32 1.0, %v8450_v15  ;;  %v8452_v17 = vpop.eup %8451 }
 0x7ab   :  { %v3504_v18 = vadd.f32 1.0, %v8452_v17 }
 0x7ac   :  { %8453 = vrcp.f32 %v3503_v7 }
 0x7ad   :  { %8455 = vrcp.f32 %v3504_v18 }
 0x7b6   :  { %v8454_v23 = vpop.eup %8453 }
 0x7b7   :  { %v3510_v45 = vmul.f32 %v8454_v23, %v3509_v8  ;;  %v8456_v19 = vpop.eup %8455 }
 0x7b8   :  { %v3513_v17 = vsub.f32 1.0, %v8456_v19  ;;  %v3515_v23 = vmul.f32 %v8456_v19, %v9690_v59 }
 0x7b9   :  { %v3511_v52 = vadd.f32 %v3510_v45, %v3351_v35 }
 0x7bb   :  { %8457 = vtanh.f32 %v3511_v52 }
 0x7be   :  { %v3756_v42 = vpop.f32.mrb[20].mxu0  ;;  %v3827_v31 = vpop.f32.mrb[42].mxu1 }
 0x7bf   :  { %v8301_v32 = vadd.f32 %v3756_v42, %v10482_v4  ;;  %v3758_v27 = vpop.f32.mrb[21].mxu0  ;;  %v6562_v39 = vpop.f32.mrb[43].mxu1  ;;  %v3845_v52 = vadd.f32 %v9538_v20, %v3827_v31  ;;  %v4158_v20 = vld [vmem:[#allocation2 + $0xe] sm:$0x1]  ;;  %v4157_v31 = vld [vmem:[#allocation2 + $0x6] sm:$0x1] }
 0x7c0   :  { %v8302_v7 = vadd.f32 %v3758_v27, %v10438_v29 }
 0x7c1   :  { %v5507_v15 = vmul.f32 -1.442695, %v8301_v32  ;;  %v3687_v32 = vadd.f32 %v3686_v62, %v10440_v54  ;;  %v4173_v62 = vrot.slane %v4158_v20, 7 }
 0x7c2   :  { %v5508_v33 = vmul.f32 -1.442695, %v8302_v7 }
 0x7c3   :  { %8459 = vpow2.f32 %v5507_v15 }
 0x7c4   :  { %8461 = vpow2.f32 %v5508_v33 }
 0x7c5   :  { %v8458_v26 = vpop.eup %8457 }
 0x7c6   :  { %v3514_v53 = vmul.f32 %v8458_v26, %v3513_v17  ;;  %v4160_v17 = vld [vmem:[#allocation2 + $0x1e] sm:$0x1] }
 0x7c8   :  { %v9837_v8 = vadd.f32 %v3515_v23, %v3514_v53  ;;  %v4174_v23 = vsel %vm288_vm4, %v4173_v62, %v4157_v31  ;;  %v10615_v62 = vld [vmem:[#allocation16_spill] sm:$0xff]  ;;  %v10616_v31 = vld [vmem:[#allocation17_spill] sm:$0xff] }
 0x7cd   :  { %v8460_v18 = vpop.eup %8459 }
 0x7ce   :  { %v3839_v45 = vadd.f32 1.0, %v8460_v18  ;;  %v8462_v28 = vpop.eup %8461  ;;  %v4161_v18 = vld [vmem:[#allocation2 + $0x26] sm:$0x1] }
 0x7cf   :  { %v3840_v35 = vadd.f32 1.0, %v8462_v28 }
 0x7d0   :  { %8463 = vrcp.f32 %v3839_v45  ;;  %v4177_v45 = vrot.slane %v4160_v17, 5  ;;  %v10617_v17 = vld [vmem:[#allocation22_spill] sm:$0xff] }
 0x7d1   :  { %8465 = vrcp.f32 %v3840_v35  ;;  %v4162_v35 = vld [vmem:[#allocation2 + $0x2e] sm:$0x1] }
 0x7da   :  { %v8464_v42 = vpop.eup %8463 }
 0x7db   :  { %v3846_v27 = vmul.f32 %v8464_v42, %v3845_v52  ;;  %v8466_v15 = vpop.eup %8465  ;;  %v4179_v52 = vrot.slane %v4161_v18, 4  ;;  %v10620_v18 = vld [vmem:[#allocation25_spill] sm:$0xff] }
 0x7dc   :  { %v3849_v7 = vsub.f32 1.0, %v8466_v15  ;;  %v3851_v33 = vmul.f32 %v8466_v15, %v9695_v24  ;;  %v4159_v24 = vld [vmem:[#allocation2 + $0x16] sm:$0x1]  ;;  %v4164_v15 = vld [vmem:[#allocation2 + $0x3e] sm:$0x1] }
 0x7dd   :  { %v3847_v39 = vadd.f32 %v3846_v27, %v3687_v32  ;;  %v4175_v26 = vrot.slane %v4159_v24, 6  ;;  %v4163_v32 = vld [vmem:[#allocation2 + $0x36] sm:$0x1]  ;;  %v4181_v27 = vrot.slane %v4162_v35, 3  ;;  %v10623_v35 = vld [vmem:[#allocation28_spill] sm:$0xff] }
 0x7de   :  { %v10614_v24 = vld [vmem:[#allocation19_spill] sm:$0xff] }
 0x7df   :  { %8467 = vtanh.f32 %v3847_v39  ;;  %v4176_v28 = vsel %vm291_vm5, %v4175_v26, %v4174_v23  ;;  %v10618_v26 = vld [vmem:[#allocation18_spill] sm:$0xff]  ;;  %v10619_v23 = vld [vmem:[#allocation20_spill] sm:$0xff] }
 0x7e0   :  { %v4178_v42 = vsel %vm294_vm6, %v4177_v45, %v4176_v28  ;;  %v10621_v45 = vld [vmem:[#allocation21_spill] sm:$0xff]  ;;  %v10622_v28 = vld [vmem:[#allocation23_spill] sm:$0xff] }
 0x7e1   :  { %v4180_v39 = vsel %vm297_vm7, %v4179_v52, %v4178_v42  ;;  %v10624_v52 = vld [vmem:[#allocation24_spill] sm:$0xff]  ;;  %v10625_v42 = vld [vmem:[#allocation26_spill] sm:$0xff] }
 0x7e9   :  { %v8468_v59 = vpop.eup %8467 }
 0x7ea   :  { %v3850_v53 = vmul.f32 %v8468_v59, %v3849_v7  ;;  %v4183_v7 = vrot.slane %v4163_v32, 2  ;;  %v4182_v59 = vsel %vm300_vm8, %v4181_v27, %v4180_v39  ;;  %v10626_v32 = vld [vmem:[#allocation30_spill] sm:$0xff]  ;;  %v10627_v27 = vld [vmem:[#allocation27_spill] sm:$0xff]  ;;  %v10628_v39 = vld [vmem:[#allocation29_spill] sm:$0xff] }
 0x7ec   :  { %v9842_v19 = vadd.f32 %v3851_v33, %v3850_v53  ;;  %v4185_v53 = vrot.slane %v4164_v15, 1  ;;  %v4184_v33 = vsel %vm303_vm9, %v4183_v7, %v4182_v59  ;;  %v10629_v15 = vld [vmem:[#allocation31_spill] sm:$0xff]  ;;  %v10630_v7 = vld [vmem:[#allocation32_spill] sm:$0xff]  ;;  %v10631_v59 = vld [vmem:[#allocation33_spill] sm:$0xff] }
 0x7ee   :  { %3918 = vmatmul.mubr.f32.vlgmr.msra.gmra.mrb[22].mxu0 %v9842_v19  ;;  %6596 = vmatmul.mubr.f32.vlgmr.msra.gmra.mrb[44].mxu1 %v9842_v19  ;;  %v4186_v20 = vsel %vm306_vm10, %v4185_v53, %v4184_v33  ;;  %v10632_v53 = vld [vmem:[#allocation34_spill] sm:$0xff]  ;;  %v10633_v33 = vld [vmem:[#allocation35_spill] sm:$0xff] }
 0x7ef   :  { %7872 = vmatpush1.bf16.msra.mxu0 %v10441_v30  ;;  %7903 = vmatpush3.bf16.msra.mxu1 %v10442_v61 }
 0x7f0   :  { %7874 = vmatprep.subr.bf16.mxu0 %v10483_v56  ;;  %7904 = vmatprep.subr.bf16.mxu1 %v10402_v44 }
 0x7f1   :  { %4058 = vmatprep.mubr.f32.mxu0 %v10404_v50  ;;  %6630 = vmatprep.mubr.msk.f32.mxu1 %vm8674_vm1, %v10404_v50 }
 0x7f3   :  { %7876 = vmatpush1.bf16.msra.mxu0 %v10484_v16  ;;  %7906 = vmatpush3.bf16.msra.mxu1 %v10485_v0 }
 0x7f4   :  { %7878 = vmatprep.subr.bf16.mxu0 %v10486_v34  ;;  %7907 = vmatprep.subr.bf16.mxu1 %v10402_v44 }
 0x7f7   :  { %7880 = vmatpush1.bf16.msra.mxu0 %v10487_v41  ;;  %7909 = vmatpush3.bf16.msra.mxu1 %v10488_v37 }
 0x7f8   :  { %7882 = vmatprep.subr.bf16.mxu0 %v10489_v48  ;;  %7910 = vmatprep.subr.bf16.mxu1 %v10402_v44 }
 0x7fb   :  { %7884 = vmatpush1.bf16.msra.mxu0 %v10490_v43  ;;  %7912 = vmatpush3.bf16.msra.mxu1 %v10491_v12 }
 0x7fc   :  { %7886 = vmatprep.subr.bf16.mxu0 %v10492_v21  ;;  %7913 = vmatprep.subr.bf16.mxu1 %v10402_v44 }
 0x7ff   :  { %7888 = vmatpush1.bf16.msra.mxu0 %v10453_v51  ;;  %7915 = vmatpush3.bf16.msra.mxu1 %v10454_v25 }
 0x800   :  { %7890 = vmatprep.subr.bf16.mxu0 %v10455_v5  ;;  %7916 = vmatprep.subr.bf16.mxu1 %v10402_v44 }
 0x803   :  { %7892 = vmatpush1.bf16.msra.mxu0 %v10456_v1  ;;  %7918 = vmatpush3.bf16.msra.mxu1 %v10457_v40 }
 0x804   :  { %7894 = vmatprep.subr.bf16.mxu0 %v9094_v13  ;;  %7919 = vmatprep.subr.bf16.mxu1 %v10402_v44 }
 0x807   :  { %7896 = vmatpush1.bf16.msra.mxu0 %v9099_v22  ;;  %7921 = vmatpush3.bf16.msra.mxu1 %v9101_v57 }
 0x808   :  { %7898 = vmatprep.subr.bf16.mxu0 %v9106_v60  ;;  %7922 = vmatprep.subr.bf16.mxu1 %v10402_v44 }
 0x80b   :  { %7900 = vmatpush1.bf16.msra.mxu0 %v9111_v9  ;;  %7924 = vmatpush3.bf16.msra.mxu1 %v9113_v14 }
 0x80c   :  { %7927 = vmatprep.subr.msk.bf16.mxu0 %vm8803_vm3, %v8807_v6  ;;  %7931 = vmatprep.subr.bf16.mxu1 %v10402_v44 }
 0x80e   :  { %4059 = vmatmul.mubr.f32.vlgmr.msra.gmra.mrb[22].mxu0 %v9837_v8  ;;  %6631 = vmatmul.mubr.f32.vlgmr.msra.gmra.mrb[46].mxu1 %v9837_v8 }
 0x80f   :  { %7930 = vmatpush1.bf16.msk.msra.mxu0 %vm8803_vm3, %v8809_v10  ;;  %7934 = vmatpush3.bf16.msk.msra.mxu1 %vm8803_vm3, %v8835_v47 }
 0x810   :  { %4253 = vmatprep.mubr.f32.mxu0 %v10404_v50  ;;  %6637 = vmatprep.mubr.msk.f32.mxu1 %vm8674_vm1, %v10404_v50 }
 0x811   :  { %7936 = vmatprep.subr.bf16.mxu0 %v8811_v11  ;;  %7967 = vmatprep.subr.bf16.mxu1 %v10402_v44 }
 0x812   :  { %5513 = vmatmul.mubr.msk.f32.vlgmr.msra.gmra.mrb[24].mxu0 %vm308_vm11, %v4186_v20  ;;  %6638 = vmatmul.mubr.msk.f32.vlgmr.msra.gmra.mrb[48].mxu1 %vm308_vm11, %v4186_v20  ;;  %v10634_v20 = vld [vmem:[#allocation36_spill] sm:$0xff] }
 0x813   :  { %7938 = vmatpush1.bf16.msra.mxu0 %v8825_v36  ;;  %7969 = vmatpush3.bf16.msra.mxu1 %v8844_v55 }
 0x814   :  { %7940 = vmatprep.subr.bf16.mxu0 %v8828_v38  ;;  %7970 = vmatprep.subr.bf16.mxu1 %v10402_v44 }
 0x815   :  { %4394 = vmatprep.mubr.f32.mxu0 %v10404_v50  ;;  %6672 = vmatprep.mubr.msk.f32.mxu1 %vm8674_vm1, %v10404_v50 }
 0x817   :  { %7942 = vmatpush1.bf16.msra.mxu0 %v8833_v46  ;;  %7972 = vmatpush3.bf16.msra.mxu1 %v8855_v3 }
 0x818   :  { %7944 = vmatprep.subr.bf16.mxu0 %v8839_v49  ;;  %7973 = vmatprep.subr.bf16.mxu1 %v10402_v44 }
 0x81b   :  { %7946 = vmatpush1.bf16.msra.mxu0 %v8848_v58  ;;  %7975 = vmatpush3.bf16.msra.mxu1 %v10614_v24 }
 0x81c   :  { %7948 = vmatprep.subr.bf16.mxu0 %v10615_v62  ;;  %7976 = vmatprep.subr.bf16.mxu1 %v10402_v44 }
 0x81f   :  { %7950 = vmatpush1.bf16.msra.mxu0 %v10616_v31  ;;  %7978 = vmatpush3.bf16.msra.mxu1 %v10617_v17 }
 0x820   :  { %7952 = vmatprep.subr.bf16.mxu0 %v10618_v26  ;;  %7979 = vmatprep.subr.bf16.mxu1 %v10402_v44 }
 0x823   :  { %7954 = vmatpush1.bf16.msra.mxu0 %v10619_v23  ;;  %7981 = vmatpush3.bf16.msra.mxu1 %v10620_v18 }
 0x824   :  { %7956 = vmatprep.subr.bf16.mxu0 %v10621_v45  ;;  %7982 = vmatprep.subr.bf16.mxu1 %v10402_v44 }
 0x827   :  { %7958 = vmatpush1.bf16.msra.mxu0 %v10622_v28  ;;  %7984 = vmatpush3.bf16.msra.mxu1 %v10623_v35 }
 0x828   :  { %7960 = vmatprep.subr.bf16.mxu0 %v10624_v52  ;;  %7985 = vmatprep.subr.bf16.mxu1 %v10402_v44  ;;  %v10655_v52 = vld [vmem:[#allocation57_spill] sm:$0xff] }
 0x82b   :  { %7962 = vmatpush1.bf16.msra.mxu0 %v10625_v42  ;;  %7987 = vmatpush3.bf16.msra.mxu1 %v10626_v32  ;;  %v10642_v32 = vld [vmem:[#allocation44_spill] sm:$0xff] }
 0x82c   :  { %7964 = vmatprep.subr.bf16.mxu0 %v10627_v27  ;;  %7988 = vmatprep.subr.bf16.mxu1 %v10402_v44  ;;  %v10641_v27 = vld [vmem:[#allocation43_spill] sm:$0xff] }
 0x82f   :  { %7966 = vmatpush1.bf16.msra.mxu0 %v10628_v39  ;;  %7990 = vmatpush3.bf16.msra.mxu1 %v10629_v15  ;;  %v10636_v15 = vld [vmem:[#allocation38_spill] sm:$0xff] }
 0x830   :  { %7992 = vmatprep.subr.bf16.mxu0 %v10630_v7  ;;  %8023 = vmatprep.subr.bf16.mxu1 %v10402_v44  ;;  %v10635_v7 = vld [vmem:[#allocation37_spill] sm:$0xff]  ;;  %v10640_v39 = vld [vmem:[#allocation42_spill] sm:$0xff] }
 0x832   :  { %4395 = vmatmul.mubr.f32.vlgmr.msra.gmra.mrb[24].mxu0 %v9842_v19  ;;  %6673 = vmatmul.mubr.f32.vlgmr.msra.gmra.mrb[50].mxu1 %v9842_v19 }
 0x833   :  { %7994 = vmatpush1.bf16.msra.mxu0 %v10631_v59  ;;  %8025 = vmatpush3.bf16.msra.mxu1 %v10632_v53  ;;  %v10637_v59 = vld [vmem:[#allocation39_spill] sm:$0xff]  ;;  %v10638_v53 = vld [vmem:[#allocation40_spill] sm:$0xff] }
 0x834   :  { %7996 = vmatprep.subr.bf16.mxu0 %v10633_v33  ;;  %8026 = vmatprep.subr.bf16.mxu1 %v10402_v44  ;;  %v10639_v33 = vld [vmem:[#allocation41_spill] sm:$0xff] }
 0x835   :  { %4557 = vmatprep.mubr.f32.mxu0 %v10404_v50  ;;  %6707 = vmatprep.mubr.msk.f32.mxu1 %vm8674_vm1, %v10404_v50 }
 0x837   :  { %7998 = vmatpush1.bf16.msra.mxu0 %v10634_v20  ;;  %8028 = vmatpush3.bf16.msra.mxu1 %v10635_v7  ;;  %v10643_v7 = vld [vmem:[#allocation45_spill] sm:$0xff]  ;;  %v10645_v20 = vld [vmem:[#allocation47_spill] sm:$0xff] }
 0x838   :  { %8000 = vmatprep.subr.bf16.mxu0 %v10636_v15  ;;  %8029 = vmatprep.subr.bf16.mxu1 %v10402_v44  ;;  %v10644_v15 = vld [vmem:[#allocation46_spill] sm:$0xff] }
 0x83b   :  { %8002 = vmatpush1.bf16.msra.mxu0 %v10637_v59  ;;  %8031 = vmatpush3.bf16.msra.mxu1 %v10638_v53  ;;  %v10646_v53 = vld [vmem:[#allocation48_spill] sm:$0xff]  ;;  %v10648_v59 = vld [vmem:[#allocation50_spill] sm:$0xff] }
 0x83c   :  { %8004 = vmatprep.subr.bf16.mxu0 %v10639_v33  ;;  %8032 = vmatprep.subr.bf16.mxu1 %v10402_v44  ;;  %v10647_v33 = vld [vmem:[#allocation49_spill] sm:$0xff] }
 0x83f   :  { %8006 = vmatpush1.bf16.msra.mxu0 %v10640_v39  ;;  %8034 = vmatpush3.bf16.msra.mxu1 %v10641_v27  ;;  %v10649_v27 = vld [vmem:[#allocation51_spill] sm:$0xff]  ;;  %v10651_v39 = vld [vmem:[#allocation53_spill] sm:$0xff] }
 0x840   :  { %8008 = vmatprep.subr.bf16.mxu0 %v10642_v32  ;;  %8035 = vmatprep.subr.bf16.mxu1 %v10402_v44  ;;  %v10650_v32 = vld [vmem:[#allocation52_spill] sm:$0xff] }
 0x843   :  { %8010 = vmatpush1.bf16.msra.mxu0 %v10643_v7  ;;  %8037 = vmatpush3.bf16.msra.mxu1 %v10644_v15  ;;  %v10652_v15 = vld [vmem:[#allocation54_spill] sm:$0xff]  ;;  %v10654_v7 = vld [vmem:[#allocation56_spill] sm:$0xff] }
 0x844   :  { %8012 = vmatprep.subr.bf16.mxu0 %v10645_v20  ;;  %8038 = vmatprep.subr.bf16.mxu1 %v10402_v44  ;;  %v10653_v20 = vld [vmem:[#allocation55_spill] sm:$0xff] }
 0x847   :  { %8014 = vmatpush1.bf16.msra.mxu0 %v10646_v53  ;;  %8040 = vmatpush3.bf16.msra.mxu1 %v10647_v33 }
 0x848   :  { %8016 = vmatprep.subr.bf16.mxu0 %v10648_v59  ;;  %8041 = vmatprep.subr.bf16.mxu1 %v10402_v44 }
 0x84b   :  { %8018 = vmatpush1.bf16.msra.mxu0 %v10649_v27  ;;  %8043 = vmatpush3.bf16.msra.mxu1 %v10650_v32 }
 0x84c   :  { %8020 = vmatprep.subr.bf16.mxu0 %v10651_v39  ;;  %8044 = vmatprep.subr.bf16.mxu1 %v10402_v44  ;;  %v10656_v39 = vld [vmem:[#allocation79_spill] sm:$0xff] }
 0x84f   :  { %8022 = vmatpush1.bf16.msra.mxu0 %v10652_v15  ;;  %8046 = vmatpush3.bf16.msra.mxu1 %v10653_v20 }
 0x850   :  { %8048 = vmatprep.subr.bf16.mxu0 %v10654_v7  ;;  %8079 = vmatprep.subr.bf16.mxu1 %v10402_v44 }
 0x8c1   :  { %v3990_v33 = vpop.f32.mrb[44].mxu1 }
 0x8c2   :  { %v6597_v59 = vpop.f32.mrb[45].mxu1 }
 0x8c3   :  { %v10657_v59 = vld [vmem:[#allocation59_spill] sm:$0xff] }
 0x8e1   :  { %v4060_v53 = vpop.f32.mrb[22].mxu0  ;;  %v4131_v42 = vpop.f32.mrb[46].mxu1 }
 0x8e2   :  { %v8303_v27 = vadd.f32 %v4060_v53, %v10655_v52  ;;  %v4062_v35 = vpop.f32.mrb[23].mxu0  ;;  %v6632_v32 = vpop.f32.mrb[47].mxu1  ;;  %v4149_v31 = vadd.f32 %v10657_v59, %v4131_v42  ;;  %v3991_v53 = vadd.f32 %v3990_v33, %v9233_v63 }
 0x8e3   :  { %v8304_v45 = vadd.f32 %v4062_v35, %v10656_v39 }
 0x8e4   :  { %v5509_v28 = vmul.f32 -1.442695, %v8303_v27 }
 0x8e5   :  { %v4326_v18 = vpop.f32.mrb[48].mxu1  ;;  %v5510_v23 = vmul.f32 -1.442695, %v8304_v45 }
 0x8e6   :  { %8469 = vpow2.f32 %v5509_v28  ;;  %v6639_v15 = vpop.f32.mrb[49].mxu1 }
 0x8e7   :  { %8471 = vpow2.f32 %v5510_v23 }
 0x8f0   :  { %v8470_v20 = vpop.eup %8469 }
 0x8f1   :  { %v4143_v7 = vadd.f32 1.0, %v8470_v20  ;;  %v8472_v26 = vpop.eup %8471 }
 0x8f2   :  { %v4144_v17 = vadd.f32 1.0, %v8472_v26 }
 0x8f3   :  { %8473 = vrcp.f32 %v4143_v7 }
 0x8f4   :  { %8475 = vrcp.f32 %v4144_v17 }
 0x8fd   :  { %v8474_v62 = vpop.eup %8473 }
 0x8fe   :  { %v4150_v52 = vmul.f32 %v8474_v62, %v4149_v31  ;;  %v8476_v15 = vpop.eup %8475 }
 0x8ff   :  { %v4153_v26 = vsub.f32 1.0, %v8476_v15  ;;  %v4155_v62 = vmul.f32 %v8476_v15, %v9837_v8 }
 0x900   :  { %v4151_v32 = vadd.f32 %v4150_v52, %v3991_v53 }
 0x902   :  { %8477 = vtanh.f32 %v4151_v32  ;;  %v9989_v32 = vld [vmem:[%s10202_s4] ss:$0 sm:$0xff] }
 0x905   :  { %v4396_v35 = vpop.f32.mrb[24].mxu0  ;;  %v4467_v27 = vpop.f32.mrb[50].mxu1 }
 0x906   :  { %v8305_v28 = vadd.f32 %v4396_v35, %v10482_v4  ;;  %v4398_v45 = vpop.f32.mrb[25].mxu0  ;;  %v6674_v23 = vpop.f32.mrb[51].mxu1  ;;  %v4485_v35 = vadd.f32 %v9989_v32, %v4467_v27 }
 0x907   :  { %v8306_v7 = vadd.f32 %v4398_v45, %v10438_v29  ;;  %v4327_v45 = vadd.f32 %v4326_v18, %v10440_v54  ;;  %v4799_v18 = vld [vmem:[#allocation2 + $0x17] sm:$0x1] }
 0x908   :  { %v5516_v20 = vmul.f32 -1.442695, %v8305_v28 }
 0x909   :  { %v5517_v59 = vmul.f32 -1.442695, %v8306_v7 }
 0x90a   :  { %8479 = vpow2.f32 %v5516_v20 }
 0x90b   :  { %8481 = vpow2.f32 %v5517_v59  ;;  %v4797_v59 = vld [vmem:[#allocation2 + $0x7] sm:$0x1] }
 0x90c   :  { %v8478_v42 = vpop.eup %8477 }
 0x90d   :  { %v4154_v39 = vmul.f32 %v8478_v42, %v4153_v26 }
 0x90f   :  { %v9984_v31 = vadd.f32 %v4155_v62, %v4154_v39  ;;  %v4800_v62 = vld [vmem:[#allocation2 + $0x1f] sm:$0x1] }
 0x914   :  { %v8480_v17 = vpop.eup %8479 }
 0x915   :  { %v4479_v52 = vadd.f32 1.0, %v8480_v17  ;;  %v8482_v33 = vpop.eup %8481  ;;  %v4815_v17 = vrot.slane %v4799_v18, 6 }
 0x916   :  { %v4480_v53 = vadd.f32 1.0, %v8482_v33  ;;  %v4801_v33 = vld [vmem:[#allocation2 + $0x27] sm:$0x1] }
 0x917   :  { %8483 = vrcp.f32 %v4479_v52 }
 0x918   :  { %8485 = vrcp.f32 %v4480_v53  ;;  %v4817_v53 = vrot.slane %v4800_v62, 5  ;;  %v10672_v62 = vld [vmem:[#allocation31_spill] sm:$0xff] }
 0x921   :  { %v8484_v28 = vpop.eup %8483 }
 0x922   :  { %v4486_v23 = vmul.f32 %v8484_v28, %v4485_v35  ;;  %v8486_v39 = vpop.eup %8485  ;;  %v4802_v28 = vld [vmem:[#allocation2 + $0x2f] sm:$0x1] }
 0x923   :  { %v4489_v15 = vsub.f32 1.0, %v8486_v39  ;;  %v4491_v26 = vmul.f32 %v8486_v39, %v9842_v19  ;;  %v4798_v19 = vld [vmem:[#allocation2 + $0xf] sm:$0x1]  ;;  %v4821_v39 = vrot.slane %v4802_v28, 3  ;;  %v10678_v28 = vld [vmem:[#allocation37_spill] sm:$0xff] }
 0x924   :  { %v4487_v8 = vadd.f32 %v4486_v23, %v4327_v45  ;;  %v4813_v27 = vrot.slane %v4798_v19, 7  ;;  %v4819_v45 = vrot.slane %v4801_v33, 4  ;;  %v10675_v33 = vld [vmem:[#allocation34_spill] sm:$0xff] }
 0x926   :  { %8487 = vtanh.f32 %v4487_v8  ;;  %v4814_v52 = vsel %vm288_vm4, %v4813_v27, %v4797_v59  ;;  %v4803_v8 = vld [vmem:[#allocation2 + $0x37] sm:$0x1]  ;;  %v10671_v59 = vld [vmem:[#allocation29_spill] sm:$0xff] }
 0x927   :  { %v4816_v35 = vsel %vm291_vm5, %v4815_v17, %v4814_v52  ;;  %v10673_v17 = vld [vmem:[#allocation32_spill] sm:$0xff]  ;;  %v10674_v52 = vld [vmem:[#allocation33_spill] sm:$0xff] }
 0x928   :  { %v4818_v23 = vsel %vm294_vm6, %v4817_v53, %v4816_v35  ;;  %v10676_v53 = vld [vmem:[#allocation35_spill] sm:$0xff]  ;;  %v10677_v35 = vld [vmem:[#allocation36_spill] sm:$0xff] }
 0x930   :  { %v8488_v20 = vpop.eup %8487 }
 0x931   :  { %v4490_v7 = vmul.f32 %v8488_v20, %v4489_v15  ;;  %v4820_v15 = vsel %vm297_vm7, %v4819_v45, %v4818_v23  ;;  %v4804_v20 = vld [vmem:[#allocation2 + $0x3f] sm:$0x1]  ;;  %v10679_v45 = vld [vmem:[#allocation38_spill] sm:$0xff]  ;;  %v10680_v23 = vld [vmem:[#allocation39_spill] sm:$0xff] }
 0x932   :  { %v4825_v19 = vrot.slane %v4804_v20, 1  ;;  %v10684_v20 = vld [vmem:[#allocation43_spill] sm:$0xff] }
 0x933   :  { %v9994_v42 = vadd.f32 %v4491_v26, %v4490_v7  ;;  %v4823_v7 = vrot.slane %v4803_v8, 2  ;;  %v4822_v26 = vsel %vm300_vm8, %v4821_v39, %v4820_v15  ;;  %v10681_v8 = vld [vmem:[#allocation40_spill] sm:$0xff]  ;;  %v10682_v39 = vld [vmem:[#allocation41_spill] sm:$0xff]  ;;  %v10683_v15 = vld [vmem:[#allocation42_spill] sm:$0xff] }
 0x935   :  { %4558 = vmatmul.mubr.f32.vlgmr.msra.gmra.mrb[26].mxu0 %v9994_v42  ;;  %6708 = vmatmul.mubr.f32.vlgmr.msra.gmra.mrb[52].mxu1 %v9994_v42  ;;  %v4824_v18 = vsel %vm303_vm9, %v4823_v7, %v4822_v26  ;;  %v10685_v7 = vld [vmem:[#allocation44_spill] sm:$0xff]  ;;  %v10686_v26 = vld [vmem:[#allocation45_spill] sm:$0xff] }
 0x936   :  { %8050 = vmatpush1.bf16.msra.mxu0 %v10441_v30  ;;  %8081 = vmatpush3.bf16.msra.mxu1 %v10442_v61  ;;  %v4826_v27 = vsel %vm306_vm10, %v4825_v19, %v4824_v18  ;;  %v10687_v19 = vld [vmem:[#allocation46_spill] sm:$0xff]  ;;  %v10688_v18 = vld [vmem:[#allocation47_spill] sm:$0xff] }
 0x937   :  { %8052 = vmatprep.subr.bf16.mxu0 %v10483_v56  ;;  %8082 = vmatprep.subr.bf16.mxu1 %v10402_v44 }
 0x938   :  { %4698 = vmatprep.mubr.f32.mxu0 %v10404_v50  ;;  %6742 = vmatprep.mubr.msk.f32.mxu1 %vm8674_vm1, %v10404_v50 }
 0x93a   :  { %8054 = vmatpush1.bf16.msra.mxu0 %v10484_v16  ;;  %8084 = vmatpush3.bf16.msra.mxu1 %v10485_v0 }
 0x93b   :  { %8056 = vmatprep.subr.bf16.mxu0 %v10486_v34  ;;  %8085 = vmatprep.subr.bf16.mxu1 %v10402_v44 }
 0x93e   :  { %8058 = vmatpush1.bf16.msra.mxu0 %v10487_v41  ;;  %8087 = vmatpush3.bf16.msra.mxu1 %v10488_v37 }
 0x93f   :  { %8060 = vmatprep.subr.bf16.mxu0 %v10489_v48  ;;  %8088 = vmatprep.subr.bf16.mxu1 %v10402_v44 }
 0x942   :  { %8062 = vmatpush1.bf16.msra.mxu0 %v10490_v43  ;;  %8090 = vmatpush3.bf16.msra.mxu1 %v10491_v12 }
 0x943   :  { %8064 = vmatprep.subr.bf16.mxu0 %v10492_v21  ;;  %8091 = vmatprep.subr.bf16.mxu1 %v10402_v44 }
 0x946   :  { %8066 = vmatpush1.bf16.msra.mxu0 %v10453_v51  ;;  %8093 = vmatpush3.bf16.msra.mxu1 %v10454_v25 }
 0x947   :  { %8068 = vmatprep.subr.bf16.mxu0 %v10455_v5  ;;  %8094 = vmatprep.subr.bf16.mxu1 %v10402_v44 }
 0x94a   :  { %8070 = vmatpush1.bf16.msra.mxu0 %v10456_v1  ;;  %8096 = vmatpush3.bf16.msra.mxu1 %v10457_v40 }
 0x94b   :  { %8072 = vmatprep.subr.bf16.mxu0 %v9094_v13  ;;  %8097 = vmatprep.subr.bf16.mxu1 %v10402_v44 }
 0x94e   :  { %8074 = vmatpush1.bf16.msra.mxu0 %v9099_v22  ;;  %8099 = vmatpush3.bf16.msra.mxu1 %v9101_v57 }
 0x94f   :  { %8076 = vmatprep.subr.bf16.mxu0 %v9106_v60  ;;  %8100 = vmatprep.subr.bf16.mxu1 %v10402_v44 }
 0x952   :  { %8078 = vmatpush1.bf16.msra.mxu0 %v9111_v9  ;;  %8102 = vmatpush3.bf16.msra.mxu1 %v9113_v14 }
 0x953   :  { %8105 = vmatprep.subr.msk.bf16.mxu0 %vm8803_vm3, %v8807_v6  ;;  %8109 = vmatprep.subr.bf16.mxu1 %v10402_v44  ;;  %v10659_v6 = vld [vmem:[#allocation17_spill] sm:$0xff] }
 0x955   :  { %4699 = vmatmul.mubr.f32.vlgmr.msra.gmra.mrb[26].mxu0 %v9984_v31  ;;  %6743 = vmatmul.mubr.f32.vlgmr.msra.gmra.mrb[54].mxu1 %v9984_v31 }
 0x956   :  { %8108 = vmatpush1.bf16.msk.msra.mxu0 %vm8803_vm3, %v8809_v10  ;;  %8112 = vmatpush3.bf16.msk.msra.mxu1 %vm8803_vm3, %v8835_v47  ;;  %v10660_v10 = vld [vmem:[#allocation22_spill] sm:$0xff]  ;;  %v10665_v47 = vld [vmem:[#allocation23_spill] sm:$0xff] }
 0x957   :  { %4893 = vmatprep.mubr.f32.mxu0 %v10404_v50  ;;  %6749 = vmatprep.mubr.msk.f32.mxu1 %vm8674_vm1, %v10404_v50 }
 0x958   :  { %8114 = vmatprep.subr.bf16.mxu0 %v8811_v11  ;;  %8145 = vmatprep.subr.bf16.mxu1 %v10402_v44  ;;  %v10661_v11 = vld [vmem:[#allocation18_spill] sm:$0xff] }
 0x959   :  { %5522 = vmatmul.mubr.msk.f32.vlgmr.msra.gmra.mrb[28].mxu0 %vm308_vm11, %v4826_v27  ;;  %6750 = vmatmul.mubr.msk.f32.vlgmr.msra.gmra.mrb[56].mxu1 %vm308_vm11, %v4826_v27  ;;  %v10689_v27 = vld [vmem:[#allocation48_spill] sm:$0xff] }
 0x95a   :  { %8116 = vmatpush1.bf16.msra.mxu0 %v8825_v36  ;;  %8147 = vmatpush3.bf16.msra.mxu1 %v8844_v55  ;;  %v10662_v36 = vld [vmem:[#allocation20_spill] sm:$0xff] }
 0x95b   :  { %8118 = vmatprep.subr.bf16.mxu0 %v8828_v38  ;;  %8148 = vmatprep.subr.bf16.mxu1 %v10402_v44  ;;  %v10663_v38 = vld [vmem:[#allocation25_spill] sm:$0xff]  ;;  %v10667_v55 = vld [vmem:[#allocation24_spill] sm:$0xff] }
 0x95c   :  { %5034 = vmatprep.mubr.f32.mxu0 %v10404_v50  ;;  %6784 = vmatprep.mubr.msk.f32.mxu1 %vm8674_vm1, %v10404_v50 }
 0x95e   :  { %8120 = vmatpush1.bf16.msra.mxu0 %v8833_v46  ;;  %8150 = vmatpush3.bf16.msra.mxu1 %v8855_v3  ;;  %v10664_v46 = vld [vmem:[#allocation21_spill] sm:$0xff]  ;;  %v10669_v3 = vld [vmem:[#allocation30_spill] sm:$0xff] }
 0x95f   :  { %8122 = vmatprep.subr.bf16.mxu0 %v8839_v49  ;;  %8151 = vmatprep.subr.bf16.mxu1 %v10402_v44  ;;  %v10666_v49 = vld [vmem:[#allocation28_spill] sm:$0xff] }
 0x962   :  { %8124 = vmatpush1.bf16.msra.mxu0 %v8848_v58  ;;  %8153 = vmatpush3.bf16.msra.mxu1 %v10614_v24  ;;  %v10668_v58 = vld [vmem:[#allocation26_spill] sm:$0xff]  ;;  %v10670_v24 = vld [vmem:[#allocation27_spill] sm:$0xff] }
 0x963   :  { %8126 = vmatprep.subr.bf16.mxu0 %v10658_v2  ;;  %8154 = vmatprep.subr.bf16.mxu1 %v10402_v44  ;;  %v10690_v2 = vld [vmem:[#allocation49_spill] sm:$0xff] }
 0x966   :  { %8128 = vmatpush1.bf16.msra.mxu0 %v10659_v6  ;;  %8156 = vmatpush3.bf16.msra.mxu1 %v10660_v10  ;;  %v10691_v6 = vld [vmem:[#allocation50_spill] sm:$0xff]  ;;  %v10692_v10 = vld [vmem:[#allocation51_spill] sm:$0xff] }
 0x967   :  { %8130 = vmatprep.subr.bf16.mxu0 %v10661_v11  ;;  %8157 = vmatprep.subr.bf16.mxu1 %v10402_v44  ;;  %v10693_v11 = vld [vmem:[#allocation52_spill] sm:$0xff] }
 0x96a   :  { %8132 = vmatpush1.bf16.msra.mxu0 %v10662_v36  ;;  %8159 = vmatpush3.bf16.msra.mxu1 %v10663_v38  ;;  %v10694_v36 = vld [vmem:[#allocation53_spill] sm:$0xff]  ;;  %v10695_v38 = vld [vmem:[#allocation54_spill] sm:$0xff] }
 0x96b   :  { %8134 = vmatprep.subr.bf16.mxu0 %v10664_v46  ;;  %8160 = vmatprep.subr.bf16.mxu1 %v10402_v44  ;;  %v10696_v46 = vld [vmem:[#allocation55_spill] sm:$0xff] }
 0x96e   :  { %8136 = vmatpush1.bf16.msra.mxu0 %v10665_v47  ;;  %8162 = vmatpush3.bf16.msra.mxu1 %v10666_v49  ;;  %v10697_v47 = vld [vmem:[#allocation56_spill] sm:$0xff] }
 0x96f   :  { %8138 = vmatprep.subr.bf16.mxu0 %v10667_v55  ;;  %8163 = vmatprep.subr.bf16.mxu1 %v10402_v44 }
 0x972   :  { %8140 = vmatpush1.bf16.msra.mxu0 %v10668_v58  ;;  %8165 = vmatpush3.bf16.msra.mxu1 %v10669_v3 }
 0x973   :  { %8142 = vmatprep.subr.bf16.mxu0 %v10670_v24  ;;  %8166 = vmatprep.subr.bf16.mxu1 %v10402_v44  ;;  %v10698_v24 = vld [vmem:[#allocation57_spill] sm:$0xff] }
 0x976   :  { %8144 = vmatpush1.bf16.msra.mxu0 %v10671_v59  ;;  %8168 = vmatpush3.bf16.msra.mxu1 %v10672_v62 }
 0x977   :  { %8170 = vmatprep.subr.bf16.mxu0 %v10673_v17  ;;  %8201 = vmatprep.subr.bf16.mxu1 %v10402_v44 }
 0x979   :  { %5035 = vmatmul.mubr.f32.vlgmr.msra.gmra.mrb[28].mxu0 %v9994_v42  ;;  %6785 = vmatmul.mubr.f32.vlgmr.msra.gmra.mrb[58].mxu1 %v9994_v42 }
 0x97a   :  { %8172 = vmatpush1.bf16.msra.mxu0 %v10674_v52  ;;  %8203 = vmatpush3.bf16.msra.mxu1 %v10675_v33  ;;  %v10699_v33 = vld [vmem:[#allocation79_spill] sm:$0xff] }
 0x97b   :  { %8174 = vmatprep.subr.bf16.mxu0 %v10676_v53  ;;  %8204 = vmatprep.subr.bf16.mxu1 %v10402_v44 }
 0x97c   :  { %5197 = vmatprep.mubr.f32.mxu0 %v10404_v50  ;;  %6819 = vmatprep.mubr.msk.f32.mxu1 %vm8674_vm1, %v10404_v50 }
 0x97e   :  { %8176 = vmatpush1.bf16.msra.mxu0 %v10677_v35  ;;  %8206 = vmatpush3.bf16.msra.mxu1 %v10678_v28 }
 0x97f   :  { %8178 = vmatprep.subr.bf16.mxu0 %v10679_v45  ;;  %8207 = vmatprep.subr.bf16.mxu1 %v10402_v44 }
 0x982   :  { %8180 = vmatpush1.bf16.msra.mxu0 %v10680_v23  ;;  %8209 = vmatpush3.bf16.msra.mxu1 %v10681_v8 }
 0x983   :  { %8182 = vmatprep.subr.bf16.mxu0 %v10682_v39  ;;  %8210 = vmatprep.subr.bf16.mxu1 %v10402_v44 }
 0x986   :  { %8184 = vmatpush1.bf16.msra.mxu0 %v10683_v15  ;;  %8212 = vmatpush3.bf16.msra.mxu1 %v10684_v20  ;;  %v10134_v20 = vld [vmem:[%s10206_s8] ss:$0 sm:$0xff]  ;;  %s8676_s8 = smov [#allocation11]  }
 0x987   :  { %8186 = vmatprep.subr.bf16.mxu0 %v10685_v7  ;;  %8213 = vmatprep.subr.bf16.mxu1 %v10402_v44  ;;  %s5444_s0 = sshll.u32 %s8676_s8, 4  ;;  %s5445_s0 = int_to_ptr.vmem [resolvable:$true] %s5444_s0 }
 0x988   :  { %s8633_s26 = scalar_lea.vmem %s5445_s0, 128  ;;  %p8638_p13 = scmp.lt.s32.totalorder %s5445_s0, %s5445_s0 }
 0x989   :  { %p8634_p12 = scmp.ne.s32.totalorder %s5445_s0, %s8633_s26  ;;  %p8639_p0 = scmp.lt.s32.totalorder %s8633_s26, %s8633_s26 }
 0x98a   :  { %8188 = vmatpush1.bf16.msra.mxu0 %v10686_v26  ;;  %8215 = vmatpush3.bf16.msra.mxu1 %v10687_v19 }
 0x98b   :  { %8190 = vmatprep.subr.bf16.mxu0 %v10688_v18  ;;  %8216 = vmatprep.subr.bf16.mxu1 %v10402_v44  ;;  %p8640_p1 = por %p8639_p0, %p8638_p13 }
 0x98d   :  { %p8641_p2 = pnand %p8640_p1, %p8634_p12 }
 0x98e   :  { %8192 = vmatpush1.bf16.msra.mxu0 %v10689_v27  ;;  %8218 = vmatpush3.bf16.msra.mxu1 %v10690_v2 }
 0x98f   :  { %8194 = vmatprep.subr.bf16.mxu0 %v10691_v6  ;;  %8219 = vmatprep.subr.bf16.mxu1 %v10402_v44 }
 0x992   :  { %8196 = vmatpush1.bf16.msra.mxu0 %v10692_v10  ;;  %8221 = vmatpush3.bf16.msra.mxu1 %v10693_v11 }
 0x993   :  { %8198 = vmatprep.subr.bf16.mxu0 %v10694_v36  ;;  %8222 = vmatprep.subr.bf16.mxu1 %v10402_v44 }
 0x996   :  { %8200 = vmatpush1.bf16.msra.mxu0 %v10695_v38  ;;  %8224 = vmatpush3.bf16.msra.mxu1 %v10696_v46 }
 0x997   :  { %8226 = vmatprep.subr.bf16.mxu0 %v10697_v47  ;;  %8257 = vmatprep.subr.bf16.mxu1 %v10402_v44 }
 0xa08   :  { %v4630_v49 = vpop.f32.mrb[52].mxu1 }
 0xa09   :  { %v6709_v55 = vpop.f32.mrb[53].mxu1  ;;  %v4631_v19 = vadd.f32 %v4630_v49, %v9233_v63 }
 0xa28   :  { %v4700_v58 = vpop.f32.mrb[26].mxu0  ;;  %v4771_v3 = vpop.f32.mrb[54].mxu1 }
 0xa29   :  { %v8307_v59 = vadd.f32 %v4700_v58, %v10698_v24  ;;  %v4702_v62 = vpop.f32.mrb[27].mxu0  ;;  %v6744_v17 = vpop.f32.mrb[55].mxu1  ;;  %v4789_v7 = vadd.f32 %v10134_v20, %v4771_v3 }
 0xa2a   :  { %v8308_v53 = vadd.f32 %v4702_v62, %v10699_v33 }
 0xa2b   :  { %v5518_v52 = vmul.f32 -1.442695, %v8307_v59 }
 0xa2c   :  { %v4966_v35 = vpop.f32.mrb[56].mxu1  ;;  %v5519_v45 = vmul.f32 -1.442695, %v8308_v53 }
 0xa2d   :  { %8489 = vpow2.f32 %v5518_v52  ;;  %v6751_v28 = vpop.f32.mrb[57].mxu1 }
 0xa2e   :  { %8491 = vpow2.f32 %v5519_v45 }
 0xa37   :  { %v8490_v23 = vpop.eup %8489 }
 0xa38   :  { %v4783_v8 = vadd.f32 1.0, %v8490_v23  ;;  %v8492_v39 = vpop.eup %8491 }
 0xa39   :  { %v4784_v15 = vadd.f32 1.0, %v8492_v39 }
 0xa3a   :  { %8493 = vrcp.f32 %v4783_v8 }
 0xa3b   :  { %8495 = vrcp.f32 %v4784_v15 }
 0xa44   :  { %v8494_v26 = vpop.eup %8493 }
 0xa45   :  { %v4790_v18 = vmul.f32 %v8494_v26, %v4789_v7  ;;  %v8496_v38 = vpop.eup %8495 }
 0xa46   :  { %v4793_v55 = vsub.f32 1.0, %v8496_v38  ;;  %v4795_v49 = vmul.f32 %v8496_v38, %v9984_v31 }
 0xa47   :  { %v4791_v27 = vadd.f32 %v4790_v18, %v4631_v19 }
 0xa49   :  { %8497 = vtanh.f32 %v4791_v27 }
 0xa4c   :  { %v5036_v2 = vpop.f32.mrb[28].mxu0  ;;  %v5107_v6 = vpop.f32.mrb[58].mxu1 }
 0xa4d   :  { %v8309_v10 = vadd.f32 %v5036_v2, %v10482_v4  ;;  %v5038_v11 = vpop.f32.mrb[29].mxu0  ;;  %v6786_v36 = vpop.f32.mrb[59].mxu1  ;;  %v5125_v28 = vadd.f32 %v9989_v32, %v5107_v6 }
 0xa4e   :  { %v8310_v47 = vadd.f32 %v5038_v11, %v10438_v29  ;;  %v4967_v29 = vadd.f32 %v4966_v35, %v10440_v54 }
 0xa4f   :  { %v5525_v46 = vmul.f32 -1.442695, %v8309_v10 }
 0xa50   :  { %v5526_v3 = vmul.f32 -1.442695, %v8310_v47 }
 0xa51   :  { %8499 = vpow2.f32 %v5525_v46 }
 0xa52   :  { %8501 = vpow2.f32 %v5526_v3 }
 0xa53   :  { %v8498_v58 = vpop.eup %8497 }
 0xa54   :  { %v4794_v59 = vmul.f32 %v8498_v58, %v4793_v55 }
 0xa56   :  { %v10141_v62 = vadd.f32 %v4795_v49, %v4794_v59 }
 0xa5b   :  { %v8500_v17 = vpop.eup %8499 }
 0xa5c   :  { %v5119_v52 = vadd.f32 1.0, %v8500_v17  ;;  %v8502_v4 = vpop.eup %8501 }
 0xa5d   :  { %v5120_v53 = vadd.f32 1.0, %v8502_v4 }
 0xa5e   :  { %8503 = vrcp.f32 %v5119_v52 }
 0xa5f   :  { %8505 = vrcp.f32 %v5120_v53 }
 0xa68   :  { %v8504_v45 = vpop.eup %8503 }
 0xa69   :  { %v5126_v23 = vmul.f32 %v8504_v45, %v5125_v28  ;;  %v8506_v39 = vpop.eup %8505 }
 0xa6a   :  { %v5129_v15 = vsub.f32 1.0, %v8506_v39  ;;  %v5131_v26 = vmul.f32 %v8506_v39, %v9994_v42 }
 0xa6b   :  { %v5127_v8 = vadd.f32 %v5126_v23, %v4967_v29 }
 0xa6d   :  { %8507 = vtanh.f32 %v5127_v8 }
 0xa77   :  { %v8508_v31 = vpop.eup %8507 }
 0xa78   :  { %v5130_v7 = vmul.f32 %v8508_v31, %v5129_v15 }
 0xa7a   :  { %v5132_v19 = vadd.f32 %v5131_v26, %v5130_v7 }
 0xa7c   :  { %5198 = vmatmul.mubr.f32.vlgmr.msra.gmra.mrb[30].mxu0 %v5132_v19  ;;  %6820 = vmatmul.mubr.f32.vlgmr.msra.gmra.mrb[60].mxu1 %v5132_v19 }
 0xa7d   :  { %8228 = vmatpush1.bf16.msra.mxu0 %v10441_v30  ;;  %8259 = vmatpush3.bf16.msra.mxu1 %v10442_v61 }
 0xa7e   :  { %8230 = vmatprep.subr.bf16.mxu0 %v10483_v56  ;;  %8260 = vmatprep.subr.bf16.mxu1 %v10402_v44 }
 0xa7f   :  { %5338 = vmatprep.mubr.f32.mxu0 %v10404_v50  ;;  %6854 = vmatprep.mubr.msk.f32.mxu1 %vm8674_vm1, %v10404_v50 }
 0xa81   :  { %8232 = vmatpush1.bf16.msra.mxu0 %v10484_v16  ;;  %8262 = vmatpush3.bf16.msra.mxu1 %v10485_v0 }
 0xa82   :  { %8234 = vmatprep.subr.bf16.mxu0 %v10486_v34  ;;  %8263 = vmatprep.subr.bf16.mxu1 %v10402_v44 }
 0xa85   :  { %8236 = vmatpush1.bf16.msra.mxu0 %v10487_v41  ;;  %8265 = vmatpush3.bf16.msra.mxu1 %v10488_v37 }
 0xa86   :  { %8238 = vmatprep.subr.bf16.mxu0 %v10489_v48  ;;  %8266 = vmatprep.subr.bf16.mxu1 %v10402_v44 }
 0xa89   :  { %8240 = vmatpush1.bf16.msra.mxu0 %v10490_v43  ;;  %8268 = vmatpush3.bf16.msra.mxu1 %v10491_v12 }
 0xa8a   :  { %8242 = vmatprep.subr.bf16.mxu0 %v10492_v21  ;;  %8269 = vmatprep.subr.bf16.mxu1 %v10402_v44 }
 0xa8d   :  { %8244 = vmatpush1.bf16.msra.mxu0 %v10453_v51  ;;  %8271 = vmatpush3.bf16.msra.mxu1 %v10454_v25 }
 0xa8e   :  { %8246 = vmatprep.subr.bf16.mxu0 %v10455_v5  ;;  %8272 = vmatprep.subr.bf16.mxu1 %v10402_v44 }
 0xa91   :  { %8248 = vmatpush1.bf16.msra.mxu0 %v10456_v1  ;;  %8274 = vmatpush3.bf16.msra.mxu1 %v10457_v40 }
 0xa92   :  { %8250 = vmatprep.subr.bf16.mxu0 %v9094_v13  ;;  %8275 = vmatprep.subr.bf16.mxu1 %v10402_v44 }
 0xa95   :  { %8252 = vmatpush1.bf16.msra.mxu0 %v9099_v22  ;;  %8277 = vmatpush3.bf16.msra.mxu1 %v9101_v57 }
 0xa96   :  { %8254 = vmatprep.subr.bf16.mxu0 %v9106_v60  ;;  %8278 = vmatprep.subr.bf16.mxu1 %v10402_v44 }
 0xa99   :  { %8256 = vmatpush1.bf16.msra.mxu0 %v9111_v9  ;;  %8280 = vmatpush3.bf16.msra.mxu1 %v9113_v14 }
 0xa9c   :  { %5339 = vmatmul.mubr.f32.vlgmr.msra.gmra.mrb[30].mxu0 %v10141_v62  ;;  %6855 = vmatmul.mubr.f32.vlgmr.msra.gmra.mrb[62].mxu1 %v10141_v62 }
 0xb4f   :  { %v5270_v50 = vpop.f32.mrb[60].mxu1 }
 0xb50   :  { %v6821_v13 = vpop.f32.mrb[61].mxu1  ;;  %v5271_v56 = vadd.f32 %v5270_v50, %v9233_v63 }
 0xb6f   :  { %v5340_v54 = vpop.f32.mrb[30].mxu0  ;;  %v5411_v30 = vpop.f32.mrb[62].mxu1 }
 0xb70   :  { %v8311_v22 = vadd.f32 %v5340_v54, %v10698_v24  ;;  %v5342_v61 = vpop.f32.mrb[31].mxu0  ;;  %v6856_v57 = vpop.f32.mrb[63].mxu1  ;;  %v5429_v25 = vadd.f32 %v10134_v20, %v5411_v30 }
 0xb71   :  { %v8312_v60 = vadd.f32 %v5342_v61, %v10699_v33 }
 0xb72   :  { %v5527_v40 = vmul.f32 -1.442695, %v8311_v22 }
 0xb73   :  { %v5528_v44 = vmul.f32 -1.442695, %v8312_v60 }
 0xb74   :  { %8509 = vpow2.f32 %v5527_v40 }
 0xb75   :  { %8511 = vpow2.f32 %v5528_v44 }
 0xb7e   :  { %v8510_v9 = vpop.eup %8509 }
 0xb7f   :  { %v5423_v14 = vadd.f32 1.0, %v8510_v9  ;;  %v8512_v1 = vpop.eup %8511 }
 0xb80   :  { %v5424_v51 = vadd.f32 1.0, %v8512_v1 }
 0xb81   :  { %8513 = vrcp.f32 %v5423_v14 }
 0xb82   :  { %8515 = vrcp.f32 %v5424_v51 }
 0xb8b   :  { %v8514_v5 = vpop.eup %8513 }
 0xb8c   :  { %v5430_v16 = vmul.f32 %v8514_v5, %v5429_v25  ;;  %v8516_v34 = vpop.eup %8515 }
 0xb8d   :  { %v5433_v41 = vsub.f32 1.0, %v8516_v34  ;;  %v5435_v43 = vmul.f32 %v8516_v34, %v10141_v62 }
 0xb8e   :  { %v5431_v0 = vadd.f32 %v5430_v16, %v5271_v56 }
 0xb90   :  { %8517 = vtanh.f32 %v5431_v0 }
 0xb9a   :  { %v8518_v37 = vpop.eup %8517 }
 0xb9b   :  { %v5434_v48 = vmul.f32 %v8518_v37, %v5433_v41 }
 0xb9d   :  { %v5436_v12 = vadd.f32 %v5435_v43, %v5434_v48 }
 0xb9f   :  { %5437 = vst [vmem:[#allocation11] sm:$0xff] %v5436_v12 }
 0xba0   :  { %8644 = shalt.err (!%p8641_p2)
}
 0xba1   :  { %s8645_s22 = scalar_lea.hbm %s10207_s9, 128 }
 0xba2   :  { %p8646_p3 = scmp.ne.s32.totalorder %s10207_s9, %s8645_s22  ;;  %p8649_p4 = scmp.lt.u32.totalorder %s8645_s22, %s10207_s9 }
 0xba4   :  { %p8651_p5 = pnand %p8649_p4, %p8646_p3 }
 0xba6   :  { %8654 = shalt.err (!%p8651_p5)
}
 0xba7   :  { %5447 = dma.vmem_to_hbm [thread:$0]  %s5445_s0, 128, %s10207_s9, [#allocation4]  }
 0xba8   :  { %8661 = dma.done.wait [#allocation4], 128  }
 0xba9   :  { %8662 = vsyncadd [#allocation4], 4294967168 }
 0xbaa   :  { %5451 = vsyncpa [#allocation3], 1 }
 0xbab   :  { %5452 = vsyncpa [#allocation6], 1 }
 0xbac   :  { %5453 = vsyncpa [#allocation9], 1 }
 0xbad   :  { %5454 = vsyncpa [#allocation4], 1 }

</bundles_post_ra>
